<compile_context>
chip_gen: v7x
topology: tpu7x:2x2x1
jax: 0.10.0
libtpu: 0.0.40
codegen_flags: <defaults>
</compile_context>

<pallas_src>
import functools
import numpy as np
import jax
import jax.numpy as jnp
from jax import lax
from jax.experimental import pallas as pl
from jax.experimental.pallas import tpu as pltpu


# ----------------------------- kernel -----------------------------
def gru_decoder_kernel(num_layers, T, B_pad, H_pad, unroll,
                       z_ref, mask_ref, *refs):
    # refs layout: [wih, whh, b_gi, b_hn] * num_layers, wlin, b_lin, out_ref, buf_ref, gi_ref
    layer_refs = refs[:4 * num_layers]
    wlin_ref, blin_ref, out_ref, buf_ref, gi_ref = refs[4 * num_layers:]

    def run_recurrence(gi_fn, whh_bf16, bhn_b):
        """Serial GRU recurrence; only h @ W_hh remains on the per-step path."""
        def body(t, h):
            gi = gi_fn(t)                                            # (B_pad, 3*H_pad) f32
            gh = jnp.dot(h.astype(jnp.bfloat16), whh_bf16,
                         preferred_element_type=jnp.float32)         # (B_pad, 3*H_pad) f32
            r = jax.nn.sigmoid(gi[:, 0:H_pad] + gh[:, 0:H_pad])
            zt = jax.nn.sigmoid(gi[:, H_pad:2 * H_pad] + gh[:, H_pad:2 * H_pad])
            n = jnp.tanh(gi[:, 2 * H_pad:] + r * (gh[:, 2 * H_pad:] + bhn_b))
            h_new = n + zt * (h - n)                                 # == (1-z)*n + z*h
            row = pl.multiple_of(t * B_pad, B_pad)
            buf_ref[pl.ds(row, B_pad), :] = h_new
            return h_new

        lax.fori_loop(0, T, body, jnp.zeros((B_pad, H_pad), jnp.float32),
                      unroll=unroll)

    # ---- stacked GRU layers (each layer overwrites buf_ref in place) ----
    for l in range(num_layers):
        wih_ref, whh_ref, bgi_ref, bhn_ref = layer_refs[4 * l:4 * l + 4]
        whh = whh_ref[...]                                           # bf16 (H_pad, 3*H_pad)
        bgi = bgi_ref[...]                                           # f32  (1, 3*H_pad) (b_ih + b_hh[r,z])
        bhn_b = jnp.broadcast_to(bhn_ref[...], (B_pad, H_pad))       # hoisted broadcast

        if l == 0:
            # constant input over time -> one input projection for the whole sequence
            gi0 = jnp.dot(z_ref[...], wih_ref[...],
                          preferred_element_type=jnp.float32) + bgi  # (B_pad, 3*H_pad)
            gi_fn = lambda t, gi0=gi0: gi0
        else:
            # one big MXU-friendly matmul over all timesteps of the previous layer
            prev = buf_ref[...].astype(jnp.bfloat16)                 # (T*B_pad, H_pad)
            gi_ref[...] = jnp.dot(prev, wih_ref[...],
                                  preferred_element_type=jnp.float32) + bgi

            def gi_fn(t):
                row = pl.multiple_of(t * B_pad, B_pad)
                return gi_ref[pl.ds(row, B_pad), :]

        run_recurrence(gi_fn, whh, bhn_b)

    # ---- epilogue: one matmul, post-matmul pad mask, single lane-dense store ----
    seq = buf_ref[...].astype(jnp.bfloat16)                          # (T*B_pad, H_pad)
    y = jnp.dot(seq, wlin_ref[...], preferred_element_type=jnp.float32)
    out_ref[...] = (y * mask_ref[...] + blin_ref[...]).astype(out_ref.dtype)


# ----------------------------- wrapper -----------------------------
def _roundup(x, m):
    return (x + m - 1) // m * m


def _pick_unroll(T):
    for u in (8, 4, 2):
        if T % u == 0:
            return u
    return 1


def _pack_gate_matrix(w, in_dim, in_pad, H, H_pad):
    """(in_dim, 3H) -> (in_pad, 3*H_pad) bf16 with each gate in its own lane-aligned block."""
    parts = [jnp.pad(w[:, g * H:(g + 1) * H],
                     ((0, in_pad - in_dim), (0, H_pad - H))) for g in range(3)]
    return jnp.concatenate(parts, axis=1).astype(jnp.bfloat16)


def _pack_gate_bias(b_ih, b_hh, H, H_pad):
    """Fold b_hh's r/z parts into the precomputed input projection bias."""
    parts = []
    for g in range(3):
        b = b_ih[:, g * H:(g + 1) * H]
        if g < 2:
            b = b + b_hh[:, g * H:(g + 1) * H]
        parts.append(jnp.pad(b, ((0, 0), (0, H_pad - H))))
    return jnp.concatenate(parts, axis=1)                            # (1, 3*H_pad) f32


def gru_decoder_forward(z, lengths, params):
    """Pallas forward. z: (B, latent_dim) f32, lengths: host int array (B,)."""
    B, latent = z.shape
    lengths_np = np.asarray(lengths, dtype=np.int32)
    T = int(lengths_np.max())                    # pad_packed_sequence pads to max(lengths)
    H = params["layers"][0]["whh_t"].shape[0]
    O = params["wlin_t"].shape[1]
    L = len(params["layers"])

    B_pad = _roundup(B, 8)                       # sublane alignment
    H_pad = _roundup(H, 128)                     # lane alignment per gate
    O_pad = _roundup(O, 128)                     # lane-dense output store
    Z_pad = _roundup(latent, 128)

    # -------- host/XLA-side packing (one-time per parameter set in a real model) --------
    z_p = jnp.pad(z, ((0, B_pad - B), (0, Z_pad - latent))).astype(jnp.bfloat16)

    rows = np.arange(T * B_pad)
    t_idx, b_idx = rows // B_pad, rows % B_pad
    valid = (b_idx < B) & (t_idx < lengths_np[np.minimum(b_idx, B - 1)])
    mask = jnp.asarray(valid.astype(np.float32).reshape(T * B_pad, 1))

    inputs = [z_p, mask]
    for l, lyr in enumerate(params["layers"]):
        in_dim = latent if l == 0 else H
        in_pad = Z_pad if l == 0 else H_pad
        inputs += [
            _pack_gate_matrix(lyr["wih_t"], in_dim, in_pad, H, H_pad),
            _pack_gate_matrix(lyr["whh_t"], H, H_pad, H, H_pad),
            _pack_gate_bias(lyr["b_ih"], lyr["b_hh"], H, H_pad),
            jnp.pad(lyr["b_hh"][:, 2 * H:3 * H], ((0, 0), (0, H_pad - H))),   # b_hn
        ]
    inputs += [
        jnp.pad(params["wlin_t"], ((0, H_pad - H), (0, O_pad - O))).astype(jnp.bfloat16),
        jnp.pad(params["b_lin"], ((0, 0), (0, O_pad - O))),
    ]

    scratch = [
        pltpu.VMEM((T * B_pad, H_pad), jnp.float32),                 # per-layer sequence buffer
        pltpu.VMEM((T * B_pad, 3 * H_pad), jnp.float32),             # batched input projections (l>=1)
    ]
    # TODO(synk): for large T, chunk the l>=1 input projection over time and interleave it
    # with the recurrence, make the scratch bf16, and add a batch-parallel grid axis (v7x megacore).

    footprint = (T * B_pad * H_pad * 4 * 4
                 + sum(int(a.size) * a.dtype.itemsize for a in inputs)
                 + T * B_pad * O_pad * 4)
    vmem_limit = int(min(64 << 20, max(16 << 20, 4 * footprint)))

    vmem_spec = pl.BlockSpec(memory_space=pltpu.MemorySpace.VMEM)
    kernel = functools.partial(gru_decoder_kernel, L, T, B_pad, H_pad, _pick_unroll(T))

    out2d = pl.pallas_call(
        kernel,
        out_shape=jax.ShapeDtypeStruct((T * B_pad, O_pad), jnp.float32),
        in_specs=[vmem_spec] * len(inputs),
        out_specs=vmem_spec,
        scratch_shapes=scratch,
        compiler_params=pltpu.CompilerParams(vmem_limit_bytes=vmem_limit),
    )(*inputs)

    # glue: (T*B_pad, O_pad) -> (B, T, O), batch_first.  Negligible at these sizes.
    return jnp.transpose(out2d.reshape(T, B_pad, O_pad)[:, :B, :O], (1, 0, 2))


# -------------------- deterministic parameter init --------------------
def init_params(key, latent_dim, hidden_size, output_size, num_layers):
    params = {"layers": []}
    k = 1.0 / np.sqrt(hidden_size)
    keys = jax.random.split(key, 4 * num_layers + 2)
    for l in range(num_layers):
        in_dim = latent_dim if l == 0 else hidden_size
        k0, k1, k2, k3 = keys[4 * l:4 * l + 4]
        params["layers"].append({
            "wih_t": jax.random.uniform(k0, (in_dim, 3 * hidden_size), jnp.float32, -k, k),
            "whh_t": jax.random.uniform(k1, (hidden_size, 3 * hidden_size), jnp.float32, -k, k),
            "b_ih": jax.random.uniform(k2, (1, 3 * hidden_size), jnp.float32, -k, k),
            "b_hh": jax.random.uniform(k3, (1, 3 * hidden_size), jnp.float32, -k, k),
        })
    params["wlin_t"] = jax.random.uniform(keys[-2], (hidden_size, output_size), jnp.float32, -k, k)
    params["b_lin"] = jax.random.uniform(keys[-1], (1, output_size), jnp.float32, -k, k)
    return params


# -------------------- pure-JAX f32 reference --------------------
def reference_forward(z, lengths, params):
    lengths_np = np.asarray(lengths, dtype=np.int32)
    B, _ = z.shape
    T_out = int(lengths_np.max())
    H = params["layers"][0]["whh_t"].shape[0]
    hi = jax.lax.Precision.HIGHEST

    layer_in = jnp.repeat(z[:, None, :], T_out, axis=1)              # constant input per step
    for lyr in params["layers"]:
        h = jnp.zeros((B, H), jnp.float32)
        outs = []
        for t in range(T_out):
            xt = layer_in[:, t, :]
            gi = jnp.dot(xt, lyr["wih_t"], precision=hi) + lyr["b_ih"]
            gh = jnp.dot(h, lyr["whh_t"], precision=hi) + lyr["b_hh"]
            r = jax.nn.sigmoid(gi[:, :H] + gh[:, :H])
            zt = jax.nn.sigmoid(gi[:, H:2 * H] + gh[:, H:2 * H])
            n = jnp.tanh(gi[:, 2 * H:] + r * gh[:, 2 * H:])
            h = (1.0 - zt) * n + zt * h
            outs.append(h)
        layer_in = jnp.stack(outs, axis=1)
    mask = (np.arange(T_out)[None, :] < lengths_np[:, None]).astype(np.float32)
    out = layer_in * mask[:, :, None]
    return jnp.dot(out, params["wlin_t"], precision=hi) + params["b_lin"]


if __name__ == "__main__":
    # small shapes consistent with the module
    B = 2
    latent_dim = 8
    hidden_size = 32
    seq_len = 8
    output_size = 16
    num_layers = 2

    key = jax.random.PRNGKey(0)
    kz, kp = jax.random.split(key)
    z = jax.random.normal(kz, (B, latent_dim), jnp.float32)
    lengths = np.array([seq_len, 5], dtype=np.int32)   # host-side, like torch lengths

    params = init_params(kp, latent_dim, hidden_size, output_size, num_layers)

    x_hat = jax.block_until_ready(gru_decoder_forward(z, lengths, params))
    ref = jax.block_until_ready(reference_forward(z, lengths, params))

    assert x_hat.shape == (B, int(lengths.max()), output_size), x_hat.shape
    # bf16 matmul weights vs f32 reference -> slightly looser tolerance
    np.testing.assert_allclose(np.asarray(x_hat), np.asarray(ref), rtol=2e-2, atol=2e-2)

    print("KERNEL_OK")
</pallas_src>

<mosaic_0001>
module attributes {stable_mosaic.version = 11 : i64} {
  func.func @gru_decoder_kernel(%arg0: memref<8x128xbf16, #tpu.memory_space<vmem>>, %arg1: memref<64x1xf32, #tpu.memory_space<vmem>>, %arg2: memref<128x384xbf16, #tpu.memory_space<vmem>>, %arg3: memref<128x384xbf16, #tpu.memory_space<vmem>>, %arg4: memref<1x384xf32, #tpu.memory_space<vmem>>, %arg5: memref<1x128xf32, #tpu.memory_space<vmem>>, %arg6: memref<128x384xbf16, #tpu.memory_space<vmem>>, %arg7: memref<128x384xbf16, #tpu.memory_space<vmem>>, %arg8: memref<1x384xf32, #tpu.memory_space<vmem>>, %arg9: memref<1x128xf32, #tpu.memory_space<vmem>>, %arg10: memref<128x128xbf16, #tpu.memory_space<vmem>>, %arg11: memref<1x128xf32, #tpu.memory_space<vmem>>, %arg12: memref<64x128xf32, #tpu.memory_space<vmem>>, %arg13: memref<64x128xf32, #tpu.memory_space<vmem>>, %arg14: memref<64x384xf32, #tpu.memory_space<vmem>>) attributes {dimension_semantics = [], scalar_prefetch = 0 : i64, scratch_operands = 2 : i64, tpu.core_type = #tpu.core_type<tc>} {
    %c0 = arith.constant 0 : index
    %c0_0 = arith.constant 0 : index
    %0 = vector.load %arg3[%c0, %c0_0] : memref<128x384xbf16, #tpu.memory_space<vmem>>, vector<128x384xbf16>
    %c0_1 = arith.constant 0 : index
    %c0_2 = arith.constant 0 : index
    %1 = vector.load %arg4[%c0_1, %c0_2] : memref<1x384xf32, #tpu.memory_space<vmem>>, vector<1x384xf32>
    %c0_3 = arith.constant 0 : index
    %c0_4 = arith.constant 0 : index
    %2 = vector.load %arg5[%c0_3, %c0_4] : memref<1x128xf32, #tpu.memory_space<vmem>>, vector<1x128xf32>
    %3 = vector.shape_cast %2 : vector<1x128xf32> to vector<1x128xf32>
    %4 = vector.broadcast %3 : vector<1x128xf32> to vector<8x128xf32>
    %c0_5 = arith.constant 0 : index
    %c0_6 = arith.constant 0 : index
    %5 = vector.load %arg0[%c0_5, %c0_6] : memref<8x128xbf16, #tpu.memory_space<vmem>>, vector<8x128xbf16>
    %c0_7 = arith.constant 0 : index
    %c0_8 = arith.constant 0 : index
    %6 = vector.load %arg2[%c0_7, %c0_8] : memref<128x384xbf16, #tpu.memory_space<vmem>>, vector<128x384xbf16>
    %cst = arith.constant dense<0.000000e+00> : vector<8x384xf32>
    %7 = tpu.matmul %5, %6, %cst {dimension_numbers = #tpu.dot_dimension_numbers<[1], [0], [0], [1], [0, 0, 1, 1], [], []>} : vector<8x128xbf16>, vector<128x384xbf16>, vector<8x384xf32> -> vector<8x384xf32>
    %8 = vector.broadcast %1 : vector<1x384xf32> to vector<8x384xf32>
    %9 = arith.addf %7, %8 : vector<8x384xf32>
    %cst_9 = arith.constant 0.000000e+00 : f32
    %10 = vector.broadcast %cst_9 : f32 to vector<8x128xf32>
    %c0_i32 = arith.constant 0 : i32
    %11 = arith.truncf %10 : vector<8x128xf32> to vector<8x128xbf16>
    %cst_10 = arith.constant dense<0.000000e+00> : vector<8x384xf32>
    %12 = tpu.matmul %11, %0, %cst_10 {dimension_numbers = #tpu.dot_dimension_numbers<[1], [0], [0], [1], [0, 0, 1, 1], [], []>} : vector<8x128xbf16>, vector<128x384xbf16>, vector<8x384xf32> -> vector<8x384xf32>
    %13 = vector.extract_strided_slice %9 {offsets = [0, 0], sizes = [8, 128], strides = [1, 1]} : vector<8x384xf32> to vector<8x128xf32>
    %14 = vector.extract_strided_slice %12 {offsets = [0, 0], sizes = [8, 128], strides = [1, 1]} : vector<8x384xf32> to vector<8x128xf32>
    %15 = arith.addf %13, %14 : vector<8x128xf32>
    %16 = arith.negf %15 : vector<8x128xf32>
    %17 = math.exp %16 : vector<8x128xf32>
    %cst_11 = arith.constant 1.000000e+00 : f32
    %18 = vector.broadcast %cst_11 : f32 to vector<8x128xf32>
    %19 = arith.addf %18, %17 : vector<8x128xf32>
    %20 = arith.divf %18, %19 : vector<8x128xf32>
    %21 = vector.extract_strided_slice %9 {offsets = [0, 128], sizes = [8, 128], strides = [1, 1]} : vector<8x384xf32> to vector<8x128xf32>
    %22 = vector.extract_strided_slice %12 {offsets = [0, 128], sizes = [8, 128], strides = [1, 1]} : vector<8x384xf32> to vector<8x128xf32>
    %23 = arith.addf %21, %22 : vector<8x128xf32>
    %24 = arith.negf %23 : vector<8x128xf32>
    %25 = math.exp %24 : vector<8x128xf32>
    %cst_12 = arith.constant 1.000000e+00 : f32
    %26 = vector.broadcast %cst_12 : f32 to vector<8x128xf32>
    %27 = arith.addf %26, %25 : vector<8x128xf32>
    %28 = arith.divf %26, %27 : vector<8x128xf32>
    %29 = vector.extract_strided_slice %9 {offsets = [0, 256], sizes = [8, 128], strides = [1, 1]} : vector<8x384xf32> to vector<8x128xf32>
    %30 = vector.extract_strided_slice %12 {offsets = [0, 256], sizes = [8, 128], strides = [1, 1]} : vector<8x384xf32> to vector<8x128xf32>
    %31 = arith.addf %30, %4 : vector<8x128xf32>
    %32 = arith.mulf %20, %31 : vector<8x128xf32>
    %33 = arith.addf %29, %32 : vector<8x128xf32>
    %34 = math.tanh %33 : vector<8x128xf32>
    %35 = arith.subf %10, %34 : vector<8x128xf32>
    %36 = arith.mulf %28, %35 : vector<8x128xf32>
    %37 = arith.addf %34, %36 : vector<8x128xf32>
    %c8_i32 = arith.constant 8 : i32
    %38 = arith.muli %c0_i32, %c8_i32 : i32
    %39 = tpu.assume_multiple %38, 8 : i32
    %40 = arith.index_cast %39 : i32 to index
    %c0_13 = arith.constant 0 : index
    %41 = vector.load %arg13[%40, %c0_13] : memref<64x128xf32, #tpu.memory_space<vmem>>, vector<8x128xf32>
    tpu.vector_store %arg13[%40, %c0_13], %37 {strides = array<i32>} : memref<64x128xf32, #tpu.memory_space<vmem>>, vector<8x128xf32>,
    %c1_i32 = arith.constant 1 : i32
    %42 = arith.truncf %37 : vector<8x128xf32> to vector<8x128xbf16>
    %cst_14 = arith.constant dense<0.000000e+00> : vector<8x384xf32>
    %43 = tpu.matmul %42, %0, %cst_14 {dimension_numbers = #tpu.dot_dimension_numbers<[1], [0], [0], [1], [0, 0, 1, 1], [], []>} : vector<8x128xbf16>, vector<128x384xbf16>, vector<8x384xf32> -> vector<8x384xf32>
    %44 = vector.extract_strided_slice %9 {offsets = [0, 0], sizes = [8, 128], strides = [1, 1]} : vector<8x384xf32> to vector<8x128xf32>
    %45 = vector.extract_strided_slice %43 {offsets = [0, 0], sizes = [8, 128], strides = [1, 1]} : vector<8x384xf32> to vector<8x128xf32>
    %46 = arith.addf %44, %45 : vector<8x128xf32>
    %47 = arith.negf %46 : vector<8x128xf32>
    %48 = math.exp %47 : vector<8x128xf32>
    %cst_15 = arith.constant 1.000000e+00 : f32
    %49 = vector.broadcast %cst_15 : f32 to vector<8x128xf32>
    %50 = arith.addf %49, %48 : vector<8x128xf32>
    %51 = arith.divf %49, %50 : vector<8x128xf32>
    %52 = vector.extract_strided_slice %9 {offsets = [0, 128], sizes = [8, 128], strides = [1, 1]} : vector<8x384xf32> to vector<8x128xf32>
    %53 = vector.extract_strided_slice %43 {offsets = [0, 128], sizes = [8, 128], strides = [1, 1]} : vector<8x384xf32> to vector<8x128xf32>
    %54 = arith.addf %52, %53 : vector<8x128xf32>
    %55 = arith.negf %54 : vector<8x128xf32>
    %56 = math.exp %55 : vector<8x128xf32>
    %cst_16 = arith.constant 1.000000e+00 : f32
    %57 = vector.broadcast %cst_16 : f32 to vector<8x128xf32>
    %58 = arith.addf %57, %56 : vector<8x128xf32>
    %59 = arith.divf %57, %58 : vector<8x128xf32>
    %60 = vector.extract_strided_slice %9 {offsets = [0, 256], sizes = [8, 128], strides = [1, 1]} : vector<8x384xf32> to vector<8x128xf32>
    %61 = vector.extract_strided_slice %43 {offsets = [0, 256], sizes = [8, 128], strides = [1, 1]} : vector<8x384xf32> to vector<8x128xf32>
    %62 = arith.addf %61, %4 : vector<8x128xf32>
    %63 = arith.mulf %51, %62 : vector<8x128xf32>
    %64 = arith.addf %60, %63 : vector<8x128xf32>
    %65 = math.tanh %64 : vector<8x128xf32>
    %66 = arith.subf %37, %65 : vector<8x128xf32>
    %67 = arith.mulf %59, %66 : vector<8x128xf32>
    %68 = arith.addf %65, %67 : vector<8x128xf32>
    %c8_i32_17 = arith.constant 8 : i32
    %69 = arith.muli %c1_i32, %c8_i32_17 : i32
    %70 = tpu.assume_multiple %69, 8 : i32
    %71 = arith.index_cast %70 : i32 to index
    %c0_18 = arith.constant 0 : index
    %72 = vector.load %arg13[%71, %c0_18] : memref<64x128xf32, #tpu.memory_space<vmem>>, vector<8x128xf32>
    tpu.vector_store %arg13[%71, %c0_18], %68 {strides = array<i32>} : memref<64x128xf32, #tpu.memory_space<vmem>>, vector<8x128xf32>,
    %c2_i32 = arith.constant 2 : i32
    %73 = arith.truncf %68 : vector<8x128xf32> to vector<8x128xbf16>
    %cst_19 = arith.constant dense<0.000000e+00> : vector<8x384xf32>
    %74 = tpu.matmul %73, %0, %cst_19 {dimension_numbers = #tpu.dot_dimension_numbers<[1], [0], [0], [1], [0, 0, 1, 1], [], []>} : vector<8x128xbf16>, vector<128x384xbf16>, vector<8x384xf32> -> vector<8x384xf32>
    %75 = vector.extract_strided_slice %9 {offsets = [0, 0], sizes = [8, 128], strides = [1, 1]} : vector<8x384xf32> to vector<8x128xf32>
    %76 = vector.extract_strided_slice %74 {offsets = [0, 0], sizes = [8, 128], strides = [1, 1]} : vector<8x384xf32> to vector<8x128xf32>
    %77 = arith.addf %75, %76 : vector<8x128xf32>
    %78 = arith.negf %77 : vector<8x128xf32>
    %79 = math.exp %78 : vector<8x128xf32>
    %cst_20 = arith.constant 1.000000e+00 : f32
    %80 = vector.broadcast %cst_20 : f32 to vector<8x128xf32>
    %81 = arith.addf %80, %79 : vector<8x128xf32>
    %82 = arith.divf %80, %81 : vector<8x128xf32>
    %83 = vector.extract_strided_slice %9 {offsets = [0, 128], sizes = [8, 128], strides = [1, 1]} : vector<8x384xf32> to vector<8x128xf32>
    %84 = vector.extract_strided_slice %74 {offsets = [0, 128], sizes = [8, 128], strides = [1, 1]} : vector<8x384xf32> to vector<8x128xf32>
    %85 = arith.addf %83, %84 : vector<8x128xf32>
    %86 = arith.negf %85 : vector<8x128xf32>
    %87 = math.exp %86 : vector<8x128xf32>
    %cst_21 = arith.constant 1.000000e+00 : f32
    %88 = vector.broadcast %cst_21 : f32 to vector<8x128xf32>
    %89 = arith.addf %88, %87 : vector<8x128xf32>
    %90 = arith.divf %88, %89 : vector<8x128xf32>
    %91 = vector.extract_strided_slice %9 {offsets = [0, 256], sizes = [8, 128], strides = [1, 1]} : vector<8x384xf32> to vector<8x128xf32>
    %92 = vector.extract_strided_slice %74 {offsets = [0, 256], sizes = [8, 128], strides = [1, 1]} : vector<8x384xf32> to vector<8x128xf32>
    %93 = arith.addf %92, %4 : vector<8x128xf32>
    %94 = arith.mulf %82, %93 : vector<8x128xf32>
    %95 = arith.addf %91, %94 : vector<8x128xf32>
    %96 = math.tanh %95 : vector<8x128xf32>
    %97 = arith.subf %68, %96 : vector<8x128xf32>
    %98 = arith.mulf %90, %97 : vector<8x128xf32>
    %99 = arith.addf %96, %98 : vector<8x128xf32>
    %c8_i32_22 = arith.constant 8 : i32
    %100 = arith.muli %c2_i32, %c8_i32_22 : i32
    %101 = tpu.assume_multiple %100, 8 : i32
    %102 = arith.index_cast %101 : i32 to index
    %c0_23 = arith.constant 0 : index
    %103 = vector.load %arg13[%102, %c0_23] : memref<64x128xf32, #tpu.memory_space<vmem>>, vector<8x128xf32>
    tpu.vector_store %arg13[%102, %c0_23], %99 {strides = array<i32>} : memref<64x128xf32, #tpu.memory_space<vmem>>, vector<8x128xf32>,
    %c3_i32 = arith.constant 3 : i32
    %104 = arith.truncf %99 : vector<8x128xf32> to vector<8x128xbf16>
    %cst_24 = arith.constant dense<0.000000e+00> : vector<8x384xf32>
    %105 = tpu.matmul %104, %0, %cst_24 {dimension_numbers = #tpu.dot_dimension_numbers<[1], [0], [0], [1], [0, 0, 1, 1], [], []>} : vector<8x128xbf16>, vector<128x384xbf16>, vector<8x384xf32> -> vector<8x384xf32>
    %106 = vector.extract_strided_slice %9 {offsets = [0, 0], sizes = [8, 128], strides = [1, 1]} : vector<8x384xf32> to vector<8x128xf32>
    %107 = vector.extract_strided_slice %105 {offsets = [0, 0], sizes = [8, 128], strides = [1, 1]} : vector<8x384xf32> to vector<8x128xf32>
    %108 = arith.addf %106, %107 : vector<8x128xf32>
    %109 = arith.negf %108 : vector<8x128xf32>
    %110 = math.exp %109 : vector<8x128xf32>
    %cst_25 = arith.constant 1.000000e+00 : f32
    %111 = vector.broadcast %cst_25 : f32 to vector<8x128xf32>
    %112 = arith.addf %111, %110 : vector<8x128xf32>
    %113 = arith.divf %111, %112 : vector<8x128xf32>
    %114 = vector.extract_strided_slice %9 {offsets = [0, 128], sizes = [8, 128], strides = [1, 1]} : vector<8x384xf32> to vector<8x128xf32>
    %115 = vector.extract_strided_slice %105 {offsets = [0, 128], sizes = [8, 128], strides = [1, 1]} : vector<8x384xf32> to vector<8x128xf32>
    %116 = arith.addf %114, %115 : vector<8x128xf32>
    %117 = arith.negf %116 : vector<8x128xf32>
    %118 = math.exp %117 : vector<8x128xf32>
    %cst_26 = arith.constant 1.000000e+00 : f32
    %119 = vector.broadcast %cst_26 : f32 to vector<8x128xf32>
    %120 = arith.addf %119, %118 : vector<8x128xf32>
    %121 = arith.divf %119, %120 : vector<8x128xf32>
    %122 = vector.extract_strided_slice %9 {offsets = [0, 256], sizes = [8, 128], strides = [1, 1]} : vector<8x384xf32> to vector<8x128xf32>
    %123 = vector.extract_strided_slice %105 {offsets = [0, 256], sizes = [8, 128], strides = [1, 1]} : vector<8x384xf32> to vector<8x128xf32>
    %124 = arith.addf %123, %4 : vector<8x128xf32>
    %125 = arith.mulf %113, %124 : vector<8x128xf32>
    %126 = arith.addf %122, %125 : vector<8x128xf32>
    %127 = math.tanh %126 : vector<8x128xf32>
    %128 = arith.subf %99, %127 : vector<8x128xf32>
    %129 = arith.mulf %121, %128 : vector<8x128xf32>
    %130 = arith.addf %127, %129 : vector<8x128xf32>
    %c8_i32_27 = arith.constant 8 : i32
    %131 = arith.muli %c3_i32, %c8_i32_27 : i32
    %132 = tpu.assume_multiple %131, 8 : i32
    %133 = arith.index_cast %132 : i32 to index
    %c0_28 = arith.constant 0 : index
    %134 = vector.load %arg13[%133, %c0_28] : memref<64x128xf32, #tpu.memory_space<vmem>>, vector<8x128xf32>
    tpu.vector_store %arg13[%133, %c0_28], %130 {strides = array<i32>} : memref<64x128xf32, #tpu.memory_space<vmem>>, vector<8x128xf32>,
    %c4_i32 = arith.constant 4 : i32
    %135 = arith.truncf %130 : vector<8x128xf32> to vector<8x128xbf16>
    %cst_29 = arith.constant dense<0.000000e+00> : vector<8x384xf32>
    %136 = tpu.matmul %135, %0, %cst_29 {dimension_numbers = #tpu.dot_dimension_numbers<[1], [0], [0], [1], [0, 0, 1, 1], [], []>} : vector<8x128xbf16>, vector<128x384xbf16>, vector<8x384xf32> -> vector<8x384xf32>
    %137 = vector.extract_strided_slice %9 {offsets = [0, 0], sizes = [8, 128], strides = [1, 1]} : vector<8x384xf32> to vector<8x128xf32>
    %138 = vector.extract_strided_slice %136 {offsets = [0, 0], sizes = [8, 128], strides = [1, 1]} : vector<8x384xf32> to vector<8x128xf32>
    %139 = arith.addf %137, %138 : vector<8x128xf32>
    %140 = arith.negf %139 : vector<8x128xf32>
    %141 = math.exp %140 : vector<8x128xf32>
    %cst_30 = arith.constant 1.000000e+00 : f32
    %142 = vector.broadcast %cst_30 : f32 to vector<8x128xf32>
    %143 = arith.addf %142, %141 : vector<8x128xf32>
    %144 = arith.divf %142, %143 : vector<8x128xf32>
    %145 = vector.extract_strided_slice %9 {offsets = [0, 128], sizes = [8, 128], strides = [1, 1]} : vector<8x384xf32> to vector<8x128xf32>
    %146 = vector.extract_strided_slice %136 {offsets = [0, 128], sizes = [8, 128], strides = [1, 1]} : vector<8x384xf32> to vector<8x128xf32>
    %147 = arith.addf %145, %146 : vector<8x128xf32>
    %148 = arith.negf %147 : vector<8x128xf32>
    %149 = math.exp %148 : vector<8x128xf32>
    %cst_31 = arith.constant 1.000000e+00 : f32
    %150 = vector.broadcast %cst_31 : f32 to vector<8x128xf32>
    %151 = arith.addf %150, %149 : vector<8x128xf32>
    %152 = arith.divf %150, %151 : vector<8x128xf32>
    %153 = vector.extract_strided_slice %9 {offsets = [0, 256], sizes = [8, 128], strides = [1, 1]} : vector<8x384xf32> to vector<8x128xf32>
    %154 = vector.extract_strided_slice %136 {offsets = [0, 256], sizes = [8, 128], strides = [1, 1]} : vector<8x384xf32> to vector<8x128xf32>
    %155 = arith.addf %154, %4 : vector<8x128xf32>
    %156 = arith.mulf %144, %155 : vector<8x128xf32>
    %157 = arith.addf %153, %156 : vector<8x128xf32>
    %158 = math.tanh %157 : vector<8x128xf32>
    %159 = arith.subf %130, %158 : vector<8x128xf32>
    %160 = arith.mulf %152, %159 : vector<8x128xf32>
    %161 = arith.addf %158, %160 : vector<8x128xf32>
    %c8_i32_32 = arith.constant 8 : i32
    %162 = arith.muli %c4_i32, %c8_i32_32 : i32
    %163 = tpu.assume_multiple %162, 8 : i32
    %164 = arith.index_cast %163 : i32 to index
    %c0_33 = arith.constant 0 : index
    %165 = vector.load %arg13[%164, %c0_33] : memref<64x128xf32, #tpu.memory_space<vmem>>, vector<8x128xf32>
    tpu.vector_store %arg13[%164, %c0_33], %161 {strides = array<i32>} : memref<64x128xf32, #tpu.memory_space<vmem>>, vector<8x128xf32>,
    %c5_i32 = arith.constant 5 : i32
    %166 = arith.truncf %161 : vector<8x128xf32> to vector<8x128xbf16>
    %cst_34 = arith.constant dense<0.000000e+00> : vector<8x384xf32>
    %167 = tpu.matmul %166, %0, %cst_34 {dimension_numbers = #tpu.dot_dimension_numbers<[1], [0], [0], [1], [0, 0, 1, 1], [], []>} : vector<8x128xbf16>, vector<128x384xbf16>, vector<8x384xf32> -> vector<8x384xf32>
    %168 = vector.extract_strided_slice %9 {offsets = [0, 0], sizes = [8, 128], strides = [1, 1]} : vector<8x384xf32> to vector<8x128xf32>
    %169 = vector.extract_strided_slice %167 {offsets = [0, 0], sizes = [8, 128], strides = [1, 1]} : vector<8x384xf32> to vector<8x128xf32>
    %170 = arith.addf %168, %169 : vector<8x128xf32>
    %171 = arith.negf %170 : vector<8x128xf32>
    %172 = math.exp %171 : vector<8x128xf32>
    %cst_35 = arith.constant 1.000000e+00 : f32
    %173 = vector.broadcast %cst_35 : f32 to vector<8x128xf32>
    %174 = arith.addf %173, %172 : vector<8x128xf32>
    %175 = arith.divf %173, %174 : vector<8x128xf32>
    %176 = vector.extract_strided_slice %9 {offsets = [0, 128], sizes = [8, 128], strides = [1, 1]} : vector<8x384xf32> to vector<8x128xf32>
    %177 = vector.extract_strided_slice %167 {offsets = [0, 128], sizes = [8, 128], strides = [1, 1]} : vector<8x384xf32> to vector<8x128xf32>
    %178 = arith.addf %176, %177 : vector<8x128xf32>
    %179 = arith.negf %178 : vector<8x128xf32>
    %180 = math.exp %179 : vector<8x128xf32>
    %cst_36 = arith.constant 1.000000e+00 : f32
    %181 = vector.broadcast %cst_36 : f32 to vector<8x128xf32>
    %182 = arith.addf %181, %180 : vector<8x128xf32>
    %183 = arith.divf %181, %182 : vector<8x128xf32>
    %184 = vector.extract_strided_slice %9 {offsets = [0, 256], sizes = [8, 128], strides = [1, 1]} : vector<8x384xf32> to vector<8x128xf32>
    %185 = vector.extract_strided_slice %167 {offsets = [0, 256], sizes = [8, 128], strides = [1, 1]} : vector<8x384xf32> to vector<8x128xf32>
    %186 = arith.addf %185, %4 : vector<8x128xf32>
    %187 = arith.mulf %175, %186 : vector<8x128xf32>
    %188 = arith.addf %184, %187 : vector<8x128xf32>
    %189 = math.tanh %188 : vector<8x128xf32>
    %190 = arith.subf %161, %189 : vector<8x128xf32>
    %191 = arith.mulf %183, %190 : vector<8x128xf32>
    %192 = arith.addf %189, %191 : vector<8x128xf32>
    %c8_i32_37 = arith.constant 8 : i32
    %193 = arith.muli %c5_i32, %c8_i32_37 : i32
    %194 = tpu.assume_multiple %193, 8 : i32
    %195 = arith.index_cast %194 : i32 to index
    %c0_38 = arith.constant 0 : index
    %196 = vector.load %arg13[%195, %c0_38] : memref<64x128xf32, #tpu.memory_space<vmem>>, vector<8x128xf32>
    tpu.vector_store %arg13[%195, %c0_38], %192 {strides = array<i32>} : memref<64x128xf32, #tpu.memory_space<vmem>>, vector<8x128xf32>,
    %c6_i32 = arith.constant 6 : i32
    %197 = arith.truncf %192 : vector<8x128xf32> to vector<8x128xbf16>
    %cst_39 = arith.constant dense<0.000000e+00> : vector<8x384xf32>
    %198 = tpu.matmul %197, %0, %cst_39 {dimension_numbers = #tpu.dot_dimension_numbers<[1], [0], [0], [1], [0, 0, 1, 1], [], []>} : vector<8x128xbf16>, vector<128x384xbf16>, vector<8x384xf32> -> vector<8x384xf32>
    %199 = vector.extract_strided_slice %9 {offsets = [0, 0], sizes = [8, 128], strides = [1, 1]} : vector<8x384xf32> to vector<8x128xf32>
    %200 = vector.extract_strided_slice %198 {offsets = [0, 0], sizes = [8, 128], strides = [1, 1]} : vector<8x384xf32> to vector<8x128xf32>
    %201 = arith.addf %199, %200 : vector<8x128xf32>
    %202 = arith.negf %201 : vector<8x128xf32>
    %203 = math.exp %202 : vector<8x128xf32>
    %cst_40 = arith.constant 1.000000e+00 : f32
    %204 = vector.broadcast %cst_40 : f32 to vector<8x128xf32>
    %205 = arith.addf %204, %203 : vector<8x128xf32>
    %206 = arith.divf %204, %205 : vector<8x128xf32>
    %207 = vector.extract_strided_slice %9 {offsets = [0, 128], sizes = [8, 128], strides = [1, 1]} : vector<8x384xf32> to vector<8x128xf32>
    %208 = vector.extract_strided_slice %198 {offsets = [0, 128], sizes = [8, 128], strides = [1, 1]} : vector<8x384xf32> to vector<8x128xf32>
    %209 = arith.addf %207, %208 : vector<8x128xf32>
    %210 = arith.negf %209 : vector<8x128xf32>
    %211 = math.exp %210 : vector<8x128xf32>
    %cst_41 = arith.constant 1.000000e+00 : f32
    %212 = vector.broadcast %cst_41 : f32 to vector<8x128xf32>
    %213 = arith.addf %212, %211 : vector<8x128xf32>
    %214 = arith.divf %212, %213 : vector<8x128xf32>
    %215 = vector.extract_strided_slice %9 {offsets = [0, 256], sizes = [8, 128], strides = [1, 1]} : vector<8x384xf32> to vector<8x128xf32>
    %216 = vector.extract_strided_slice %198 {offsets = [0, 256], sizes = [8, 128], strides = [1, 1]} : vector<8x384xf32> to vector<8x128xf32>
    %217 = arith.addf %216, %4 : vector<8x128xf32>
    %218 = arith.mulf %206, %217 : vector<8x128xf32>
    %219 = arith.addf %215, %218 : vector<8x128xf32>
    %220 = math.tanh %219 : vector<8x128xf32>
    %221 = arith.subf %192, %220 : vector<8x128xf32>
    %222 = arith.mulf %214, %221 : vector<8x128xf32>
    %223 = arith.addf %220, %222 : vector<8x128xf32>
    %c8_i32_42 = arith.constant 8 : i32
    %224 = arith.muli %c6_i32, %c8_i32_42 : i32
    %225 = tpu.assume_multiple %224, 8 : i32
    %226 = arith.index_cast %225 : i32 to index
    %c0_43 = arith.constant 0 : index
    %227 = vector.load %arg13[%226, %c0_43] : memref<64x128xf32, #tpu.memory_space<vmem>>, vector<8x128xf32>
    tpu.vector_store %arg13[%226, %c0_43], %223 {strides = array<i32>} : memref<64x128xf32, #tpu.memory_space<vmem>>, vector<8x128xf32>,
    %c7_i32 = arith.constant 7 : i32
    %228 = arith.truncf %223 : vector<8x128xf32> to vector<8x128xbf16>
    %cst_44 = arith.constant dense<0.000000e+00> : vector<8x384xf32>
    %229 = tpu.matmul %228, %0, %cst_44 {dimension_numbers = #tpu.dot_dimension_numbers<[1], [0], [0], [1], [0, 0, 1, 1], [], []>} : vector<8x128xbf16>, vector<128x384xbf16>, vector<8x384xf32> -> vector<8x384xf32>
    %230 = vector.extract_strided_slice %9 {offsets = [0, 0], sizes = [8, 128], strides = [1, 1]} : vector<8x384xf32> to vector<8x128xf32>
    %231 = vector.extract_strided_slice %229 {offsets = [0, 0], sizes = [8, 128], strides = [1, 1]} : vector<8x384xf32> to vector<8x128xf32>
    %232 = arith.addf %230, %231 : vector<8x128xf32>
    %233 = arith.negf %232 : vector<8x128xf32>
    %234 = math.exp %233 : vector<8x128xf32>
    %cst_45 = arith.constant 1.000000e+00 : f32
    %235 = vector.broadcast %cst_45 : f32 to vector<8x128xf32>
    %236 = arith.addf %235, %234 : vector<8x128xf32>
    %237 = arith.divf %235, %236 : vector<8x128xf32>
    %238 = vector.extract_strided_slice %9 {offsets = [0, 128], sizes = [8, 128], strides = [1, 1]} : vector<8x384xf32> to vector<8x128xf32>
    %239 = vector.extract_strided_slice %229 {offsets = [0, 128], sizes = [8, 128], strides = [1, 1]} : vector<8x384xf32> to vector<8x128xf32>
    %240 = arith.addf %238, %239 : vector<8x128xf32>
    %241 = arith.negf %240 : vector<8x128xf32>
    %242 = math.exp %241 : vector<8x128xf32>
    %cst_46 = arith.constant 1.000000e+00 : f32
    %243 = vector.broadcast %cst_46 : f32 to vector<8x128xf32>
    %244 = arith.addf %243, %242 : vector<8x128xf32>
    %245 = arith.divf %243, %244 : vector<8x128xf32>
    %246 = vector.extract_strided_slice %9 {offsets = [0, 256], sizes = [8, 128], strides = [1, 1]} : vector<8x384xf32> to vector<8x128xf32>
    %247 = vector.extract_strided_slice %229 {offsets = [0, 256], sizes = [8, 128], strides = [1, 1]} : vector<8x384xf32> to vector<8x128xf32>
    %248 = arith.addf %247, %4 : vector<8x128xf32>
    %249 = arith.mulf %237, %248 : vector<8x128xf32>
    %250 = arith.addf %246, %249 : vector<8x128xf32>
    %251 = math.tanh %250 : vector<8x128xf32>
    %252 = arith.subf %223, %251 : vector<8x128xf32>
    %253 = arith.mulf %245, %252 : vector<8x128xf32>
    %254 = arith.addf %251, %253 : vector<8x128xf32>
    %c8_i32_47 = arith.constant 8 : i32
    %255 = arith.muli %c7_i32, %c8_i32_47 : i32
    %256 = tpu.assume_multiple %255, 8 : i32
    %257 = arith.index_cast %256 : i32 to index
    %c0_48 = arith.constant 0 : index
    %258 = vector.load %arg13[%257, %c0_48] : memref<64x128xf32, #tpu.memory_space<vmem>>, vector<8x128xf32>
    tpu.vector_store %arg13[%257, %c0_48], %254 {strides = array<i32>} : memref<64x128xf32, #tpu.memory_space<vmem>>, vector<8x128xf32>,
    %c8_i32_49 = arith.constant 8 : i32
    %c0_50 = arith.constant 0 : index
    %c0_51 = arith.constant 0 : index
    %259 = vector.load %arg7[%c0_50, %c0_51] : memref<128x384xbf16, #tpu.memory_space<vmem>>, vector<128x384xbf16>
    %c0_52 = arith.constant 0 : index
    %c0_53 = arith.constant 0 : index
    %260 = vector.load %arg8[%c0_52, %c0_53] : memref<1x384xf32, #tpu.memory_space<vmem>>, vector<1x384xf32>
    %c0_54 = arith.constant 0 : index
    %c0_55 = arith.constant 0 : index
    %261 = vector.load %arg9[%c0_54, %c0_55] : memref<1x128xf32, #tpu.memory_space<vmem>>, vector<1x128xf32>
    %262 = vector.shape_cast %261 : vector<1x128xf32> to vector<1x128xf32>
    %263 = vector.broadcast %262 : vector<1x128xf32> to vector<8x128xf32>
    %c0_56 = arith.constant 0 : index
    %c0_57 = arith.constant 0 : index
    %264 = vector.load %arg13[%c0_56, %c0_57] : memref<64x128xf32, #tpu.memory_space<vmem>>, vector<64x128xf32>
    %265 = arith.truncf %264 : vector<64x128xf32> to vector<64x128xbf16>
    %c0_58 = arith.constant 0 : index
    %c0_59 = arith.constant 0 : index
    %266 = vector.load %arg6[%c0_58, %c0_59] : memref<128x384xbf16, #tpu.memory_space<vmem>>, vector<128x384xbf16>
    %cst_60 = arith.constant dense<0.000000e+00> : vector<64x384xf32>
    %267 = tpu.matmul %265, %266, %cst_60 {dimension_numbers = #tpu.dot_dimension_numbers<[1], [0], [0], [1], [0, 0, 1, 1], [], []>} : vector<64x128xbf16>, vector<128x384xbf16>, vector<64x384xf32> -> vector<64x384xf32>
    %268 = vector.broadcast %260 : vector<1x384xf32> to vector<64x384xf32>
    %269 = arith.addf %267, %268 : vector<64x384xf32>
    %c0_61 = arith.constant 0 : index
    %c0_62 = arith.constant 0 : index
    %270 = vector.load %arg14[%c0_61, %c0_62] : memref<64x384xf32, #tpu.memory_space<vmem>>, vector<64x384xf32>
    tpu.vector_store %arg14[%c0_61, %c0_62], %269 {strides = array<i32>} : memref<64x384xf32, #tpu.memory_space<vmem>>, vector<64x384xf32>,
    %cst_63 = arith.constant 0.000000e+00 : f32
    %271 = vector.broadcast %cst_63 : f32 to vector<8x128xf32>
    %c0_i32_64 = arith.constant 0 : i32
    %c8_i32_65 = arith.constant 8 : i32
    %272 = arith.muli %c0_i32_64, %c8_i32_65 : i32
    %273 = tpu.assume_multiple %272, 8 : i32
    %274 = arith.index_cast %273 : i32 to index
    %c0_66 = arith.constant 0 : index
    %275 = vector.load %arg14[%274, %c0_66] : memref<64x384xf32, #tpu.memory_space<vmem>>, vector<8x384xf32>
    %276 = arith.truncf %271 : vector<8x128xf32> to vector<8x128xbf16>
    %cst_67 = arith.constant dense<0.000000e+00> : vector<8x384xf32>
    %277 = tpu.matmul %276, %259, %cst_67 {dimension_numbers = #tpu.dot_dimension_numbers<[1], [0], [0], [1], [0, 0, 1, 1], [], []>} : vector<8x128xbf16>, vector<128x384xbf16>, vector<8x384xf32> -> vector<8x384xf32>
    %278 = vector.extract_strided_slice %275 {offsets = [0, 0], sizes = [8, 128], strides = [1, 1]} : vector<8x384xf32> to vector<8x128xf32>
    %279 = vector.extract_strided_slice %277 {offsets = [0, 0], sizes = [8, 128], strides = [1, 1]} : vector<8x384xf32> to vector<8x128xf32>
    %280 = arith.addf %278, %279 : vector<8x128xf32>
    %281 = arith.negf %280 : vector<8x128xf32>
    %282 = math.exp %281 : vector<8x128xf32>
    %cst_68 = arith.constant 1.000000e+00 : f32
    %283 = vector.broadcast %cst_68 : f32 to vector<8x128xf32>
    %284 = arith.addf %283, %282 : vector<8x128xf32>
    %285 = arith.divf %283, %284 : vector<8x128xf32>
    %286 = vector.extract_strided_slice %275 {offsets = [0, 128], sizes = [8, 128], strides = [1, 1]} : vector<8x384xf32> to vector<8x128xf32>
    %287 = vector.extract_strided_slice %277 {offsets = [0, 128], sizes = [8, 128], strides = [1, 1]} : vector<8x384xf32> to vector<8x128xf32>
    %288 = arith.addf %286, %287 : vector<8x128xf32>
    %289 = arith.negf %288 : vector<8x128xf32>
    %290 = math.exp %289 : vector<8x128xf32>
    %cst_69 = arith.constant 1.000000e+00 : f32
    %291 = vector.broadcast %cst_69 : f32 to vector<8x128xf32>
    %292 = arith.addf %291, %290 : vector<8x128xf32>
    %293 = arith.divf %291, %292 : vector<8x128xf32>
    %294 = vector.extract_strided_slice %275 {offsets = [0, 256], sizes = [8, 128], strides = [1, 1]} : vector<8x384xf32> to vector<8x128xf32>
    %295 = vector.extract_strided_slice %277 {offsets = [0, 256], sizes = [8, 128], strides = [1, 1]} : vector<8x384xf32> to vector<8x128xf32>
    %296 = arith.addf %295, %263 : vector<8x128xf32>
    %297 = arith.mulf %285, %296 : vector<8x128xf32>
    %298 = arith.addf %294, %297 : vector<8x128xf32>
    %299 = math.tanh %298 : vector<8x128xf32>
    %300 = arith.subf %271, %299 : vector<8x128xf32>
    %301 = arith.mulf %293, %300 : vector<8x128xf32>
    %302 = arith.addf %299, %301 : vector<8x128xf32>
    %c8_i32_70 = arith.constant 8 : i32
    %303 = arith.muli %c0_i32_64, %c8_i32_70 : i32
    %304 = tpu.assume_multiple %303, 8 : i32
    %305 = arith.index_cast %304 : i32 to index
    %c0_71 = arith.constant 0 : index
    %306 = vector.load %arg13[%305, %c0_71] : memref<64x128xf32, #tpu.memory_space<vmem>>, vector<8x128xf32>
    tpu.vector_store %arg13[%305, %c0_71], %302 {strides = array<i32>} : memref<64x128xf32, #tpu.memory_space<vmem>>, vector<8x128xf32>,
    %c1_i32_72 = arith.constant 1 : i32
    %c8_i32_73 = arith.constant 8 : i32
    %307 = arith.muli %c1_i32_72, %c8_i32_73 : i32
    %308 = tpu.assume_multiple %307, 8 : i32
    %309 = arith.index_cast %308 : i32 to index
    %c0_74 = arith.constant 0 : index
    %310 = vector.load %arg14[%309, %c0_74] : memref<64x384xf32, #tpu.memory_space<vmem>>, vector<8x384xf32>
    %311 = arith.truncf %302 : vector<8x128xf32> to vector<8x128xbf16>
    %cst_75 = arith.constant dense<0.000000e+00> : vector<8x384xf32>
    %312 = tpu.matmul %311, %259, %cst_75 {dimension_numbers = #tpu.dot_dimension_numbers<[1], [0], [0], [1], [0, 0, 1, 1], [], []>} : vector<8x128xbf16>, vector<128x384xbf16>, vector<8x384xf32> -> vector<8x384xf32>
    %313 = vector.extract_strided_slice %310 {offsets = [0, 0], sizes = [8, 128], strides = [1, 1]} : vector<8x384xf32> to vector<8x128xf32>
    %314 = vector.extract_strided_slice %312 {offsets = [0, 0], sizes = [8, 128], strides = [1, 1]} : vector<8x384xf32> to vector<8x128xf32>
    %315 = arith.addf %313, %314 : vector<8x128xf32>
    %316 = arith.negf %315 : vector<8x128xf32>
    %317 = math.exp %316 : vector<8x128xf32>
    %cst_76 = arith.constant 1.000000e+00 : f32
    %318 = vector.broadcast %cst_76 : f32 to vector<8x128xf32>
    %319 = arith.addf %318, %317 : vector<8x128xf32>
    %320 = arith.divf %318, %319 : vector<8x128xf32>
    %321 = vector.extract_strided_slice %310 {offsets = [0, 128], sizes = [8, 128], strides = [1, 1]} : vector<8x384xf32> to vector<8x128xf32>
    %322 = vector.extract_strided_slice %312 {offsets = [0, 128], sizes = [8, 128], strides = [1, 1]} : vector<8x384xf32> to vector<8x128xf32>
    %323 = arith.addf %321, %322 : vector<8x128xf32>
    %324 = arith.negf %323 : vector<8x128xf32>
    %325 = math.exp %324 : vector<8x128xf32>
    %cst_77 = arith.constant 1.000000e+00 : f32
    %326 = vector.broadcast %cst_77 : f32 to vector<8x128xf32>
    %327 = arith.addf %326, %325 : vector<8x128xf32>
    %328 = arith.divf %326, %327 : vector<8x128xf32>
    %329 = vector.extract_strided_slice %310 {offsets = [0, 256], sizes = [8, 128], strides = [1, 1]} : vector<8x384xf32> to vector<8x128xf32>
    %330 = vector.extract_strided_slice %312 {offsets = [0, 256], sizes = [8, 128], strides = [1, 1]} : vector<8x384xf32> to vector<8x128xf32>
    %331 = arith.addf %330, %263 : vector<8x128xf32>
    %332 = arith.mulf %320, %331 : vector<8x128xf32>
    %333 = arith.addf %329, %332 : vector<8x128xf32>
    %334 = math.tanh %333 : vector<8x128xf32>
    %335 = arith.subf %302, %334 : vector<8x128xf32>
    %336 = arith.mulf %328, %335 : vector<8x128xf32>
    %337 = arith.addf %334, %336 : vector<8x128xf32>
    %c8_i32_78 = arith.constant 8 : i32
    %338 = arith.muli %c1_i32_72, %c8_i32_78 : i32
    %339 = tpu.assume_multiple %338, 8 : i32
    %340 = arith.index_cast %339 : i32 to index
    %c0_79 = arith.constant 0 : index
    %341 = vector.load %arg13[%340, %c0_79] : memref<64x128xf32, #tpu.memory_space<vmem>>, vector<8x128xf32>
    tpu.vector_store %arg13[%340, %c0_79], %337 {strides = array<i32>} : memref<64x128xf32, #tpu.memory_space<vmem>>, vector<8x128xf32>,
    %c2_i32_80 = arith.constant 2 : i32
    %c8_i32_81 = arith.constant 8 : i32
    %342 = arith.muli %c2_i32_80, %c8_i32_81 : i32
    %343 = tpu.assume_multiple %342, 8 : i32
    %344 = arith.index_cast %343 : i32 to index
    %c0_82 = arith.constant 0 : index
    %345 = vector.load %arg14[%344, %c0_82] : memref<64x384xf32, #tpu.memory_space<vmem>>, vector<8x384xf32>
    %346 = arith.truncf %337 : vector<8x128xf32> to vector<8x128xbf16>
    %cst_83 = arith.constant dense<0.000000e+00> : vector<8x384xf32>
    %347 = tpu.matmul %346, %259, %cst_83 {dimension_numbers = #tpu.dot_dimension_numbers<[1], [0], [0], [1], [0, 0, 1, 1], [], []>} : vector<8x128xbf16>, vector<128x384xbf16>, vector<8x384xf32> -> vector<8x384xf32>
    %348 = vector.extract_strided_slice %345 {offsets = [0, 0], sizes = [8, 128], strides = [1, 1]} : vector<8x384xf32> to vector<8x128xf32>
    %349 = vector.extract_strided_slice %347 {offsets = [0, 0], sizes = [8, 128], strides = [1, 1]} : vector<8x384xf32> to vector<8x128xf32>
    %350 = arith.addf %348, %349 : vector<8x128xf32>
    %351 = arith.negf %350 : vector<8x128xf32>
    %352 = math.exp %351 : vector<8x128xf32>
    %cst_84 = arith.constant 1.000000e+00 : f32
    %353 = vector.broadcast %cst_84 : f32 to vector<8x128xf32>
    %354 = arith.addf %353, %352 : vector<8x128xf32>
    %355 = arith.divf %353, %354 : vector<8x128xf32>
    %356 = vector.extract_strided_slice %345 {offsets = [0, 128], sizes = [8, 128], strides = [1, 1]} : vector<8x384xf32> to vector<8x128xf32>
    %357 = vector.extract_strided_slice %347 {offsets = [0, 128], sizes = [8, 128], strides = [1, 1]} : vector<8x384xf32> to vector<8x128xf32>
    %358 = arith.addf %356, %357 : vector<8x128xf32>
    %359 = arith.negf %358 : vector<8x128xf32>
    %360 = math.exp %359 : vector<8x128xf32>
    %cst_85 = arith.constant 1.000000e+00 : f32
    %361 = vector.broadcast %cst_85 : f32 to vector<8x128xf32>
    %362 = arith.addf %361, %360 : vector<8x128xf32>
    %363 = arith.divf %361, %362 : vector<8x128xf32>
    %364 = vector.extract_strided_slice %345 {offsets = [0, 256], sizes = [8, 128], strides = [1, 1]} : vector<8x384xf32> to vector<8x128xf32>
    %365 = vector.extract_strided_slice %347 {offsets = [0, 256], sizes = [8, 128], strides = [1, 1]} : vector<8x384xf32> to vector<8x128xf32>
    %366 = arith.addf %365, %263 : vector<8x128xf32>
    %367 = arith.mulf %355, %366 : vector<8x128xf32>
    %368 = arith.addf %364, %367 : vector<8x128xf32>
    %369 = math.tanh %368 : vector<8x128xf32>
    %370 = arith.subf %337, %369 : vector<8x128xf32>
    %371 = arith.mulf %363, %370 : vector<8x128xf32>
    %372 = arith.addf %369, %371 : vector<8x128xf32>
    %c8_i32_86 = arith.constant 8 : i32
    %373 = arith.muli %c2_i32_80, %c8_i32_86 : i32
    %374 = tpu.assume_multiple %373, 8 : i32
    %375 = arith.index_cast %374 : i32 to index
    %c0_87 = arith.constant 0 : index
    %376 = vector.load %arg13[%375, %c0_87] : memref<64x128xf32, #tpu.memory_space<vmem>>, vector<8x128xf32>
    tpu.vector_store %arg13[%375, %c0_87], %372 {strides = array<i32>} : memref<64x128xf32, #tpu.memory_space<vmem>>, vector<8x128xf32>,
    %c3_i32_88 = arith.constant 3 : i32
    %c8_i32_89 = arith.constant 8 : i32
    %377 = arith.muli %c3_i32_88, %c8_i32_89 : i32
    %378 = tpu.assume_multiple %377, 8 : i32
    %379 = arith.index_cast %378 : i32 to index
    %c0_90 = arith.constant 0 : index
    %380 = vector.load %arg14[%379, %c0_90] : memref<64x384xf32, #tpu.memory_space<vmem>>, vector<8x384xf32>
    %381 = arith.truncf %372 : vector<8x128xf32> to vector<8x128xbf16>
    %cst_91 = arith.constant dense<0.000000e+00> : vector<8x384xf32>
    %382 = tpu.matmul %381, %259, %cst_91 {dimension_numbers = #tpu.dot_dimension_numbers<[1], [0], [0], [1], [0, 0, 1, 1], [], []>} : vector<8x128xbf16>, vector<128x384xbf16>, vector<8x384xf32> -> vector<8x384xf32>
    %383 = vector.extract_strided_slice %380 {offsets = [0, 0], sizes = [8, 128], strides = [1, 1]} : vector<8x384xf32> to vector<8x128xf32>
    %384 = vector.extract_strided_slice %382 {offsets = [0, 0], sizes = [8, 128], strides = [1, 1]} : vector<8x384xf32> to vector<8x128xf32>
    %385 = arith.addf %383, %384 : vector<8x128xf32>
    %386 = arith.negf %385 : vector<8x128xf32>
    %387 = math.exp %386 : vector<8x128xf32>
    %cst_92 = arith.constant 1.000000e+00 : f32
    %388 = vector.broadcast %cst_92 : f32 to vector<8x128xf32>
    %389 = arith.addf %388, %387 : vector<8x128xf32>
    %390 = arith.divf %388, %389 : vector<8x128xf32>
    %391 = vector.extract_strided_slice %380 {offsets = [0, 128], sizes = [8, 128], strides = [1, 1]} : vector<8x384xf32> to vector<8x128xf32>
    %392 = vector.extract_strided_slice %382 {offsets = [0, 128], sizes = [8, 128], strides = [1, 1]} : vector<8x384xf32> to vector<8x128xf32>
    %393 = arith.addf %391, %392 : vector<8x128xf32>
    %394 = arith.negf %393 : vector<8x128xf32>
    %395 = math.exp %394 : vector<8x128xf32>
    %cst_93 = arith.constant 1.000000e+00 : f32
    %396 = vector.broadcast %cst_93 : f32 to vector<8x128xf32>
    %397 = arith.addf %396, %395 : vector<8x128xf32>
    %398 = arith.divf %396, %397 : vector<8x128xf32>
    %399 = vector.extract_strided_slice %380 {offsets = [0, 256], sizes = [8, 128], strides = [1, 1]} : vector<8x384xf32> to vector<8x128xf32>
    %400 = vector.extract_strided_slice %382 {offsets = [0, 256], sizes = [8, 128], strides = [1, 1]} : vector<8x384xf32> to vector<8x128xf32>
    %401 = arith.addf %400, %263 : vector<8x128xf32>
    %402 = arith.mulf %390, %401 : vector<8x128xf32>
    %403 = arith.addf %399, %402 : vector<8x128xf32>
    %404 = math.tanh %403 : vector<8x128xf32>
    %405 = arith.subf %372, %404 : vector<8x128xf32>
    %406 = arith.mulf %398, %405 : vector<8x128xf32>
    %407 = arith.addf %404, %406 : vector<8x128xf32>
    %c8_i32_94 = arith.constant 8 : i32
    %408 = arith.muli %c3_i32_88, %c8_i32_94 : i32
    %409 = tpu.assume_multiple %408, 8 : i32
    %410 = arith.index_cast %409 : i32 to index
    %c0_95 = arith.constant 0 : index
    %411 = vector.load %arg13[%410, %c0_95] : memref<64x128xf32, #tpu.memory_space<vmem>>, vector<8x128xf32>
    tpu.vector_store %arg13[%410, %c0_95], %407 {strides = array<i32>} : memref<64x128xf32, #tpu.memory_space<vmem>>, vector<8x128xf32>,
    %c4_i32_96 = arith.constant 4 : i32
    %c8_i32_97 = arith.constant 8 : i32
    %412 = arith.muli %c4_i32_96, %c8_i32_97 : i32
    %413 = tpu.assume_multiple %412, 8 : i32
    %414 = arith.index_cast %413 : i32 to index
    %c0_98 = arith.constant 0 : index
    %415 = vector.load %arg14[%414, %c0_98] : memref<64x384xf32, #tpu.memory_space<vmem>>, vector<8x384xf32>
    %416 = arith.truncf %407 : vector<8x128xf32> to vector<8x128xbf16>
    %cst_99 = arith.constant dense<0.000000e+00> : vector<8x384xf32>
    %417 = tpu.matmul %416, %259, %cst_99 {dimension_numbers = #tpu.dot_dimension_numbers<[1], [0], [0], [1], [0, 0, 1, 1], [], []>} : vector<8x128xbf16>, vector<128x384xbf16>, vector<8x384xf32> -> vector<8x384xf32>
    %418 = vector.extract_strided_slice %415 {offsets = [0, 0], sizes = [8, 128], strides = [1, 1]} : vector<8x384xf32> to vector<8x128xf32>
    %419 = vector.extract_strided_slice %417 {offsets = [0, 0], sizes = [8, 128], strides = [1, 1]} : vector<8x384xf32> to vector<8x128xf32>
    %420 = arith.addf %418, %419 : vector<8x128xf32>
    %421 = arith.negf %420 : vector<8x128xf32>
    %422 = math.exp %421 : vector<8x128xf32>
    %cst_100 = arith.constant 1.000000e+00 : f32
    %423 = vector.broadcast %cst_100 : f32 to vector<8x128xf32>
    %424 = arith.addf %423, %422 : vector<8x128xf32>
    %425 = arith.divf %423, %424 : vector<8x128xf32>
    %426 = vector.extract_strided_slice %415 {offsets = [0, 128], sizes = [8, 128], strides = [1, 1]} : vector<8x384xf32> to vector<8x128xf32>
    %427 = vector.extract_strided_slice %417 {offsets = [0, 128], sizes = [8, 128], strides = [1, 1]} : vector<8x384xf32> to vector<8x128xf32>
    %428 = arith.addf %426, %427 : vector<8x128xf32>
    %429 = arith.negf %428 : vector<8x128xf32>
    %430 = math.exp %429 : vector<8x128xf32>
    %cst_101 = arith.constant 1.000000e+00 : f32
    %431 = vector.broadcast %cst_101 : f32 to vector<8x128xf32>
    %432 = arith.addf %431, %430 : vector<8x128xf32>
    %433 = arith.divf %431, %432 : vector<8x128xf32>
    %434 = vector.extract_strided_slice %415 {offsets = [0, 256], sizes = [8, 128], strides = [1, 1]} : vector<8x384xf32> to vector<8x128xf32>
    %435 = vector.extract_strided_slice %417 {offsets = [0, 256], sizes = [8, 128], strides = [1, 1]} : vector<8x384xf32> to vector<8x128xf32>
    %436 = arith.addf %435, %263 : vector<8x128xf32>
    %437 = arith.mulf %425, %436 : vector<8x128xf32>
    %438 = arith.addf %434, %437 : vector<8x128xf32>
    %439 = math.tanh %438 : vector<8x128xf32>
    %440 = arith.subf %407, %439 : vector<8x128xf32>
    %441 = arith.mulf %433, %440 : vector<8x128xf32>
    %442 = arith.addf %439, %441 : vector<8x128xf32>
    %c8_i32_102 = arith.constant 8 : i32
    %443 = arith.muli %c4_i32_96, %c8_i32_102 : i32
    %444 = tpu.assume_multiple %443, 8 : i32
    %445 = arith.index_cast %444 : i32 to index
    %c0_103 = arith.constant 0 : index
    %446 = vector.load %arg13[%445, %c0_103] : memref<64x128xf32, #tpu.memory_space<vmem>>, vector<8x128xf32>
    tpu.vector_store %arg13[%445, %c0_103], %442 {strides = array<i32>} : memref<64x128xf32, #tpu.memory_space<vmem>>, vector<8x128xf32>,
    %c5_i32_104 = arith.constant 5 : i32
    %c8_i32_105 = arith.constant 8 : i32
    %447 = arith.muli %c5_i32_104, %c8_i32_105 : i32
    %448 = tpu.assume_multiple %447, 8 : i32
    %449 = arith.index_cast %448 : i32 to index
    %c0_106 = arith.constant 0 : index
    %450 = vector.load %arg14[%449, %c0_106] : memref<64x384xf32, #tpu.memory_space<vmem>>, vector<8x384xf32>
    %451 = arith.truncf %442 : vector<8x128xf32> to vector<8x128xbf16>
    %cst_107 = arith.constant dense<0.000000e+00> : vector<8x384xf32>
    %452 = tpu.matmul %451, %259, %cst_107 {dimension_numbers = #tpu.dot_dimension_numbers<[1], [0], [0], [1], [0, 0, 1, 1], [], []>} : vector<8x128xbf16>, vector<128x384xbf16>, vector<8x384xf32> -> vector<8x384xf32>
    %453 = vector.extract_strided_slice %450 {offsets = [0, 0], sizes = [8, 128], strides = [1, 1]} : vector<8x384xf32> to vector<8x128xf32>
    %454 = vector.extract_strided_slice %452 {offsets = [0, 0], sizes = [8, 128], strides = [1, 1]} : vector<8x384xf32> to vector<8x128xf32>
    %455 = arith.addf %453, %454 : vector<8x128xf32>
    %456 = arith.negf %455 : vector<8x128xf32>
    %457 = math.exp %456 : vector<8x128xf32>
    %cst_108 = arith.constant 1.000000e+00 : f32
    %458 = vector.broadcast %cst_108 : f32 to vector<8x128xf32>
    %459 = arith.addf %458, %457 : vector<8x128xf32>
    %460 = arith.divf %458, %459 : vector<8x128xf32>
    %461 = vector.extract_strided_slice %450 {offsets = [0, 128], sizes = [8, 128], strides = [1, 1]} : vector<8x384xf32> to vector<8x128xf32>
    %462 = vector.extract_strided_slice %452 {offsets = [0, 128], sizes = [8, 128], strides = [1, 1]} : vector<8x384xf32> to vector<8x128xf32>
    %463 = arith.addf %461, %462 : vector<8x128xf32>
    %464 = arith.negf %463 : vector<8x128xf32>
    %465 = math.exp %464 : vector<8x128xf32>
    %cst_109 = arith.constant 1.000000e+00 : f32
    %466 = vector.broadcast %cst_109 : f32 to vector<8x128xf32>
    %467 = arith.addf %466, %465 : vector<8x128xf32>
    %468 = arith.divf %466, %467 : vector<8x128xf32>
    %469 = vector.extract_strided_slice %450 {offsets = [0, 256], sizes = [8, 128], strides = [1, 1]} : vector<8x384xf32> to vector<8x128xf32>
    %470 = vector.extract_strided_slice %452 {offsets = [0, 256], sizes = [8, 128], strides = [1, 1]} : vector<8x384xf32> to vector<8x128xf32>
    %471 = arith.addf %470, %263 : vector<8x128xf32>
    %472 = arith.mulf %460, %471 : vector<8x128xf32>
    %473 = arith.addf %469, %472 : vector<8x128xf32>
    %474 = math.tanh %473 : vector<8x128xf32>
    %475 = arith.subf %442, %474 : vector<8x128xf32>
    %476 = arith.mulf %468, %475 : vector<8x128xf32>
    %477 = arith.addf %474, %476 : vector<8x128xf32>
    %c8_i32_110 = arith.constant 8 : i32
    %478 = arith.muli %c5_i32_104, %c8_i32_110 : i32
    %479 = tpu.assume_multiple %478, 8 : i32
    %480 = arith.index_cast %479 : i32 to index
    %c0_111 = arith.constant 0 : index
    %481 = vector.load %arg13[%480, %c0_111] : memref<64x128xf32, #tpu.memory_space<vmem>>, vector<8x128xf32>
    tpu.vector_store %arg13[%480, %c0_111], %477 {strides = array<i32>} : memref<64x128xf32, #tpu.memory_space<vmem>>, vector<8x128xf32>,
    %c6_i32_112 = arith.constant 6 : i32
    %c8_i32_113 = arith.constant 8 : i32
    %482 = arith.muli %c6_i32_112, %c8_i32_113 : i32
    %483 = tpu.assume_multiple %482, 8 : i32
    %484 = arith.index_cast %483 : i32 to index
    %c0_114 = arith.constant 0 : index
    %485 = vector.load %arg14[%484, %c0_114] : memref<64x384xf32, #tpu.memory_space<vmem>>, vector<8x384xf32>
    %486 = arith.truncf %477 : vector<8x128xf32> to vector<8x128xbf16>
    %cst_115 = arith.constant dense<0.000000e+00> : vector<8x384xf32>
    %487 = tpu.matmul %486, %259, %cst_115 {dimension_numbers = #tpu.dot_dimension_numbers<[1], [0], [0], [1], [0, 0, 1, 1], [], []>} : vector<8x128xbf16>, vector<128x384xbf16>, vector<8x384xf32> -> vector<8x384xf32>
    %488 = vector.extract_strided_slice %485 {offsets = [0, 0], sizes = [8, 128], strides = [1, 1]} : vector<8x384xf32> to vector<8x128xf32>
    %489 = vector.extract_strided_slice %487 {offsets = [0, 0], sizes = [8, 128], strides = [1, 1]} : vector<8x384xf32> to vector<8x128xf32>
    %490 = arith.addf %488, %489 : vector<8x128xf32>
    %491 = arith.negf %490 : vector<8x128xf32>
    %492 = math.exp %491 : vector<8x128xf32>
    %cst_116 = arith.constant 1.000000e+00 : f32
    %493 = vector.broadcast %cst_116 : f32 to vector<8x128xf32>
    %494 = arith.addf %493, %492 : vector<8x128xf32>
    %495 = arith.divf %493, %494 : vector<8x128xf32>
    %496 = vector.extract_strided_slice %485 {offsets = [0, 128], sizes = [8, 128], strides = [1, 1]} : vector<8x384xf32> to vector<8x128xf32>
    %497 = vector.extract_strided_slice %487 {offsets = [0, 128], sizes = [8, 128], strides = [1, 1]} : vector<8x384xf32> to vector<8x128xf32>
    %498 = arith.addf %496, %497 : vector<8x128xf32>
    %499 = arith.negf %498 : vector<8x128xf32>
    %500 = math.exp %499 : vector<8x128xf32>
    %cst_117 = arith.constant 1.000000e+00 : f32
    %501 = vector.broadcast %cst_117 : f32 to vector<8x128xf32>
    %502 = arith.addf %501, %500 : vector<8x128xf32>
    %503 = arith.divf %501, %502 : vector<8x128xf32>
    %504 = vector.extract_strided_slice %485 {offsets = [0, 256], sizes = [8, 128], strides = [1, 1]} : vector<8x384xf32> to vector<8x128xf32>
    %505 = vector.extract_strided_slice %487 {offsets = [0, 256], sizes = [8, 128], strides = [1, 1]} : vector<8x384xf32> to vector<8x128xf32>
    %506 = arith.addf %505, %263 : vector<8x128xf32>
    %507 = arith.mulf %495, %506 : vector<8x128xf32>
    %508 = arith.addf %504, %507 : vector<8x128xf32>
    %509 = math.tanh %508 : vector<8x128xf32>
    %510 = arith.subf %477, %509 : vector<8x128xf32>
    %511 = arith.mulf %503, %510 : vector<8x128xf32>
    %512 = arith.addf %509, %511 : vector<8x128xf32>
    %c8_i32_118 = arith.constant 8 : i32
    %513 = arith.muli %c6_i32_112, %c8_i32_118 : i32
    %514 = tpu.assume_multiple %513, 8 : i32
    %515 = arith.index_cast %514 : i32 to index
    %c0_119 = arith.constant 0 : index
    %516 = vector.load %arg13[%515, %c0_119] : memref<64x128xf32, #tpu.memory_space<vmem>>, vector<8x128xf32>
    tpu.vector_store %arg13[%515, %c0_119], %512 {strides = array<i32>} : memref<64x128xf32, #tpu.memory_space<vmem>>, vector<8x128xf32>,
    %c7_i32_120 = arith.constant 7 : i32
    %c8_i32_121 = arith.constant 8 : i32
    %517 = arith.muli %c7_i32_120, %c8_i32_121 : i32
    %518 = tpu.assume_multiple %517, 8 : i32
    %519 = arith.index_cast %518 : i32 to index
    %c0_122 = arith.constant 0 : index
    %520 = vector.load %arg14[%519, %c0_122] : memref<64x384xf32, #tpu.memory_space<vmem>>, vector<8x384xf32>
    %521 = arith.truncf %512 : vector<8x128xf32> to vector<8x128xbf16>
    %cst_123 = arith.constant dense<0.000000e+00> : vector<8x384xf32>
    %522 = tpu.matmul %521, %259, %cst_123 {dimension_numbers = #tpu.dot_dimension_numbers<[1], [0], [0], [1], [0, 0, 1, 1], [], []>} : vector<8x128xbf16>, vector<128x384xbf16>, vector<8x384xf32> -> vector<8x384xf32>
    %523 = vector.extract_strided_slice %520 {offsets = [0, 0], sizes = [8, 128], strides = [1, 1]} : vector<8x384xf32> to vector<8x128xf32>
    %524 = vector.extract_strided_slice %522 {offsets = [0, 0], sizes = [8, 128], strides = [1, 1]} : vector<8x384xf32> to vector<8x128xf32>
    %525 = arith.addf %523, %524 : vector<8x128xf32>
    %526 = arith.negf %525 : vector<8x128xf32>
    %527 = math.exp %526 : vector<8x128xf32>
    %cst_124 = arith.constant 1.000000e+00 : f32
    %528 = vector.broadcast %cst_124 : f32 to vector<8x128xf32>
    %529 = arith.addf %528, %527 : vector<8x128xf32>
    %530 = arith.divf %528, %529 : vector<8x128xf32>
    %531 = vector.extract_strided_slice %520 {offsets = [0, 128], sizes = [8, 128], strides = [1, 1]} : vector<8x384xf32> to vector<8x128xf32>
    %532 = vector.extract_strided_slice %522 {offsets = [0, 128], sizes = [8, 128], strides = [1, 1]} : vector<8x384xf32> to vector<8x128xf32>
    %533 = arith.addf %531, %532 : vector<8x128xf32>
    %534 = arith.negf %533 : vector<8x128xf32>
    %535 = math.exp %534 : vector<8x128xf32>
    %cst_125 = arith.constant 1.000000e+00 : f32
    %536 = vector.broadcast %cst_125 : f32 to vector<8x128xf32>
    %537 = arith.addf %536, %535 : vector<8x128xf32>
    %538 = arith.divf %536, %537 : vector<8x128xf32>
    %539 = vector.extract_strided_slice %520 {offsets = [0, 256], sizes = [8, 128], strides = [1, 1]} : vector<8x384xf32> to vector<8x128xf32>
    %540 = vector.extract_strided_slice %522 {offsets = [0, 256], sizes = [8, 128], strides = [1, 1]} : vector<8x384xf32> to vector<8x128xf32>
    %541 = arith.addf %540, %263 : vector<8x128xf32>
    %542 = arith.mulf %530, %541 : vector<8x128xf32>
    %543 = arith.addf %539, %542 : vector<8x128xf32>
    %544 = math.tanh %543 : vector<8x128xf32>
    %545 = arith.subf %512, %544 : vector<8x128xf32>
    %546 = arith.mulf %538, %545 : vector<8x128xf32>
    %547 = arith.addf %544, %546 : vector<8x128xf32>
    %c8_i32_126 = arith.constant 8 : i32
    %548 = arith.muli %c7_i32_120, %c8_i32_126 : i32
    %549 = tpu.assume_multiple %548, 8 : i32
    %550 = arith.index_cast %549 : i32 to index
    %c0_127 = arith.constant 0 : index
    %551 = vector.load %arg13[%550, %c0_127] : memref<64x128xf32, #tpu.memory_space<vmem>>, vector<8x128xf32>
    tpu.vector_store %arg13[%550, %c0_127], %547 {strides = array<i32>} : memref<64x128xf32, #tpu.memory_space<vmem>>, vector<8x128xf32>,
    %c8_i32_128 = arith.constant 8 : i32
    %c0_129 = arith.constant 0 : index
    %c0_130 = arith.constant 0 : index
    %552 = vector.load %arg13[%c0_129, %c0_130] : memref<64x128xf32, #tpu.memory_space<vmem>>, vector<64x128xf32>
    %553 = arith.truncf %552 : vector<64x128xf32> to vector<64x128xbf16>
    %c0_131 = arith.constant 0 : index
    %c0_132 = arith.constant 0 : index
    %554 = vector.load %arg10[%c0_131, %c0_132] : memref<128x128xbf16, #tpu.memory_space<vmem>>, vector<128x128xbf16>
    %cst_133 = arith.constant dense<0.000000e+00> : vector<64x128xf32>
    %555 = tpu.matmul %553, %554, %cst_133 {dimension_numbers = #tpu.dot_dimension_numbers<[1], [0], [0], [1], [0, 0, 1, 1], [], []>} : vector<64x128xbf16>, vector<128x128xbf16>, vector<64x128xf32> -> vector<64x128xf32>
    %c0_134 = arith.constant 0 : index
    %c0_135 = arith.constant 0 : index
    %556 = vector.load %arg1[%c0_134, %c0_135] : memref<64x1xf32, #tpu.memory_space<vmem>>, vector<64x1xf32>
    %557 = vector.broadcast %556 : vector<64x1xf32> to vector<64x128xf32>
    %558 = arith.mulf %555, %557 : vector<64x128xf32>
    %c0_136 = arith.constant 0 : index
    %c0_137 = arith.constant 0 : index
    %559 = vector.load %arg11[%c0_136, %c0_137] : memref<1x128xf32, #tpu.memory_space<vmem>>, vector<1x128xf32>
    %560 = vector.broadcast %559 : vector<1x128xf32> to vector<64x128xf32>
    %561 = arith.addf %558, %560 : vector<64x128xf32>
    %c0_138 = arith.constant 0 : index
    %c0_139 = arith.constant 0 : index
    %562 = vector.load %arg12[%c0_138, %c0_139] : memref<64x128xf32, #tpu.memory_space<vmem>>, vector<64x128xf32>
    tpu.vector_store %arg12[%c0_138, %c0_139], %561 {strides = array<i32>} : memref<64x128xf32, #tpu.memory_space<vmem>>, vector<64x128xf32>,
    return
  }
}

</mosaic_0001>

<bundles_post_ra>
// kernel: tpu_custom_call.1
= control target key start
LH: loop header
LB: loop body
LE: loop exit
PB: predicated region body
PF: predicated region fallthrough
CT: control target
= control target key end

     0   :  { %17 = vsyncpa [#allocation5], 0  ;;  %s5347_s0 = inlined_call_operand.vmem [shape: bf16[8,128], index: 0, kind: input, shape index: {}]   ;;  %s5348_s1 = inlined_call_operand.vmem [shape: f32[64,1], index: 1, kind: input, shape index: {}]   ;;  %s5349_s2 = inlined_call_operand.hbm [shape: bf16[128,384], index: 2, kind: input, shape index: {}]   ;;  %s5350_s3 = inlined_call_operand.hbm [shape: bf16[128,384], index: 3, kind: input, shape index: {}]   ;;  %s5351_s4 = inlined_call_operand.vmem [shape: f32[1,384], index: 4, kind: input, shape index: {}]   ;;  %s5352_s5 = inlined_call_operand.vmem [shape: f32[1,128], index: 5, kind: input, shape index: {}]   ;;  %s5353_s6 = inlined_call_operand.hbm [shape: bf16[128,384], index: 6, kind: input, shape index: {}]   ;;  %s5354_s7 = inlined_call_operand.hbm [shape: bf16[128,384], index: 7, kind: input, shape index: {}]   ;;  %s5355_s8 = inlined_call_operand.vmem [shape: f32[1,384], index: 8, kind: input, shape index: {}]   ;;  %s5356_s9 = inlined_call_operand.vmem [shape: f32[1,128], index: 9, kind: input, shape index: {}]   ;;  %s5357_s10 = inlined_call_operand.vmem [shape: bf16[128,128], index: 10, kind: input, shape index: {}]   ;;  %s5358_s11 = inlined_call_operand.vmem [shape: f32[1,128], index: 11, kind: input, shape index: {}]   ;;  %s5359_s12 = inlined_call_operand.hbm [shape: f32[64,128], index: 12, kind: output, shape index: {}]  }
   0x1   :  { %18 = vsyncpa [#allocation8], 0 }
   0x2   :  { %19 = vsyncpa [#allocation11], 0 }
   0x3   :  { %20 = vsyncpa [#allocation6], 0  ;;  %s4177_s21 = smov [#allocation7]   ;;  %s4178_s23 = smov [#allocation4]  }
   0x4   :  { %s42_s22 = sshll.u32 %s4177_s21, 4  ;;  %s30_s24 = sshll.u32 %s4178_s23, 4  ;;  %s43_s22 = int_to_ptr.vmem [resolvable:$true] %s42_s22  ;;  %s4254_s24 = int_to_ptr.vmem [resolvable:$true] %s30_s24 }
   0x5   :  { %s4059_s27 = scalar_lea.hbm %s5350_s3, 3072 }
   0x6   :  { %p4060_p0 = scmp.ne.s32.totalorder %s5350_s3, %s4059_s27  ;;  %p4063_p1 = scmp.lt.u32.totalorder %s4059_s27, %s5350_s3 }
   0x8   :  { %p4065_p2 = pnand %p4063_p1, %p4060_p0 }
   0xa   :  { %4068 = shalt.err (!%p4065_p2)
}
   0xb   :  { %s4069_s14 = scalar_lea.vmem %s43_s22, 3072  ;;  %p4074_p4 = scmp.lt.s32.totalorder %s43_s22, %s43_s22 }
   0xc   :  { %p4070_p3 = scmp.ne.s32.totalorder %s43_s22, %s4069_s14  ;;  %p4075_p5 = scmp.lt.s32.totalorder %s4069_s14, %s4069_s14 }
   0xe   :  { %p4076_p6 = por %p4075_p5, %p4074_p4 }
  0x10   :  { %p4077_p7 = pnand %p4076_p6, %p4070_p3 }
  0x12   :  { %4080 = shalt.err (!%p4077_p7)
}
  0x13   :  { %s4179_s15 = smov 192   ;;  %s4180_s16 = smov 12  }
  0x14   :  { %48 = dma.hbm_to_vmem [thread:$0]  %s5350_s3, 3072, %s43_s22, [#allocation8], %s4179_s15, %s4179_s15, %s4180_s16  }
  0x15   :  { %s4081_s21 = scalar_lea.hbm %s5349_s2, 3072 }
  0x16   :  { %p4082_p8 = scmp.ne.s32.totalorder %s5349_s2, %s4081_s21  ;;  %p4085_p9 = scmp.lt.u32.totalorder %s4081_s21, %s5349_s2 }
  0x18   :  { %p4087_p10 = pnand %p4085_p9, %p4082_p8 }
  0x1a   :  { %4090 = shalt.err (!%p4087_p10)
}
  0x1b   :  { %s4091_s28 = scalar_lea.vmem %s4254_s24, 3072  ;;  %p4096_p12 = scmp.lt.s32.totalorder %s4254_s24, %s4254_s24 }
  0x1c   :  { %p4092_p11 = scmp.ne.s32.totalorder %s4254_s24, %s4091_s28  ;;  %p4097_p13 = scmp.lt.s32.totalorder %s4091_s28, %s4091_s28 }
  0x1e   :  { %p4098_p0 = por %p4097_p13, %p4096_p12 }
  0x20   :  { %p4099_p1 = pnand %p4098_p0, %p4092_p11 }
  0x22   :  { %4102 = shalt.err (!%p4099_p1)
}
  0x23   :  { %36 = dma.hbm_to_vmem [thread:$0]  %s5349_s2, 3072, %s4254_s24, [#allocation5], %s4179_s15, %s4179_s15, %s4180_s16  }
  0x24   :  { %s4181_s29 = smov [#allocation9]   ;;  %s4182_s13 = smov [#allocation10]  }
  0x25   :  { %s58_s30 = sshll.u32 %s4181_s29, 4  ;;  %s70_s14 = sshll.u32 %s4182_s13, 4  ;;  %s59_s30 = int_to_ptr.vmem [resolvable:$true] %s58_s30  ;;  %s4291_s14 = int_to_ptr.vmem [resolvable:$true] %s70_s14 }
  0x26   :  { %s4103_s19 = scalar_lea.hbm %s5353_s6, 3072 }
  0x27   :  { %p4104_p2 = scmp.ne.s32.totalorder %s5353_s6, %s4103_s19  ;;  %p4107_p3 = scmp.lt.u32.totalorder %s4103_s19, %s5353_s6 }
  0x29   :  { %p4109_p4 = pnand %p4107_p3, %p4104_p2 }
  0x2b   :  { %4112 = shalt.err (!%p4109_p4)
}
  0x2c   :  { %s4113_s2 = scalar_lea.vmem %s59_s30, 3072  ;;  %p4118_p6 = scmp.lt.s32.totalorder %s59_s30, %s59_s30 }
  0x2d   :  { %p4114_p5 = scmp.ne.s32.totalorder %s59_s30, %s4113_s2  ;;  %p4119_p7 = scmp.lt.s32.totalorder %s4113_s2, %s4113_s2 }
  0x2f   :  { %p4120_p8 = por %p4119_p7, %p4118_p6 }
  0x31   :  { %p4121_p9 = pnand %p4120_p8, %p4114_p5 }
  0x33   :  { %4124 = shalt.err (!%p4121_p9)
}
  0x34   :  { %64 = dma.hbm_to_vmem [thread:$0]  %s5353_s6, 3072, %s59_s30, [#allocation8], %s4179_s15, %s4179_s15, %s4180_s16  }
  0x35   :  { %s4125_s3 = scalar_lea.hbm %s5354_s7, 3072 }
  0x36   :  { %p4126_p10 = scmp.ne.s32.totalorder %s5354_s7, %s4125_s3  ;;  %p4129_p11 = scmp.lt.u32.totalorder %s4125_s3, %s5354_s7 }
  0x38   :  { %p4131_p12 = pnand %p4129_p11, %p4126_p10 }
  0x3a   :  { %4134 = shalt.err (!%p4131_p12)
}
  0x3b   :  { %s4135_s18 = scalar_lea.vmem %s4291_s14, 3072  ;;  %p4140_p0 = scmp.lt.s32.totalorder %s4291_s14, %s4291_s14 }
  0x3c   :  { %p4136_p13 = scmp.ne.s32.totalorder %s4291_s14, %s4135_s18  ;;  %p4141_p1 = scmp.lt.s32.totalorder %s4135_s18, %s4135_s18 }
  0x3e   :  { %p4142_p2 = por %p4141_p1, %p4140_p0 }
  0x40   :  { %p4143_p3 = pnand %p4142_p2, %p4136_p13 }
  0x42   :  { %4146 = shalt.err (!%p4143_p3)
}
  0x43   :  { %76 = dma.hbm_to_vmem [thread:$0]  %s5354_s7, 3072, %s4291_s14, [#allocation11], %s4179_s15, %s4179_s15, %s4180_s16  }
  0x44   :  { %4169 = dma.done.wait [#allocation5], 3072  }
  0x45   :  { %4170 = vsyncadd [#allocation5], 4294964224 }
  0x46   :  { %4171 = dma.done.wait [#allocation8], 6144  }
  0x47   :  { %4172 = vsyncadd [#allocation8], 4294961152 }
  0x48   :  { %4173 = dma.done.wait [#allocation11], 3072  }
  0x49   :  { %4174 = vsyncadd [#allocation11], 4294964224  ;;  %v5360_v0 = vmov 0   ;;  %v3723_v1 = vld [vmem:[#allocation4 + $0x4] ss:$12 sps:$4 sm:$0xff]   ;;  %v5362_v35 = vmov 0.0   ;;  %v172_v59 = vlaneseq }
  0x4a   :  { %347 = vmatprep.mubr.bf16.mxu1 %v5360_v0  ;;  %556 = vmatprep.mubr.bf16.mxu0 %v5360_v0  ;;  %v3725_v2 = vld [vmem:[#allocation4] ss:$12 sps:$4 sm:$0xff]   ;;  %v4332_v3 = vld [vmem:[#allocation7 + $0x4] ss:$12 sps:$4 sm:$0xff]   ;;  %v3729_v5 = vld [vmem:[#allocation4 + $0x1c] ss:$12 sps:$4 sm:$0xff]  }
  0x4b   :  { %3722 = vset.pattern.permute.xlu1 %v5360_v0  ;;  %3721 = vset.pattern.permute.xlu0 %v5360_v0  ;;  %v4334_v4 = vld [vmem:[#allocation7] ss:$12 sps:$4 sm:$0xff]   ;;  %v3731_v6 = vld [vmem:[#allocation4 + $0x18] ss:$12 sps:$4 sm:$0xff]   ;;  %v4337_v7 = vld [vmem:[#allocation7 + $0x1c] ss:$12 sps:$4 sm:$0xff]  }
  0x4c   :  { %315 = vmatprep.subr.bf16.mxu1 %v3723_v1  ;;  %524 = vmatprep.subr.bf16.mxu0 %v4332_v3  ;;  %v4340_v8 = vld [vmem:[#allocation7 + $0x18] ss:$12 sps:$4 sm:$0xff]   ;;  %v3735_v9 = vld [vmem:[#allocation4 + $0x34] ss:$12 sps:$4 sm:$0xff]   ;;  %v3737_v10 = vld [vmem:[#allocation4 + $0x30] ss:$12 sps:$4 sm:$0xff]  }
  0x4d   :  { %316 = vmatpush1.bf16.msra.mxu1 %v3725_v2  ;;  %525 = vmatpush1.bf16.msra.mxu0 %v4334_v4  ;;  %v4343_v11 = vld [vmem:[#allocation7 + $0x34] ss:$12 sps:$4 sm:$0xff]   ;;  %v3741_v12 = vld [vmem:[#allocation4 + $0x4c] ss:$12 sps:$4 sm:$0xff]   ;;  %v4346_v13 = vld [vmem:[#allocation7 + $0x30] ss:$12 sps:$4 sm:$0xff]  }
  0x4e   :  { %317 = vmatprep.subr.bf16.mxu1 %v3729_v5  ;;  %526 = vmatprep.subr.bf16.mxu0 %v4337_v7  ;;  %v4349_v14 = vld [vmem:[#allocation7 + $0x4c] ss:$12 sps:$4 sm:$0xff]   ;;  %v3743_v15 = vld [vmem:[#allocation4 + $0x48] ss:$12 sps:$4 sm:$0xff]   ;;  %v3747_v16 = vld [vmem:[#allocation4 + $0x64] ss:$12 sps:$4 sm:$0xff]  }
  0x4f   :  { %v4352_v17 = vld [vmem:[#allocation7 + $0x48] ss:$12 sps:$4 sm:$0xff]   ;;  %v4355_v18 = vld [vmem:[#allocation7 + $0x64] ss:$12 sps:$4 sm:$0xff]   ;;  %v3749_v19 = vld [vmem:[#allocation4 + $0x60] ss:$12 sps:$4 sm:$0xff]  }
  0x50   :  { %v3753_v20 = vld [vmem:[#allocation4 + $0x7c] ss:$12 sps:$4 sm:$0xff]   ;;  %v4358_v21 = vld [vmem:[#allocation7 + $0x60] ss:$12 sps:$4 sm:$0xff]   ;;  %v3755_v23 = vld [vmem:[#allocation4 + $0x78] ss:$12 sps:$4 sm:$0xff]  }
  0x51   :  { %318 = vmatpush1.bf16.msra.mxu1 %v3731_v6  ;;  %527 = vmatpush1.bf16.msra.mxu0 %v4340_v8  ;;  %v4361_v22 = vld [vmem:[#allocation7 + $0x7c] ss:$12 sps:$4 sm:$0xff]   ;;  %v3759_v24 = vld [vmem:[#allocation4 + $0x94] ss:$12 sps:$4 sm:$0xff]   ;;  %v4364_v25 = vld [vmem:[#allocation7 + $0x78] ss:$12 sps:$4 sm:$0xff]  }
  0x52   :  { %319 = vmatprep.subr.bf16.mxu1 %v3735_v9  ;;  %528 = vmatprep.subr.bf16.mxu0 %v4343_v11  ;;  %v4367_v26 = vld [vmem:[#allocation7 + $0x94] ss:$12 sps:$4 sm:$0xff]   ;;  %v3761_v27 = vld [vmem:[#allocation4 + $0x90] ss:$12 sps:$4 sm:$0xff]   ;;  %v3765_v28 = vld [vmem:[#allocation4 + $0xac] ss:$12 sps:$4 sm:$0xff]  }
  0x53   :  { %v4370_v29 = vld [vmem:[#allocation7 + $0x90] ss:$12 sps:$4 sm:$0xff]   ;;  %v4373_v30 = vld [vmem:[#allocation7 + $0xac] ss:$12 sps:$4 sm:$0xff]   ;;  %v3767_v31 = vld [vmem:[#allocation4 + $0xa8] ss:$12 sps:$4 sm:$0xff]  }
  0x54   :  { %v4376_v32 = vld [vmem:[#allocation7 + $0xa8] ss:$12 sps:$4 sm:$0xff]   ;;  %v138_v33 = vld [vmem:[%s5347_s0] sm:$0xf]  ;;  %vm4185_vm0 = vmmov 0   ;;  %v4466_v60 = vshrl.u32 %v172_v59, 7 }
  0x55   :  { %320 = vmatpush1.bf16.msra.mxu1 %v3737_v10  ;;  %529 = vmatpush1.bf16.msra.mxu0 %v4346_v13  ;;  %v3771_v34 = vld [vmem:[#allocation4 + $0x8] ss:$12 sps:$4 sm:$0xff]   ;;  %v3772_v36 = vld [vmem:[#allocation4 + $0x20] ss:$12 sps:$4 sm:$0xff]   ;;  %v3773_v37 = vld [vmem:[#allocation4 + $0x38] ss:$12 sps:$4 sm:$0xff]  }
  0x56   :  { %321 = vmatprep.subr.bf16.mxu1 %v3741_v12  ;;  %530 = vmatprep.subr.bf16.mxu0 %v4349_v14  ;;  %v3774_v38 = vld [vmem:[#allocation4 + $0x50] ss:$12 sps:$4 sm:$0xff]   ;;  %v3775_v39 = vld [vmem:[#allocation4 + $0x68] ss:$12 sps:$4 sm:$0xff]   ;;  %v3776_v40 = vld [vmem:[#allocation4 + $0x80] ss:$12 sps:$4 sm:$0xff]  }
  0x57   :  { %v3777_v41 = vld [vmem:[#allocation4 + $0x98] ss:$12 sps:$4 sm:$0xff]   ;;  %v3778_v42 = vld [vmem:[#allocation4 + $0xb0] ss:$12 sps:$4 sm:$0xff]   ;;  %v4408_v43 = vld [vmem:[#allocation7 + $0x8] ss:$12 sps:$4 sm:$0xff]  }
  0x58   :  { %v4416_v44 = vld [vmem:[#allocation7 + $0x20] ss:$12 sps:$4 sm:$0xff]   ;;  %v4422_v45 = vld [vmem:[#allocation7 + $0x38] ss:$12 sps:$4 sm:$0xff]   ;;  %v4426_v46 = vld [vmem:[#allocation7 + $0x50] ss:$12 sps:$4 sm:$0xff]  }
  0x59   :  { %322 = vmatpush1.bf16.msra.mxu1 %v3743_v15  ;;  %531 = vmatpush1.bf16.msra.mxu0 %v4352_v17  ;;  %v4430_v47 = vld [vmem:[#allocation7 + $0x68] ss:$12 sps:$4 sm:$0xff]   ;;  %v4434_v48 = vld [vmem:[#allocation7 + $0x80] ss:$12 sps:$4 sm:$0xff]   ;;  %v4438_v49 = vld [vmem:[#allocation7 + $0x98] ss:$12 sps:$4 sm:$0xff]  }
  0x5a   :  { %323 = vmatprep.subr.bf16.mxu1 %v3747_v16  ;;  %532 = vmatprep.subr.bf16.mxu0 %v4355_v18  ;;  %v4442_v50 = vld [vmem:[#allocation7 + $0xb0] ss:$12 sps:$4 sm:$0xff]   ;;  %v174_v61 = vsub.s32 0, %v4466_v60  ;;  %v130_v62 = vld [vmem:[%s5351_s4] sm:$0x7]  ;;  %v178_v10 = vsub.s32 1, %v4466_v60 }
  0x5c   :  { %v175_v63 = vrot.slane %v130_v62, %v174_v61  ;;  %v179_v16 = vrot.slane %v130_v62, %v178_v10 }
  0x5d   :  { %324 = vmatpush1.bf16.msra.mxu1 %v3749_v19  ;;  %533 = vmatpush1.bf16.msra.mxu0 %v4358_v21 }
  0x5e   :  { %325 = vmatprep.subr.bf16.mxu1 %v3753_v20  ;;  %534 = vmatprep.subr.bf16.mxu0 %v4361_v22 }
  0x61   :  { %326 = vmatpush1.bf16.msra.mxu1 %v3755_v23  ;;  %535 = vmatpush1.bf16.msra.mxu0 %v4364_v25 }
  0x62   :  { %327 = vmatprep.subr.bf16.mxu1 %v3759_v24  ;;  %536 = vmatprep.subr.bf16.mxu0 %v4367_v26 }
  0x65   :  { %328 = vmatpush1.bf16.msra.mxu1 %v3761_v27  ;;  %537 = vmatpush1.bf16.msra.mxu0 %v4370_v29 }
  0x66   :  { %329 = vmatprep.subr.bf16.mxu1 %v3765_v28  ;;  %538 = vmatprep.subr.bf16.mxu0 %v4373_v30  ;;  %v5364_v28 = vsub.s32 2, %v4466_v60 }
  0x69   :  { %330 = vmatpush1.bf16.msra.mxu1 %v3767_v31  ;;  %539 = vmatpush1.bf16.msra.mxu0 %v4376_v32  ;;  %v4487_v31 = vld [vmem:[%s5352_s5] ss:$0 sm:$0xff] }
  0x6a   :  { %3321 = vmatprep.subr.bf16.mxu1 %v5362_v35  ;;  %628 = vmatprep.subr.bf16.mxu0 %v4332_v3 }
  0x6c   :  { %348 = vmatmul.mubr.bf16.vlgmr.msra.gmra.mrb[0].mxu1 %v138_v33  ;;  %557 = vmatmul.mubr.bf16.vlgmr.msra.gmra.mrb[0].mxu0 %v5360_v0 }
  0x6d   :  { %3322 = vmatpush3.bf16.msra.mxu1 %v3771_v34  ;;  %3337 = vmatprep.mubr.msk.bf16.mxu1 %vm4185_vm0, %v5362_v35 }
  0x6e   :  { %3323 = vmatprep.subr.bf16.mxu1 %v5362_v35  ;;  %629 = vmatpush1.bf16.msra.mxu0 %v4334_v4 }
  0x6f   :  { %660 = vmatprep.mubr.bf16.mxu0 %v5360_v0  ;;  %630 = vmatprep.subr.bf16.mxu0 %v4337_v7 }
  0x71   :  { %3324 = vmatpush3.bf16.msra.mxu1 %v3772_v36 }
  0x72   :  { %3325 = vmatprep.subr.bf16.mxu1 %v5362_v35  ;;  %631 = vmatpush1.bf16.msra.mxu0 %v4340_v8 }
  0x73   :  { %632 = vmatprep.subr.bf16.mxu0 %v4343_v11 }
  0x75   :  { %3326 = vmatpush3.bf16.msra.mxu1 %v3773_v37 }
  0x76   :  { %3327 = vmatprep.subr.bf16.mxu1 %v5362_v35  ;;  %633 = vmatpush1.bf16.msra.mxu0 %v4346_v13 }
  0x77   :  { %634 = vmatprep.subr.bf16.mxu0 %v4349_v14 }
  0x79   :  { %3328 = vmatpush3.bf16.msra.mxu1 %v3774_v38 }
  0x7a   :  { %3329 = vmatprep.subr.bf16.mxu1 %v5362_v35  ;;  %635 = vmatpush1.bf16.msra.mxu0 %v4352_v17 }
  0x7b   :  { %636 = vmatprep.subr.bf16.mxu0 %v4355_v18 }
  0x7d   :  { %3330 = vmatpush3.bf16.msra.mxu1 %v3775_v39 }
  0x7e   :  { %3331 = vmatprep.subr.bf16.mxu1 %v5362_v35  ;;  %637 = vmatpush1.bf16.msra.mxu0 %v4358_v21 }
  0x7f   :  { %638 = vmatprep.subr.bf16.mxu0 %v4361_v22 }
  0x81   :  { %3332 = vmatpush3.bf16.msra.mxu1 %v3776_v40 }
  0x82   :  { %3333 = vmatprep.subr.bf16.mxu1 %v5362_v35  ;;  %639 = vmatpush1.bf16.msra.mxu0 %v4364_v25 }
  0x83   :  { %640 = vmatprep.subr.bf16.mxu0 %v4367_v26 }
  0x85   :  { %3334 = vmatpush3.bf16.msra.mxu1 %v3777_v41 }
  0x86   :  { %3335 = vmatprep.subr.bf16.mxu1 %v5362_v35  ;;  %641 = vmatpush1.bf16.msra.mxu0 %v4370_v29 }
  0x87   :  { %642 = vmatprep.subr.bf16.mxu0 %v4373_v30 }
  0x89   :  { %3336 = vmatpush3.bf16.msra.mxu1 %v3778_v42 }
  0x8a   :  { %3341 = vmatprep.subr.bf16.mxu1 %v5362_v35  ;;  %643 = vmatpush1.bf16.msra.mxu0 %v4376_v32 }
  0x8b   :  { %733 = vmatprep.subr.bf16.mxu0 %v4332_v3 }
  0x8c   :  { %3338 = vmatmul.mubr.bf16.vlgmr.msra.gmra.mrb[4].mxu1 %v138_v33  ;;  %v183_v33 = vrot.slane %v130_v62, %v5364_v28 }
  0x8d   :  { %3342 = vmatpush3.bf16.msra.mxu1 %v4408_v43  ;;  %3357 = vmatprep.mubr.msk.bf16.mxu1 %vm4185_vm0, %v5362_v35 }
  0x8e   :  { %3343 = vmatprep.subr.bf16.mxu1 %v5362_v35 }
  0x91   :  { %3344 = vmatpush3.bf16.msra.mxu1 %v4416_v44 }
  0x92   :  { %3345 = vmatprep.subr.bf16.mxu1 %v5362_v35 }
  0x95   :  { %3346 = vmatpush3.bf16.msra.mxu1 %v4422_v45 }
  0x96   :  { %3347 = vmatprep.subr.bf16.mxu1 %v5362_v35 }
  0x99   :  { %3348 = vmatpush3.bf16.msra.mxu1 %v4426_v46 }
  0x9a   :  { %3349 = vmatprep.subr.bf16.mxu1 %v5362_v35 }
  0x9d   :  { %3350 = vmatpush3.bf16.msra.mxu1 %v4430_v47 }
  0x9e   :  { %3351 = vmatprep.subr.bf16.mxu1 %v5362_v35 }
  0xa1   :  { %3352 = vmatpush3.bf16.msra.mxu1 %v4434_v48 }
  0xa2   :  { %3353 = vmatprep.subr.bf16.mxu1 %v5362_v35 }
  0xa5   :  { %3354 = vmatpush3.bf16.msra.mxu1 %v4438_v49 }
  0xa6   :  { %3355 = vmatprep.subr.bf16.mxu1 %v5362_v35 }
  0xa9   :  { %3356 = vmatpush3.bf16.msra.mxu1 %v4442_v50 }
  0xaa   :  { %3361 = vmatprep.subr.bf16.mxu1 %v5362_v35 }
  0xac   :  { %3358 = vmatmul.mubr.bf16.vlgmr.msra.gmra.mrb[8].mxu1 %v5360_v0 }
  0xad   :  { %3362 = vmatpush3.bf16.msra.mxu1 %v4408_v43  ;;  %3377 = vmatprep.mubr.msk.bf16.mxu1 %vm4185_vm0, %v5362_v35 }
  0xae   :  { %3363 = vmatprep.subr.bf16.mxu1 %v5362_v35 }
  0xb1   :  { %3364 = vmatpush3.bf16.msra.mxu1 %v4416_v44 }
  0xb2   :  { %3365 = vmatprep.subr.bf16.mxu1 %v5362_v35 }
  0xb5   :  { %3366 = vmatpush3.bf16.msra.mxu1 %v4422_v45 }
  0xb6   :  { %3367 = vmatprep.subr.bf16.mxu1 %v5362_v35 }
  0xb9   :  { %3368 = vmatpush3.bf16.msra.mxu1 %v4426_v46 }
  0xba   :  { %3369 = vmatprep.subr.bf16.mxu1 %v5362_v35 }
  0xbd   :  { %3370 = vmatpush3.bf16.msra.mxu1 %v4430_v47 }
  0xbe   :  { %3371 = vmatprep.subr.bf16.mxu1 %v5362_v35 }
  0xc1   :  { %3372 = vmatpush3.bf16.msra.mxu1 %v4434_v48 }
  0xc2   :  { %3373 = vmatprep.subr.bf16.mxu1 %v5362_v35 }
  0xc5   :  { %3374 = vmatpush3.bf16.msra.mxu1 %v4438_v49 }
  0xc6   :  { %3375 = vmatprep.subr.bf16.mxu1 %v5362_v35 }
  0xc9   :  { %3376 = vmatpush3.bf16.msra.mxu1 %v4442_v50 }
  0xca   :  { %3381 = vmatprep.subr.bf16.mxu1 %v5362_v35 }
 0x13f   :  { %v349_v51 = vpop.f32.mrb[0].mxu1  ;;  %v558_v54 = vpop.f32.mrb[0].mxu0 }
 0x140   :  { %v351_v52 = vpop.f32.mrb[1].mxu1  ;;  %v560_v56 = vpop.f32.mrb[1].mxu0  ;;  %v4474_v1 = vadd.f32 %v349_v51, %v175_v63 }
 0x141   :  { %v353_v53 = vpop.f32.mrb[2].mxu1  ;;  %v562_v57 = vpop.f32.mrb[2].mxu0  ;;  %v4480_v19 = vadd.f32 %v351_v52, %v179_v16 }
 0x142   :  { %v354_v55 = vpop.f32.mrb[3].mxu1  ;;  %v563_v58 = vpop.f32.mrb[3].mxu0  ;;  %v605_v2 = vadd.f32 %v558_v54, %v4474_v1 }
 0x143   :  { %v612_v20 = vadd.f32 %v560_v56, %v4480_v19 }
 0x144   :  { %v3054_v12 = vmul.f32 -1.442695, %v605_v2 }
 0x145   :  { %v3055_v24 = vmul.f32 -1.442695, %v612_v20 }
 0x146   :  { %3859 = vpow2.f32 %v3054_v12 }
 0x147   :  { %3861 = vpow2.f32 %v3055_v24 }
 0x150   :  { %v3860_v23 = vpop.eup %3859 }
 0x151   :  { %v609_v27 = vadd.f32 1.0, %v3860_v23  ;;  %v3862_v36 = vpop.eup %3861 }
 0x152   :  { %v616_v52 = vadd.f32 1.0, %v3862_v36 }
 0x153   :  { %3863 = vrcp.f32 %v609_v27 }
 0x15d   :  { %v3864_v39 = vpop.eup %3863 }
 0x15f   :  { %v390_v5 = vpop.f32.mrb[4].mxu1 }
 0x160   :  { %v3339_v6 = vpop.f32.mrb[5].mxu1  ;;  %v4492_v41 = vadd.f32 %v390_v5, %v183_v33 }
 0x161   :  { %v393_v9 = vpop.f32.mrb[6].mxu1 }
 0x162   :  { %v3340_v15 = vpop.f32.mrb[7].mxu1 }
 0x17f   :  { %v599_v34 = vpop.f32.mrb[8].mxu1 }
 0x180   :  { %v619_v37 = vadd.f32 %v4487_v31, %v599_v34  ;;  %v3359_v38 = vpop.f32.mrb[9].mxu1 }
 0x181   :  { %v602_v40 = vpop.f32.mrb[10].mxu1 }
 0x182   :  { %v620_v42 = vmul.f32 %v3864_v39, %v619_v37  ;;  %v3360_v51 = vpop.f32.mrb[11].mxu1 }
 0x184   :  { %v621_v53 = vadd.f32 %v620_v42, %v4492_v41 }
 0x186   :  { %3865 = vtanh.f32 %v621_v53 }
 0x187   :  { %3867 = vrcp.f32 %v616_v52 }
 0x190   :  { %v3866_v54 = vpop.eup %3865 }
 0x191   :  { %v623_v55 = vsub.f32 0.0, %v3866_v54  ;;  %v3868_v56 = vpop.eup %3867 }
 0x193   :  { %v624_v57 = vmul.f32 %v3868_v56, %v623_v55 }
 0x195   :  { %v4495_v58 = vadd.f32 %v3866_v54, %v624_v57 }
 0x197   :  { %v627_v59 = vpack.c.bf16 %v4495_v58, %v4495_v58 }
 0x199   :  { %661 = vmatmul.mubr.bf16.vlgmr.msra.gmra.mrb[4].mxu0 %v627_v59  ;;  %3378 = vmatmul.mubr.bf16.vlgmr.msra.gmra.mrb[12].mxu1 %v627_v59 }
 0x19a   :  { %734 = vmatpush1.bf16.msra.mxu0 %v4334_v4  ;;  %3382 = vmatpush3.bf16.msra.mxu1 %v4408_v43 }
 0x19b   :  { %735 = vmatprep.subr.bf16.mxu0 %v4337_v7  ;;  %3383 = vmatprep.subr.bf16.mxu1 %v5362_v35 }
 0x19c   :  { %765 = vmatprep.mubr.bf16.mxu0 %v5360_v0  ;;  %3397 = vmatprep.mubr.msk.bf16.mxu1 %vm4185_vm0, %v5362_v35 }
 0x19e   :  { %736 = vmatpush1.bf16.msra.mxu0 %v4340_v8  ;;  %3384 = vmatpush3.bf16.msra.mxu1 %v4416_v44 }
 0x19f   :  { %737 = vmatprep.subr.bf16.mxu0 %v4343_v11  ;;  %3385 = vmatprep.subr.bf16.mxu1 %v5362_v35 }
 0x1a2   :  { %738 = vmatpush1.bf16.msra.mxu0 %v4346_v13  ;;  %3386 = vmatpush3.bf16.msra.mxu1 %v4422_v45 }
 0x1a3   :  { %739 = vmatprep.subr.bf16.mxu0 %v4349_v14  ;;  %3387 = vmatprep.subr.bf16.mxu1 %v5362_v35 }
 0x1a6   :  { %740 = vmatpush1.bf16.msra.mxu0 %v4352_v17  ;;  %3388 = vmatpush3.bf16.msra.mxu1 %v4426_v46 }
 0x1a7   :  { %741 = vmatprep.subr.bf16.mxu0 %v4355_v18  ;;  %3389 = vmatprep.subr.bf16.mxu1 %v5362_v35 }
 0x1aa   :  { %742 = vmatpush1.bf16.msra.mxu0 %v4358_v21  ;;  %3390 = vmatpush3.bf16.msra.mxu1 %v4430_v47 }
 0x1ab   :  { %743 = vmatprep.subr.bf16.mxu0 %v4361_v22  ;;  %3391 = vmatprep.subr.bf16.mxu1 %v5362_v35 }
 0x1ae   :  { %744 = vmatpush1.bf16.msra.mxu0 %v4364_v25  ;;  %3392 = vmatpush3.bf16.msra.mxu1 %v4434_v48 }
 0x1af   :  { %745 = vmatprep.subr.bf16.mxu0 %v4367_v26  ;;  %3393 = vmatprep.subr.bf16.mxu1 %v5362_v35 }
 0x1b2   :  { %746 = vmatpush1.bf16.msra.mxu0 %v4370_v29  ;;  %3394 = vmatpush3.bf16.msra.mxu1 %v4438_v49 }
 0x1b3   :  { %747 = vmatprep.subr.bf16.mxu0 %v4373_v30  ;;  %3395 = vmatprep.subr.bf16.mxu1 %v5362_v35 }
 0x1b6   :  { %748 = vmatpush1.bf16.msra.mxu0 %v4376_v32  ;;  %3396 = vmatpush3.bf16.msra.mxu1 %v4442_v50 }
 0x1b7   :  { %838 = vmatprep.subr.bf16.mxu0 %v4332_v3  ;;  %3401 = vmatprep.subr.bf16.mxu1 %v5362_v35 }
 0x26c   :  { %v662_v62 = vpop.f32.mrb[4].mxu0  ;;  %v703_v63 = vpop.f32.mrb[12].mxu1 }
 0x26d   :  { %v709_v2 = vadd.f32 %v662_v62, %v4474_v1  ;;  %v664_v5 = vpop.f32.mrb[5].mxu0  ;;  %v3379_v6 = vpop.f32.mrb[13].mxu1  ;;  %v723_v36 = vadd.f32 %v4487_v31, %v703_v63 }
 0x26e   :  { %v666_v9 = vpop.f32.mrb[6].mxu0  ;;  %v706_v12 = vpop.f32.mrb[14].mxu1  ;;  %v716_v23 = vadd.f32 %v664_v5, %v4480_v19 }
 0x26f   :  { %v3056_v15 = vmul.f32 -1.442695, %v709_v2  ;;  %v667_v16 = vpop.f32.mrb[7].mxu0  ;;  %v3380_v20 = vpop.f32.mrb[15].mxu1 }
 0x270   :  { %v3057_v24 = vmul.f32 -1.442695, %v716_v23 }
 0x271   :  { %3869 = vpow2.f32 %v3056_v15 }
 0x272   :  { %3871 = vpow2.f32 %v3057_v24 }
 0x27b   :  { %v3870_v27 = vpop.eup %3869 }
 0x27c   :  { %v713_v33 = vadd.f32 1.0, %v3870_v27  ;;  %v3872_v34 = vpop.eup %3871 }
 0x27d   :  { %v720_v40 = vadd.f32 1.0, %v3872_v34 }
 0x27e   :  { %3873 = vrcp.f32 %v713_v33 }
 0x288   :  { %v3874_v37 = vpop.eup %3873 }
 0x289   :  { %v724_v38 = vmul.f32 %v3874_v37, %v723_v36 }
 0x28b   :  { %v725_v39 = vadd.f32 %v724_v38, %v4492_v41 }
 0x28d   :  { %3875 = vtanh.f32 %v725_v39 }
 0x28e   :  { %3877 = vrcp.f32 %v720_v40 }
 0x297   :  { %v3876_v42 = vpop.eup %3875 }
 0x298   :  { %v727_v51 = vsub.f32 %v4495_v58, %v3876_v42  ;;  %v3878_v52 = vpop.eup %3877 }
 0x29a   :  { %v728_v53 = vmul.f32 %v3878_v52, %v727_v51 }
 0x29c   :  { %v4539_v54 = vadd.f32 %v3876_v42, %v728_v53 }
 0x29e   :  { %v732_v55 = vpack.c.bf16 %v4539_v54, %v4539_v54 }
 0x2a0   :  { %766 = vmatmul.mubr.bf16.vlgmr.msra.gmra.mrb[8].mxu0 %v732_v55  ;;  %3398 = vmatmul.mubr.bf16.vlgmr.msra.gmra.mrb[16].mxu1 %v732_v55 }
 0x2a1   :  { %839 = vmatpush1.bf16.msra.mxu0 %v4334_v4  ;;  %3402 = vmatpush3.bf16.msra.mxu1 %v4408_v43 }
 0x2a2   :  { %840 = vmatprep.subr.bf16.mxu0 %v4337_v7  ;;  %3403 = vmatprep.subr.bf16.mxu1 %v5362_v35 }
 0x2a3   :  { %870 = vmatprep.mubr.bf16.mxu0 %v5360_v0  ;;  %3417 = vmatprep.mubr.msk.bf16.mxu1 %vm4185_vm0, %v5362_v35 }
 0x2a5   :  { %841 = vmatpush1.bf16.msra.mxu0 %v4340_v8  ;;  %3404 = vmatpush3.bf16.msra.mxu1 %v4416_v44 }
 0x2a6   :  { %842 = vmatprep.subr.bf16.mxu0 %v4343_v11  ;;  %3405 = vmatprep.subr.bf16.mxu1 %v5362_v35 }
 0x2a9   :  { %843 = vmatpush1.bf16.msra.mxu0 %v4346_v13  ;;  %3406 = vmatpush3.bf16.msra.mxu1 %v4422_v45 }
 0x2aa   :  { %844 = vmatprep.subr.bf16.mxu0 %v4349_v14  ;;  %3407 = vmatprep.subr.bf16.mxu1 %v5362_v35 }
 0x2ad   :  { %845 = vmatpush1.bf16.msra.mxu0 %v4352_v17  ;;  %3408 = vmatpush3.bf16.msra.mxu1 %v4426_v46 }
 0x2ae   :  { %846 = vmatprep.subr.bf16.mxu0 %v4355_v18  ;;  %3409 = vmatprep.subr.bf16.mxu1 %v5362_v35 }
 0x2b1   :  { %847 = vmatpush1.bf16.msra.mxu0 %v4358_v21  ;;  %3410 = vmatpush3.bf16.msra.mxu1 %v4430_v47 }
 0x2b2   :  { %848 = vmatprep.subr.bf16.mxu0 %v4361_v22  ;;  %3411 = vmatprep.subr.bf16.mxu1 %v5362_v35 }
 0x2b5   :  { %849 = vmatpush1.bf16.msra.mxu0 %v4364_v25  ;;  %3412 = vmatpush3.bf16.msra.mxu1 %v4434_v48 }
 0x2b6   :  { %850 = vmatprep.subr.bf16.mxu0 %v4367_v26  ;;  %3413 = vmatprep.subr.bf16.mxu1 %v5362_v35 }
 0x2b9   :  { %851 = vmatpush1.bf16.msra.mxu0 %v4370_v29  ;;  %3414 = vmatpush3.bf16.msra.mxu1 %v4438_v49 }
 0x2ba   :  { %852 = vmatprep.subr.bf16.mxu0 %v4373_v30  ;;  %3415 = vmatprep.subr.bf16.mxu1 %v5362_v35 }
 0x2bd   :  { %853 = vmatpush1.bf16.msra.mxu0 %v4376_v32  ;;  %3416 = vmatpush3.bf16.msra.mxu1 %v4442_v50 }
 0x2be   :  { %943 = vmatprep.subr.bf16.mxu0 %v4332_v3  ;;  %3421 = vmatprep.subr.bf16.mxu1 %v5362_v35 }
 0x373   :  { %v767_v56 = vpop.f32.mrb[8].mxu0  ;;  %v808_v57 = vpop.f32.mrb[16].mxu1 }
 0x374   :  { %v814_v59 = vadd.f32 %v767_v56, %v4474_v1  ;;  %v769_v62 = vpop.f32.mrb[9].mxu0  ;;  %v3399_v63 = vpop.f32.mrb[17].mxu1  ;;  %v828_v24 = vadd.f32 %v4487_v31, %v808_v57 }
 0x375   :  { %v771_v2 = vpop.f32.mrb[10].mxu0  ;;  %v811_v5 = vpop.f32.mrb[18].mxu1  ;;  %v821_v15 = vadd.f32 %v769_v62, %v4480_v19 }
 0x376   :  { %v3058_v6 = vmul.f32 -1.442695, %v814_v59  ;;  %v772_v9 = vpop.f32.mrb[11].mxu0  ;;  %v3400_v12 = vpop.f32.mrb[19].mxu1 }
 0x377   :  { %v3059_v16 = vmul.f32 -1.442695, %v821_v15 }
 0x378   :  { %3879 = vpow2.f32 %v3058_v6 }
 0x379   :  { %3881 = vpow2.f32 %v3059_v16 }
 0x382   :  { %v3880_v20 = vpop.eup %3879 }
 0x383   :  { %v818_v23 = vadd.f32 1.0, %v3880_v20  ;;  %v3882_v3 = vpop.eup %3881 }
 0x384   :  { %v825_v36 = vadd.f32 1.0, %v3882_v3 }
 0x385   :  { %3883 = vrcp.f32 %v818_v23 }
 0x38f   :  { %v3884_v27 = vpop.eup %3883 }
 0x390   :  { %v829_v33 = vmul.f32 %v3884_v27, %v828_v24  ;;  %v4633_v27 = vld [vmem:[#allocation7] ss:$12 sps:$4 sm:$0xff]  }
 0x392   :  { %v830_v34 = vadd.f32 %v829_v33, %v4492_v41  ;;  %v4637_v33 = vld [vmem:[#allocation7 + $0x1c] ss:$12 sps:$4 sm:$0xff]  }
 0x394   :  { %3885 = vtanh.f32 %v830_v34  ;;  %v4644_v34 = vld [vmem:[#allocation7 + $0x18] ss:$12 sps:$4 sm:$0xff]  }
 0x395   :  { %3887 = vrcp.f32 %v825_v36  ;;  %v4648_v36 = vld [vmem:[#allocation7 + $0x34] ss:$12 sps:$4 sm:$0xff]  }
 0x39e   :  { %v3886_v37 = vpop.eup %3885 }
 0x39f   :  { %v832_v38 = vsub.f32 %v4539_v54, %v3886_v37  ;;  %v3888_v39 = vpop.eup %3887 }
 0x3a1   :  { %v833_v40 = vmul.f32 %v3888_v39, %v832_v38  ;;  %v4656_v38 = vld [vmem:[#allocation7 + $0x4c] ss:$12 sps:$4 sm:$0xff]   ;;  %v4660_v39 = vld [vmem:[#allocation7 + $0x48] ss:$12 sps:$4 sm:$0xff]  }
 0x3a3   :  { %v4583_v42 = vadd.f32 %v3886_v37, %v833_v40  ;;  %v4652_v37 = vld [vmem:[#allocation7 + $0x30] ss:$12 sps:$4 sm:$0xff]  }
 0x3a4   :  { %v4664_v40 = vld [vmem:[#allocation7 + $0x64] ss:$12 sps:$4 sm:$0xff]  }
 0x3a5   :  { %v837_v51 = vpack.c.bf16 %v4583_v42, %v4583_v42 }
 0x3a7   :  { %871 = vmatmul.mubr.bf16.vlgmr.msra.gmra.mrb[12].mxu0 %v837_v51  ;;  %3418 = vmatmul.mubr.bf16.vlgmr.msra.gmra.mrb[20].mxu1 %v837_v51 }
 0x3a8   :  { %944 = vmatpush1.bf16.msra.mxu0 %v4334_v4  ;;  %3422 = vmatpush3.bf16.msra.mxu1 %v4408_v43  ;;  %v4620_v4 = vld [vmem:[#allocation7 + $0x4] ss:$12 sps:$4 sm:$0xff]  }
 0x3a9   :  { %945 = vmatprep.subr.bf16.mxu0 %v4337_v7  ;;  %3423 = vmatprep.subr.bf16.mxu1 %v5362_v35 }
 0x3aa   :  { %975 = vmatprep.mubr.bf16.mxu0 %v5360_v0  ;;  %3437 = vmatprep.mubr.msk.bf16.mxu1 %vm4185_vm0, %v5362_v35 }
 0x3ac   :  { %946 = vmatpush1.bf16.msra.mxu0 %v4340_v8  ;;  %3424 = vmatpush3.bf16.msra.mxu1 %v4416_v44 }
 0x3ad   :  { %947 = vmatprep.subr.bf16.mxu0 %v4343_v11  ;;  %3425 = vmatprep.subr.bf16.mxu1 %v5362_v35 }
 0x3b0   :  { %948 = vmatpush1.bf16.msra.mxu0 %v4346_v13  ;;  %3426 = vmatpush3.bf16.msra.mxu1 %v4422_v45 }
 0x3b1   :  { %949 = vmatprep.subr.bf16.mxu0 %v4349_v14  ;;  %3427 = vmatprep.subr.bf16.mxu1 %v5362_v35 }
 0x3b4   :  { %950 = vmatpush1.bf16.msra.mxu0 %v4352_v17  ;;  %3428 = vmatpush3.bf16.msra.mxu1 %v4426_v46 }
 0x3b5   :  { %951 = vmatprep.subr.bf16.mxu0 %v4355_v18  ;;  %3429 = vmatprep.subr.bf16.mxu1 %v5362_v35 }
 0x3b8   :  { %952 = vmatpush1.bf16.msra.mxu0 %v4358_v21  ;;  %3430 = vmatpush3.bf16.msra.mxu1 %v4430_v47 }
 0x3b9   :  { %953 = vmatprep.subr.bf16.mxu0 %v4361_v22  ;;  %3431 = vmatprep.subr.bf16.mxu1 %v5362_v35 }
 0x3bc   :  { %954 = vmatpush1.bf16.msra.mxu0 %v4364_v25  ;;  %3432 = vmatpush3.bf16.msra.mxu1 %v4434_v48 }
 0x3bd   :  { %955 = vmatprep.subr.bf16.mxu0 %v4367_v26  ;;  %3433 = vmatprep.subr.bf16.mxu1 %v5362_v35 }
 0x3c0   :  { %956 = vmatpush1.bf16.msra.mxu0 %v4370_v29  ;;  %3434 = vmatpush3.bf16.msra.mxu1 %v4438_v49 }
 0x3c1   :  { %957 = vmatprep.subr.bf16.mxu0 %v4373_v30  ;;  %3435 = vmatprep.subr.bf16.mxu1 %v5362_v35 }
 0x3c4   :  { %958 = vmatpush1.bf16.msra.mxu0 %v4376_v32  ;;  %3436 = vmatpush3.bf16.msra.mxu1 %v4442_v50 }
 0x3c5   :  { %1048 = vmatprep.subr.bf16.mxu0 %v4620_v4  ;;  %3441 = vmatprep.subr.bf16.mxu1 %v5362_v35 }
 0x47a   :  { %v872_v7 = vpop.f32.mrb[12].mxu0  ;;  %v913_v8 = vpop.f32.mrb[20].mxu1 }
 0x47b   :  { %v919_v11 = vadd.f32 %v872_v7, %v4474_v1  ;;  %v874_v13 = vpop.f32.mrb[13].mxu0  ;;  %v3419_v14 = vpop.f32.mrb[21].mxu1  ;;  %v933_v2 = vadd.f32 %v4487_v31, %v913_v8 }
 0x47c   :  { %v876_v17 = vpop.f32.mrb[14].mxu0  ;;  %v916_v18 = vpop.f32.mrb[22].mxu1  ;;  %v926_v56 = vadd.f32 %v874_v13, %v4480_v19 }
 0x47d   :  { %v3060_v52 = vmul.f32 -1.442695, %v919_v11  ;;  %v877_v53 = vpop.f32.mrb[15].mxu0  ;;  %v3420_v55 = vpop.f32.mrb[23].mxu1 }
 0x47e   :  { %v3061_v57 = vmul.f32 -1.442695, %v926_v56 }
 0x47f   :  { %3889 = vpow2.f32 %v3060_v52 }
 0x480   :  { %3891 = vpow2.f32 %v3061_v57 }
 0x489   :  { %v3890_v59 = vpop.eup %3889 }
 0x48a   :  { %v923_v62 = vadd.f32 1.0, %v3890_v59  ;;  %v3892_v63 = vpop.eup %3891 }
 0x48b   :  { %v930_v12 = vadd.f32 1.0, %v3892_v63 }
 0x48c   :  { %3893 = vrcp.f32 %v923_v62 }
 0x496   :  { %v3894_v5 = vpop.eup %3893 }
 0x497   :  { %v934_v6 = vmul.f32 %v3894_v5, %v933_v2 }
 0x499   :  { %v935_v9 = vadd.f32 %v934_v6, %v4492_v41 }
 0x49b   :  { %3895 = vtanh.f32 %v935_v9  ;;  %v4712_v9 = vld [vmem:[#allocation7 + $0x60] ss:$12 sps:$4 sm:$0xff]  }
 0x49c   :  { %3897 = vrcp.f32 %v930_v12  ;;  %v4716_v12 = vld [vmem:[#allocation7 + $0x7c] ss:$12 sps:$4 sm:$0xff]  }
 0x4a5   :  { %v3896_v15 = vpop.eup %3895 }
 0x4a6   :  { %v937_v16 = vsub.f32 %v4583_v42, %v3896_v15  ;;  %v3898_v20 = vpop.eup %3897 }
 0x4a8   :  { %v938_v23 = vmul.f32 %v3898_v20, %v937_v16  ;;  %v4724_v16 = vld [vmem:[#allocation7 + $0x94] ss:$12 sps:$4 sm:$0xff]   ;;  %v4728_v20 = vld [vmem:[#allocation7 + $0x90] ss:$12 sps:$4 sm:$0xff]  }
 0x4aa   :  { %v4629_v3 = vadd.f32 %v3896_v15, %v938_v23  ;;  %v4720_v15 = vld [vmem:[#allocation7 + $0x78] ss:$12 sps:$4 sm:$0xff]  }
 0x4ab   :  { %v4732_v23 = vld [vmem:[#allocation7 + $0xac] ss:$12 sps:$4 sm:$0xff]  }
 0x4ac   :  { %v942_v24 = vpack.c.bf16 %v4629_v3, %v4629_v3 }
 0x4ae   :  { %976 = vmatmul.mubr.bf16.vlgmr.msra.gmra.mrb[16].mxu0 %v942_v24  ;;  %3438 = vmatmul.mubr.bf16.vlgmr.msra.gmra.mrb[24].mxu1 %v942_v24  ;;  %v4736_v24 = vld [vmem:[#allocation7 + $0xa8] ss:$12 sps:$4 sm:$0xff]  }
 0x4af   :  { %1049 = vmatpush1.bf16.msra.mxu0 %v4633_v27  ;;  %3442 = vmatpush3.bf16.msra.mxu1 %v4408_v43 }
 0x4b0   :  { %1050 = vmatprep.subr.bf16.mxu0 %v4637_v33  ;;  %3443 = vmatprep.subr.bf16.mxu1 %v5362_v35 }
 0x4b1   :  { %1080 = vmatprep.mubr.bf16.mxu0 %v5360_v0  ;;  %3457 = vmatprep.mubr.msk.bf16.mxu1 %vm4185_vm0, %v5362_v35 }
 0x4b3   :  { %1051 = vmatpush1.bf16.msra.mxu0 %v4644_v34  ;;  %3444 = vmatpush3.bf16.msra.mxu1 %v4416_v44 }
 0x4b4   :  { %1052 = vmatprep.subr.bf16.mxu0 %v4648_v36  ;;  %3445 = vmatprep.subr.bf16.mxu1 %v5362_v35 }
 0x4b7   :  { %1053 = vmatpush1.bf16.msra.mxu0 %v4652_v37  ;;  %3446 = vmatpush3.bf16.msra.mxu1 %v4422_v45 }
 0x4b8   :  { %1054 = vmatprep.subr.bf16.mxu0 %v4656_v38  ;;  %3447 = vmatprep.subr.bf16.mxu1 %v5362_v35 }
 0x4bb   :  { %1055 = vmatpush1.bf16.msra.mxu0 %v4660_v39  ;;  %3448 = vmatpush3.bf16.msra.mxu1 %v4426_v46 }
 0x4bc   :  { %1056 = vmatprep.subr.bf16.mxu0 %v4664_v40  ;;  %3449 = vmatprep.subr.bf16.mxu1 %v5362_v35 }
 0x4bf   :  { %1057 = vmatpush1.bf16.msra.mxu0 %v4358_v21  ;;  %3450 = vmatpush3.bf16.msra.mxu1 %v4430_v47 }
 0x4c0   :  { %1058 = vmatprep.subr.bf16.mxu0 %v4361_v22  ;;  %3451 = vmatprep.subr.bf16.mxu1 %v5362_v35 }
 0x4c3   :  { %1059 = vmatpush1.bf16.msra.mxu0 %v4364_v25  ;;  %3452 = vmatpush3.bf16.msra.mxu1 %v4434_v48 }
 0x4c4   :  { %1060 = vmatprep.subr.bf16.mxu0 %v4367_v26  ;;  %3453 = vmatprep.subr.bf16.mxu1 %v5362_v35 }
 0x4c7   :  { %1061 = vmatpush1.bf16.msra.mxu0 %v4370_v29  ;;  %3454 = vmatpush3.bf16.msra.mxu1 %v4438_v49 }
 0x4c8   :  { %1062 = vmatprep.subr.bf16.mxu0 %v4373_v30  ;;  %3455 = vmatprep.subr.bf16.mxu1 %v5362_v35 }
 0x4cb   :  { %1063 = vmatpush1.bf16.msra.mxu0 %v4376_v32  ;;  %3456 = vmatpush3.bf16.msra.mxu1 %v4442_v50 }
 0x4cc   :  { %1153 = vmatprep.subr.bf16.mxu0 %v4620_v4  ;;  %3461 = vmatprep.subr.bf16.mxu1 %v5362_v35 }
 0x581   :  { %v977_v21 = vpop.f32.mrb[16].mxu0  ;;  %v1018_v22 = vpop.f32.mrb[24].mxu1 }
 0x582   :  { %v1024_v25 = vadd.f32 %v977_v21, %v4474_v1  ;;  %v979_v26 = vpop.f32.mrb[17].mxu0  ;;  %v3439_v29 = vpop.f32.mrb[25].mxu1  ;;  %v1038_v52 = vadd.f32 %v4487_v31, %v1018_v22 }
 0x583   :  { %v981_v51 = vpop.f32.mrb[18].mxu0  ;;  %v1021_v7 = vpop.f32.mrb[26].mxu1  ;;  %v1031_v32 = vadd.f32 %v979_v26, %v4480_v19 }
 0x584   :  { %v3062_v8 = vmul.f32 -1.442695, %v1024_v25  ;;  %v982_v30 = vpop.f32.mrb[19].mxu0  ;;  %v3440_v11 = vpop.f32.mrb[27].mxu1 }
 0x585   :  { %v3063_v13 = vmul.f32 -1.442695, %v1031_v32 }
 0x586   :  { %3899 = vpow2.f32 %v3062_v8 }
 0x587   :  { %3901 = vpow2.f32 %v3063_v13 }
 0x590   :  { %v3900_v14 = vpop.eup %3899 }
 0x591   :  { %v1028_v17 = vadd.f32 1.0, %v3900_v14  ;;  %v3902_v18 = vpop.eup %3901 }
 0x592   :  { %v1035_v57 = vadd.f32 1.0, %v3902_v18 }
 0x593   :  { %3903 = vrcp.f32 %v1028_v17 }
 0x59d   :  { %v3904_v53 = vpop.eup %3903 }
 0x59e   :  { %v1039_v55 = vmul.f32 %v3904_v53, %v1038_v52 }
 0x5a0   :  { %v1040_v56 = vadd.f32 %v1039_v55, %v4492_v41 }
 0x5a2   :  { %3905 = vtanh.f32 %v1040_v56 }
 0x5a3   :  { %3907 = vrcp.f32 %v1035_v57 }
 0x5ac   :  { %v3906_v59 = vpop.eup %3905 }
 0x5ad   :  { %v1042_v62 = vsub.f32 %v4629_v3, %v3906_v59  ;;  %v3908_v63 = vpop.eup %3907 }
 0x5af   :  { %v1043_v2 = vmul.f32 %v3908_v63, %v1042_v62 }
 0x5b1   :  { %v4689_v5 = vadd.f32 %v3906_v59, %v1043_v2 }
 0x5b3   :  { %v1047_v6 = vpack.c.bf16 %v4689_v5, %v4689_v5 }
 0x5b5   :  { %1081 = vmatmul.mubr.bf16.vlgmr.msra.gmra.mrb[20].mxu0 %v1047_v6  ;;  %3458 = vmatmul.mubr.bf16.vlgmr.msra.gmra.mrb[28].mxu1 %v1047_v6 }
 0x5b6   :  { %1154 = vmatpush1.bf16.msra.mxu0 %v4633_v27  ;;  %3462 = vmatpush3.bf16.msra.mxu1 %v4408_v43 }
 0x5b7   :  { %1155 = vmatprep.subr.bf16.mxu0 %v4637_v33  ;;  %3463 = vmatprep.subr.bf16.mxu1 %v5362_v35 }
 0x5b8   :  { %1185 = vmatprep.mubr.bf16.mxu0 %v5360_v0  ;;  %3477 = vmatprep.mubr.msk.bf16.mxu1 %vm4185_vm0, %v5362_v35 }
 0x5ba   :  { %1156 = vmatpush1.bf16.msra.mxu0 %v4644_v34  ;;  %3464 = vmatpush3.bf16.msra.mxu1 %v4416_v44 }
 0x5bb   :  { %1157 = vmatprep.subr.bf16.mxu0 %v4648_v36  ;;  %3465 = vmatprep.subr.bf16.mxu1 %v5362_v35 }
 0x5be   :  { %1158 = vmatpush1.bf16.msra.mxu0 %v4652_v37  ;;  %3466 = vmatpush3.bf16.msra.mxu1 %v4422_v45 }
 0x5bf   :  { %1159 = vmatprep.subr.bf16.mxu0 %v4656_v38  ;;  %3467 = vmatprep.subr.bf16.mxu1 %v5362_v35 }
 0x5c2   :  { %1160 = vmatpush1.bf16.msra.mxu0 %v4660_v39  ;;  %3468 = vmatpush3.bf16.msra.mxu1 %v4426_v46 }
 0x5c3   :  { %1161 = vmatprep.subr.bf16.mxu0 %v4664_v40  ;;  %3469 = vmatprep.subr.bf16.mxu1 %v5362_v35 }
 0x5c6   :  { %1162 = vmatpush1.bf16.msra.mxu0 %v4712_v9  ;;  %3470 = vmatpush3.bf16.msra.mxu1 %v4430_v47 }
 0x5c7   :  { %1163 = vmatprep.subr.bf16.mxu0 %v4716_v12  ;;  %3471 = vmatprep.subr.bf16.mxu1 %v5362_v35 }
 0x5ca   :  { %1164 = vmatpush1.bf16.msra.mxu0 %v4720_v15  ;;  %3472 = vmatpush3.bf16.msra.mxu1 %v4434_v48 }
 0x5cb   :  { %1165 = vmatprep.subr.bf16.mxu0 %v4724_v16  ;;  %3473 = vmatprep.subr.bf16.mxu1 %v5362_v35 }
 0x5ce   :  { %1166 = vmatpush1.bf16.msra.mxu0 %v4728_v20  ;;  %3474 = vmatpush3.bf16.msra.mxu1 %v4438_v49 }
 0x5cf   :  { %1167 = vmatprep.subr.bf16.mxu0 %v4732_v23  ;;  %3475 = vmatprep.subr.bf16.mxu1 %v5362_v35 }
 0x5d2   :  { %1168 = vmatpush1.bf16.msra.mxu0 %v4736_v24  ;;  %3476 = vmatpush3.bf16.msra.mxu1 %v4442_v50 }
 0x5d3   :  { %1258 = vmatprep.subr.bf16.mxu0 %v4620_v4  ;;  %3481 = vmatprep.subr.bf16.mxu1 %v5362_v35 }
 0x688   :  { %v1082_v21 = vpop.f32.mrb[20].mxu0  ;;  %v1123_v22 = vpop.f32.mrb[28].mxu1 }
 0x689   :  { %v1129_v25 = vadd.f32 %v1082_v21, %v4474_v1  ;;  %v1084_v26 = vpop.f32.mrb[21].mxu0  ;;  %v3459_v29 = vpop.f32.mrb[29].mxu1  ;;  %v1143_v18 = vadd.f32 %v4487_v31, %v1123_v22 }
 0x68a   :  { %v1086_v51 = vpop.f32.mrb[22].mxu0  ;;  %v1126_v7 = vpop.f32.mrb[30].mxu1  ;;  %v1136_v32 = vadd.f32 %v1084_v26, %v4480_v19  ;;  %v3787_v29 = vld [vmem:[#allocation9] ss:$12 sps:$4 sm:$0xff]  }
 0x68b   :  { %v3064_v8 = vmul.f32 -1.442695, %v1129_v25  ;;  %v1087_v30 = vpop.f32.mrb[23].mxu0  ;;  %v3460_v11 = vpop.f32.mrb[31].mxu1  ;;  %v3793_v7 = vld [vmem:[#allocation9 + $0x1c] ss:$12 sps:$4 sm:$0xff]  }
 0x68c   :  { %v3065_v13 = vmul.f32 -1.442695, %v1136_v32  ;;  %v3791_v30 = vld [vmem:[#allocation9 + $0x18] ss:$12 sps:$4 sm:$0xff]   ;;  %v3797_v11 = vld [vmem:[#allocation9 + $0x34] ss:$12 sps:$4 sm:$0xff]  }
 0x68d   :  { %3909 = vpow2.f32 %v3064_v8  ;;  %v1410_v8 = vpack.c.bf16 %v4539_v54, %v4495_v58  ;;  %v3798_v32 = vld [vmem:[#allocation9 + $0x38] ss:$12 sps:$4 sm:$0xff]   ;;  %v3799_v58 = vld [vmem:[#allocation9 + $0x48] ss:$12 sps:$4 sm:$0xff]  }
 0x68e   :  { %3911 = vpow2.f32 %v3065_v13  ;;  %v3795_v13 = vld [vmem:[#allocation9 + $0x30] ss:$12 sps:$4 sm:$0xff]  }
 0x68f   :  { %v3805_v54 = vld [vmem:[#allocation9 + $0x64] ss:$12 sps:$4 sm:$0xff]  }
 0x697   :  { %v3910_v14 = vpop.eup %3909 }
 0x698   :  { %v1133_v17 = vadd.f32 1.0, %v3910_v14  ;;  %v3912_v4 = vpop.eup %3911  ;;  %v3801_v14 = vld [vmem:[#allocation9 + $0x4c] ss:$12 sps:$4 sm:$0xff]  }
 0x699   :  { %v1140_v56 = vadd.f32 1.0, %v3912_v4  ;;  %v3806_v4 = vld [vmem:[#allocation9 + $0x68] ss:$12 sps:$4 sm:$0xff]  }
 0x69a   :  { %3913 = vrcp.f32 %v1133_v17  ;;  %v3802_v17 = vld [vmem:[#allocation9 + $0x50] ss:$12 sps:$4 sm:$0xff]  }
 0x6a4   :  { %v3914_v52 = vpop.eup %3913 }
 0x6a5   :  { %v1144_v53 = vmul.f32 %v3914_v52, %v1143_v18  ;;  %v3803_v18 = vld [vmem:[#allocation9 + $0x60] ss:$12 sps:$4 sm:$0xff]   ;;  %v3809_v52 = vld [vmem:[#allocation9 + $0x7c] ss:$12 sps:$4 sm:$0xff]  }
 0x6a7   :  { %v1145_v55 = vadd.f32 %v1144_v53, %v4492_v41  ;;  %v3810_v53 = vld [vmem:[#allocation9 + $0x80] ss:$12 sps:$4 sm:$0xff]  }
 0x6a9   :  { %3915 = vtanh.f32 %v1145_v55  ;;  %v3807_v55 = vld [vmem:[#allocation9 + $0x78] ss:$12 sps:$4 sm:$0xff]  }
 0x6aa   :  { %3917 = vrcp.f32 %v1140_v56  ;;  %v3813_v56 = vld [vmem:[#allocation9 + $0x94] ss:$12 sps:$4 sm:$0xff]  }
 0x6b3   :  { %v3916_v57 = vpop.eup %3915 }
 0x6b4   :  { %v1147_v59 = vsub.f32 %v4689_v5, %v3916_v57  ;;  %v3918_v62 = vpop.eup %3917 }
 0x6b6   :  { %v1148_v63 = vmul.f32 %v3918_v62, %v1147_v59  ;;  %v3811_v59 = vld [vmem:[#allocation9 + $0x90] ss:$12 sps:$4 sm:$0xff]   ;;  %v3817_v62 = vld [vmem:[#allocation9 + $0xac] ss:$12 sps:$4 sm:$0xff]  }
 0x6b8   :  { %v4747_v2 = vadd.f32 %v3916_v57, %v1148_v63  ;;  %v3814_v57 = vld [vmem:[#allocation9 + $0x98] ss:$12 sps:$4 sm:$0xff]   ;;  %v3818_v63 = vld [vmem:[#allocation9 + $0xb0] ss:$12 sps:$4 sm:$0xff]  }
 0x6ba   :  { %v1152_v6 = vpack.c.bf16 %v4747_v2, %v4747_v2 }
 0x6bc   :  { %1186 = vmatmul.mubr.bf16.vlgmr.msra.gmra.mrb[24].mxu0 %v1152_v6  ;;  %3478 = vmatmul.mubr.bf16.vlgmr.msra.gmra.mrb[32].mxu1 %v1152_v6  ;;  %v3815_v6 = vld [vmem:[#allocation9 + $0xa8] ss:$12 sps:$4 sm:$0xff]  }
 0x6bd   :  { %1259 = vmatpush1.bf16.msra.mxu0 %v4633_v27  ;;  %3482 = vmatpush3.bf16.msra.mxu1 %v4408_v43  ;;  %v3789_v43 = vld [vmem:[#allocation9 + $0x4] ss:$12 sps:$4 sm:$0xff]  }
 0x6be   :  { %1260 = vmatprep.subr.bf16.mxu0 %v4637_v33  ;;  %3483 = vmatprep.subr.bf16.mxu1 %v5362_v35 }
 0x6bf   :  { %1290 = vmatprep.mubr.bf16.mxu0 %v5360_v0  ;;  %3497 = vmatprep.mubr.msk.bf16.mxu1 %vm4185_vm0, %v5362_v35 }
 0x6c1   :  { %1261 = vmatpush1.bf16.msra.mxu0 %v4644_v34  ;;  %3484 = vmatpush3.bf16.msra.mxu1 %v4416_v44  ;;  %v3790_v44 = vld [vmem:[#allocation9 + $0x8] ss:$12 sps:$4 sm:$0xff]  }
 0x6c2   :  { %1262 = vmatprep.subr.bf16.mxu0 %v4648_v36  ;;  %3485 = vmatprep.subr.bf16.mxu1 %v5362_v35 }
 0x6c5   :  { %1263 = vmatpush1.bf16.msra.mxu0 %v4652_v37  ;;  %3486 = vmatpush3.bf16.msra.mxu1 %v4422_v45 }
 0x6c6   :  { %1264 = vmatprep.subr.bf16.mxu0 %v4656_v38  ;;  %3487 = vmatprep.subr.bf16.mxu1 %v5362_v35 }
 0x6c9   :  { %1265 = vmatpush1.bf16.msra.mxu0 %v4660_v39  ;;  %3488 = vmatpush3.bf16.msra.mxu1 %v4426_v46 }
 0x6ca   :  { %1266 = vmatprep.subr.bf16.mxu0 %v4664_v40  ;;  %3489 = vmatprep.subr.bf16.mxu1 %v5362_v35 }
 0x6cd   :  { %1267 = vmatpush1.bf16.msra.mxu0 %v4712_v9  ;;  %3490 = vmatpush3.bf16.msra.mxu1 %v4430_v47 }
 0x6ce   :  { %1268 = vmatprep.subr.bf16.mxu0 %v4716_v12  ;;  %3491 = vmatprep.subr.bf16.mxu1 %v5362_v35 }
 0x6d1   :  { %1269 = vmatpush1.bf16.msra.mxu0 %v4720_v15  ;;  %3492 = vmatpush3.bf16.msra.mxu1 %v4434_v48 }
 0x6d2   :  { %1270 = vmatprep.subr.bf16.mxu0 %v4724_v16  ;;  %3493 = vmatprep.subr.bf16.mxu1 %v5362_v35 }
 0x6d5   :  { %1271 = vmatpush1.bf16.msra.mxu0 %v4728_v20  ;;  %3494 = vmatpush3.bf16.msra.mxu1 %v4438_v49 }
 0x6d6   :  { %1272 = vmatprep.subr.bf16.mxu0 %v4732_v23  ;;  %3495 = vmatprep.subr.bf16.mxu1 %v5362_v35 }
 0x6d9   :  { %1273 = vmatpush1.bf16.msra.mxu0 %v4736_v24  ;;  %3496 = vmatpush3.bf16.msra.mxu1 %v4442_v50 }
 0x6da   :  { %1590 = vmatprep.subr.bf16.mxu0 %v3789_v43  ;;  %3501 = vmatprep.subr.bf16.mxu1 %v3790_v44  ;;  %v1411_v43 = vpack.c.bf16 %v4629_v3, %v4583_v42  ;;  %v4810_v42 = vld [vmem:[#allocation10 + $0x1c] ss:$12 sps:$4 sm:$0xff]   ;;  %v4812_v3 = vld [vmem:[#allocation10 + $0x18] ss:$12 sps:$4 sm:$0xff]  }
 0x78f   :  { %v1187_v45 = vpop.f32.mrb[24].mxu0  ;;  %v1228_v46 = vpop.f32.mrb[32].mxu1 }
 0x790   :  { %v1234_v47 = vadd.f32 %v1187_v45, %v4474_v1  ;;  %v1189_v48 = vpop.f32.mrb[25].mxu0  ;;  %v3479_v27 = vpop.f32.mrb[33].mxu1  ;;  %v1248_v12 = vadd.f32 %v4487_v31, %v1228_v46  ;;  %v3794_v31 = vld [vmem:[#allocation9 + $0x20] ss:$12 sps:$4 sm:$0xff]   ;;  %v4804_v45 = vld [vmem:[#allocation10 + $0x4] ss:$12 sps:$4 sm:$0xff]  }
 0x791   :  { %v1191_v33 = vpop.f32.mrb[26].mxu0  ;;  %v1231_v49 = vpop.f32.mrb[34].mxu1  ;;  %v1241_v38 = vadd.f32 %v1189_v48, %v4480_v19  ;;  %v4806_v46 = vld [vmem:[#allocation10] ss:$12 sps:$4 sm:$0xff]   ;;  %v4824_v48 = vld [vmem:[#allocation10 + $0x48] ss:$12 sps:$4 sm:$0xff]  }
 0x792   :  { %v3066_v34 = vmul.f32 -1.442695, %v1234_v47  ;;  %v1192_v36 = vpop.f32.mrb[27].mxu0  ;;  %v3480_v37 = vpop.f32.mrb[35].mxu1  ;;  %v4822_v47 = vld [vmem:[#allocation10 + $0x4c] ss:$12 sps:$4 sm:$0xff]  }
 0x793   :  { %v3067_v39 = vmul.f32 -1.442695, %v1241_v38  ;;  %v4828_v27 = vld [vmem:[#allocation10 + $0x64] ss:$12 sps:$4 sm:$0xff]   ;;  %v4830_v33 = vld [vmem:[#allocation10 + $0x60] ss:$12 sps:$4 sm:$0xff]  }
 0x794   :  { %3919 = vpow2.f32 %v3066_v34  ;;  %v4834_v49 = vld [vmem:[#allocation10 + $0x7c] ss:$12 sps:$4 sm:$0xff]   ;;  %v4836_v34 = vld [vmem:[#allocation10 + $0x78] ss:$12 sps:$4 sm:$0xff]   ;;  %v4840_v36 = vld [vmem:[#allocation10 + $0x94] ss:$12 sps:$4 sm:$0xff]  }
 0x795   :  { %3921 = vpow2.f32 %v3067_v39  ;;  %v4842_v37 = vld [vmem:[#allocation10 + $0x8] ss:$12 sps:$4 sm:$0xff]   ;;  %v4844_v38 = vld [vmem:[#allocation10 + $0x90] ss:$12 sps:$4 sm:$0xff]   ;;  %v4846_v39 = vld [vmem:[#allocation10 + $0xac] ss:$12 sps:$4 sm:$0xff]  }
 0x79e   :  { %v3920_v50 = vpop.eup %3919 }
 0x79f   :  { %v1238_v40 = vadd.f32 1.0, %v3920_v50  ;;  %v3922_v9 = vpop.eup %3921  ;;  %v4850_v50 = vld [vmem:[#allocation10 + $0x20] ss:$12 sps:$4 sm:$0xff]  }
 0x7a0   :  { %v1245_v23 = vadd.f32 1.0, %v3922_v9  ;;  %v4860_v9 = vld [vmem:[#allocation10 + $0x38] ss:$12 sps:$4 sm:$0xff]  }
 0x7a1   :  { %3923 = vrcp.f32 %v1238_v40  ;;  %v4854_v40 = vld [vmem:[#allocation10 + $0xa8] ss:$12 sps:$4 sm:$0xff]  }
 0x7ab   :  { %v3924_v15 = vpop.eup %3923 }
 0x7ac   :  { %v1249_v16 = vmul.f32 %v3924_v15, %v1248_v12  ;;  %v4864_v12 = vld [vmem:[#allocation10 + $0x50] ss:$12 sps:$4 sm:$0xff]   ;;  %v4868_v15 = vld [vmem:[#allocation10 + $0x68] ss:$12 sps:$4 sm:$0xff]  }
 0x7ae   :  { %v1250_v20 = vadd.f32 %v1249_v16, %v4492_v41  ;;  %v4872_v16 = vld [vmem:[#allocation10 + $0x80] ss:$12 sps:$4 sm:$0xff]  }
 0x7b0   :  { %3925 = vtanh.f32 %v1250_v20  ;;  %v4876_v20 = vld [vmem:[#allocation10 + $0x98] ss:$12 sps:$4 sm:$0xff]  }
 0x7b1   :  { %3927 = vrcp.f32 %v1245_v23  ;;  %v4880_v23 = vld [vmem:[#allocation10 + $0xb0] ss:$12 sps:$4 sm:$0xff]  }
 0x7ba   :  { %v3926_v24 = vpop.eup %3925 }
 0x7bb   :  { %v1252_v21 = vsub.f32 %v4747_v2, %v3926_v24  ;;  %v3928_v22 = vpop.eup %3927 }
 0x7bd   :  { %v1253_v25 = vmul.f32 %v3928_v22, %v1252_v21 }
 0x7bf   :  { %v4789_v26 = vadd.f32 %v3926_v24, %v1253_v25 }
 0x7c1   :  { %v1257_v51 = vpack.c.bf16 %v4789_v26, %v4789_v26 }
 0x7c3   :  { %1291 = vmatmul.mubr.bf16.vlgmr.msra.gmra.mrb[28].mxu0 %v1257_v51  ;;  %3498 = vmatmul.mubr.bf16.vlgmr.msra.gmra.mrb[36].mxu1 %v1257_v51 }
 0x7c4   :  { %1591 = vmatpush1.bf16.msra.mxu0 %v3787_v29  ;;  %3502 = vmatpush3.bf16.msra.mxu1 %v3790_v44  ;;  %v1412_v44 = vpack.c.bf16 %v4747_v2, %v4689_v5  ;;  %v4816_v5 = vld [vmem:[#allocation10 + $0x34] ss:$12 sps:$4 sm:$0xff]   ;;  %v4818_v2 = vld [vmem:[#allocation10 + $0x30] ss:$12 sps:$4 sm:$0xff]  }
 0x7c5   :  { %3517 = vmatprep.mubr.bf16.mxu1 %v1410_v8  ;;  %1592 = vmatprep.subr.bf16.mxu0 %v3793_v7 }
 0x7c6   :  { %3503 = vmatprep.subr.bf16.mxu1 %v3794_v31  ;;  %1622 = vmatprep.mubr.bf16.mxu0 %v5360_v0 }
 0x7c8   :  { %1593 = vmatpush1.bf16.msra.mxu0 %v3791_v30  ;;  %3504 = vmatpush3.bf16.msra.mxu1 %v3794_v31 }
 0x7c9   :  { %1594 = vmatprep.subr.bf16.mxu0 %v3797_v11  ;;  %3505 = vmatprep.subr.bf16.mxu1 %v3798_v32 }
 0x7cc   :  { %1595 = vmatpush1.bf16.msra.mxu0 %v3795_v13  ;;  %3506 = vmatpush3.bf16.msra.mxu1 %v3798_v32 }
 0x7cd   :  { %1596 = vmatprep.subr.bf16.mxu0 %v3801_v14  ;;  %3507 = vmatprep.subr.bf16.mxu1 %v3802_v17 }
 0x7d0   :  { %1597 = vmatpush1.bf16.msra.mxu0 %v3799_v58  ;;  %3508 = vmatpush3.bf16.msra.mxu1 %v3802_v17 }
 0x7d1   :  { %1598 = vmatprep.subr.bf16.mxu0 %v3805_v54  ;;  %3509 = vmatprep.subr.bf16.mxu1 %v3806_v4 }
 0x7d4   :  { %1599 = vmatpush1.bf16.msra.mxu0 %v3803_v18  ;;  %3510 = vmatpush3.bf16.msra.mxu1 %v3806_v4 }
 0x7d5   :  { %1600 = vmatprep.subr.bf16.mxu0 %v3809_v52  ;;  %3511 = vmatprep.subr.bf16.mxu1 %v3810_v53 }
 0x7d8   :  { %1601 = vmatpush1.bf16.msra.mxu0 %v3807_v55  ;;  %3512 = vmatpush3.bf16.msra.mxu1 %v3810_v53 }
 0x7d9   :  { %1602 = vmatprep.subr.bf16.mxu0 %v3813_v56  ;;  %3513 = vmatprep.subr.bf16.mxu1 %v3814_v57 }
 0x7dc   :  { %1603 = vmatpush1.bf16.msra.mxu0 %v3811_v59  ;;  %3514 = vmatpush3.bf16.msra.mxu1 %v3814_v57 }
 0x7dd   :  { %1604 = vmatprep.subr.bf16.mxu0 %v3817_v62  ;;  %3515 = vmatprep.subr.bf16.mxu1 %v3818_v63 }
 0x7e0   :  { %1605 = vmatpush1.bf16.msra.mxu0 %v3815_v6  ;;  %3516 = vmatpush3.bf16.msra.mxu1 %v3818_v63 }
 0x7e1   :  { %3525 = vmatprep.subr.bf16.mxu1 %v5362_v35  ;;  %1886 = vmatprep.subr.bf16.mxu0 %v4804_v45 }
 0x7e3   :  { %1623 = vmatmul.mubr.bf16.vlgmr.msra.gmra.mrb[32].mxu0 %v1410_v8  ;;  %3518 = vmatmul.mubr.bf16.vlgmr.msra.gmra.mrb[40].mxu1 %v1411_v43 }
 0x7e4   :  { %3521 = vmatprep.mubr.bf16.mxu1 %v1412_v44  ;;  %1632 = vmatprep.mubr.bf16.mxu0 %v5360_v0 }
 0x7e5   :  { %1887 = vmatpush1.bf16.msra.mxu0 %v4806_v46  ;;  %3526 = vmatpush3.bf16.msra.mxu1 %v4842_v37 }
 0x7e6   :  { %1888 = vmatprep.subr.bf16.mxu0 %v4810_v42  ;;  %3527 = vmatprep.subr.bf16.mxu1 %v5362_v35 }
 0x7e9   :  { %1889 = vmatpush1.bf16.msra.mxu0 %v4812_v3  ;;  %3528 = vmatpush3.bf16.msra.mxu1 %v4850_v50 }
 0x7ea   :  { %1890 = vmatprep.subr.bf16.mxu0 %v4816_v5  ;;  %3529 = vmatprep.subr.bf16.mxu1 %v5362_v35 }
 0x7eb   :  { %1633 = vmatmul.mubr.bf16.gmra.mrb[36].mxu0 %v1411_v43 }
 0x7ec   :  { %1642 = vmatprep.mubr.bf16.mxu0 %v5360_v0 }
 0x7ed   :  { %1891 = vmatpush1.bf16.msra.mxu0 %v4818_v2  ;;  %3530 = vmatpush3.bf16.msra.mxu1 %v4860_v9 }
 0x7ee   :  { %1892 = vmatprep.subr.bf16.mxu0 %v4822_v47  ;;  %3531 = vmatprep.subr.bf16.mxu1 %v5362_v35 }
 0x7f1   :  { %1893 = vmatpush1.bf16.msra.mxu0 %v4824_v48  ;;  %3532 = vmatpush3.bf16.msra.mxu1 %v4864_v12 }
 0x7f2   :  { %1894 = vmatprep.subr.bf16.mxu0 %v4828_v27  ;;  %3533 = vmatprep.subr.bf16.mxu1 %v5362_v35 }
 0x7f3   :  { %1643 = vmatmul.mubr.bf16.gmra.mrb[40].mxu0 %v1412_v44 }
 0x7f4   :  { %1652 = vmatprep.mubr.bf16.mxu0 %v5360_v0 }
 0x7f5   :  { %1895 = vmatpush1.bf16.msra.mxu0 %v4830_v33  ;;  %3534 = vmatpush3.bf16.msra.mxu1 %v4868_v15 }
 0x7f6   :  { %1896 = vmatprep.subr.bf16.mxu0 %v4834_v49  ;;  %3535 = vmatprep.subr.bf16.mxu1 %v5362_v35 }
 0x7f9   :  { %1897 = vmatpush1.bf16.msra.mxu0 %v4836_v34  ;;  %3536 = vmatpush3.bf16.msra.mxu1 %v4872_v16 }
 0x7fa   :  { %1898 = vmatprep.subr.bf16.mxu0 %v4840_v36  ;;  %3537 = vmatprep.subr.bf16.mxu1 %v5362_v35 }
 0x7fd   :  { %1899 = vmatpush1.bf16.msra.mxu0 %v4844_v38  ;;  %3538 = vmatpush3.bf16.msra.mxu1 %v4876_v20 }
 0x7fe   :  { %1900 = vmatprep.subr.bf16.mxu0 %v4846_v39  ;;  %3539 = vmatprep.subr.bf16.mxu1 %v5362_v35 }
 0x801   :  { %1901 = vmatpush1.bf16.msra.mxu0 %v4854_v40  ;;  %3540 = vmatpush3.bf16.msra.mxu1 %v4880_v23 }
 0x802   :  { %1996 = vmatprep.subr.bf16.mxu0 %v4804_v45  ;;  %3545 = vmatprep.subr.bf16.mxu1 %v5362_v35 }
 0x896   :  { %v1292_v24 = vpop.f32.mrb[28].mxu0  ;;  %v1333_v21 = vpop.f32.mrb[36].mxu1 }
 0x897   :  { %v1339_v22 = vadd.f32 %v1292_v24, %v4474_v1  ;;  %v1294_v25 = vpop.f32.mrb[29].mxu0  ;;  %v3499_v29 = vpop.f32.mrb[37].mxu1  ;;  %v4035_v1 = vld [vmem:[%s5352_s5] ss:$0 sm:$0xff] }
 0x898   :  { %v1296_v51 = vpop.f32.mrb[30].mxu0  ;;  %v1336_v7 = vpop.f32.mrb[38].mxu1  ;;  %v1346_v11 = vadd.f32 %v1294_v25, %v4480_v19  ;;  %v1353_v58 = vadd.f32 %v4035_v1, %v1333_v21 }
 0x899   :  { %v3068_v31 = vmul.f32 -1.442695, %v1339_v22  ;;  %v1297_v8 = vpop.f32.mrb[31].mxu0  ;;  %v3500_v30 = vpop.f32.mrb[39].mxu1 }
 0x89a   :  { %v3069_v32 = vmul.f32 -1.442695, %v1346_v11 }
 0x89b   :  { %3929 = vpow2.f32 %v3068_v31 }
 0x89c   :  { %3931 = vpow2.f32 %v3069_v32 }
 0x8a5   :  { %v3930_v13 = vpop.eup %3929 }
 0x8a6   :  { %v1343_v14 = vadd.f32 1.0, %v3930_v13  ;;  %v3932_v17 = vpop.eup %3931 }
 0x8a7   :  { %v1350_v52 = vadd.f32 1.0, %v3932_v17 }
 0x8a8   :  { %3933 = vrcp.f32 %v1343_v14 }
 0x8b2   :  { %v3934_v54 = vpop.eup %3933 }
 0x8b3   :  { %v1354_v4 = vmul.f32 %v3934_v54, %v1353_v58 }
 0x8b5   :  { %v1355_v18 = vadd.f32 %v1354_v4, %v4492_v41 }
 0x8b6   :  { %v4891_v53 = vpop.f32.mrb[32].mxu0  ;;  %v4893_v55 = vpop.f32.mrb[40].mxu1 }
 0x8b7   :  { %3935 = vtanh.f32 %v1355_v18  ;;  %v4895_v19 = vpop.f32.mrb[33].mxu0  ;;  %v4897_v56 = vpop.f32.mrb[41].mxu1 }
 0x8b8   :  { %v4899_v57 = vpop.f32.mrb[34].mxu0  ;;  %v4901_v59 = vpop.f32.mrb[42].mxu1  ;;  %3937 = vrcp.f32 %v1350_v52 }
 0x8b9   :  { %v4903_v62 = vpop.f32.mrb[35].mxu0  ;;  %v4905_v63 = vpop.f32.mrb[43].mxu1 }
 0x8be   :  { %v4907_v41 = vpop.f32.mrb[36].mxu0 }
 0x8bf   :  { %v4909_v6 = vpop.f32.mrb[37].mxu0 }
 0x8c0   :  { %v4911_v43 = vpop.f32.mrb[38].mxu0 }
 0x8c1   :  { %v3936_v44 = vpop.eup %3935  ;;  %v4913_v24 = vpop.f32.mrb[39].mxu0 }
 0x8c2   :  { %v1357_v21 = vsub.f32 %v4789_v26, %v3936_v44  ;;  %v3938_v22 = vpop.eup %3937 }
 0x8c4   :  { %v1358_v25 = vmul.f32 %v3938_v22, %v1357_v21 }
 0x8c6   :  { %v4916_v29 = vpop.f32.mrb[40].mxu0  ;;  %v1359_v51 = vadd.f32 %v3936_v44, %v1358_v25 }
 0x8c7   :  { %v4918_v7 = vpop.f32.mrb[41].mxu0 }
 0x8c8   :  { %v4920_v31 = vpop.f32.mrb[42].mxu0  ;;  %v1413_v8 = vpack.c.bf16 %v1359_v51, %v4789_v26  ;;  %v1394_v26 = vld [vmem:[%s5355_s8] sm:$0x7] }
 0x8c9   :  { %v4923_v30 = vpop.f32.mrb[43].mxu0  ;;  %v4982_v58 = vrot.slane %v1394_v26, %v174_v61  ;;  %v4990_v18 = vrot.slane %v1394_v26, %v178_v10 }
 0x8ca   :  { %1653 = vmatmul.mubr.bf16.gmra.mrb[44].mxu0 %v1413_v8  ;;  %3522 = vmatmul.mubr.bf16.gmra.mrb[44].mxu1 %v1413_v8 }
 0x8cb   :  { %1918 = vmatprep.mubr.bf16.mxu0 %v5360_v0  ;;  %3541 = vmatprep.mubr.msk.bf16.mxu1 %vm4185_vm0, %v5362_v35  ;;  %v1625_v52 = vadd.f32 %v4891_v53, %v4982_v58  ;;  %v1627_v44 = vadd.f32 %v4895_v19, %v4990_v18  ;;  %v4999_v53 = vld [vmem:[%s5356_s9] ss:$0 sm:$0xff]  ;;  %v5370_v19 = vsub.s32 2, %v4466_v60 }
 0x8d2   :  { %1919 = vmatmul.mubr.bf16.vlgmr.msra.gmra.mrb[48].mxu0 %v5360_v0  ;;  %3542 = vmatmul.mubr.bf16.vlgmr.msra.gmra.mrb[48].mxu1 %v5360_v0 }
 0x8d3   :  { %1997 = vmatpush1.bf16.msra.mxu0 %v4806_v46  ;;  %3546 = vmatpush3.bf16.msra.mxu1 %v4842_v37 }
 0x8d4   :  { %1998 = vmatprep.subr.bf16.mxu0 %v4810_v42  ;;  %3547 = vmatprep.subr.bf16.mxu1 %v5362_v35 }
 0x8d5   :  { %2028 = vmatprep.mubr.bf16.mxu0 %v5360_v0  ;;  %3561 = vmatprep.mubr.msk.bf16.mxu1 %vm4185_vm0, %v5362_v35 }
 0x8d7   :  { %1999 = vmatpush1.bf16.msra.mxu0 %v4812_v3  ;;  %3548 = vmatpush3.bf16.msra.mxu1 %v4850_v50 }
 0x8d8   :  { %2000 = vmatprep.subr.bf16.mxu0 %v4816_v5  ;;  %3549 = vmatprep.subr.bf16.mxu1 %v5362_v35 }
 0x8db   :  { %2001 = vmatpush1.bf16.msra.mxu0 %v4818_v2  ;;  %3550 = vmatpush3.bf16.msra.mxu1 %v4860_v9 }
 0x8dc   :  { %2002 = vmatprep.subr.bf16.mxu0 %v4822_v47  ;;  %3551 = vmatprep.subr.bf16.mxu1 %v5362_v35 }
 0x8df   :  { %2003 = vmatpush1.bf16.msra.mxu0 %v4824_v48  ;;  %3552 = vmatpush3.bf16.msra.mxu1 %v4864_v12 }
 0x8e0   :  { %2004 = vmatprep.subr.bf16.mxu0 %v4828_v27  ;;  %3553 = vmatprep.subr.bf16.mxu1 %v5362_v35 }
 0x8e3   :  { %2005 = vmatpush1.bf16.msra.mxu0 %v4830_v33  ;;  %3554 = vmatpush3.bf16.msra.mxu1 %v4868_v15 }
 0x8e4   :  { %2006 = vmatprep.subr.bf16.mxu0 %v4834_v49  ;;  %3555 = vmatprep.subr.bf16.mxu1 %v5362_v35 }
 0x8e7   :  { %2007 = vmatpush1.bf16.msra.mxu0 %v4836_v34  ;;  %3556 = vmatpush3.bf16.msra.mxu1 %v4872_v16 }
 0x8e8   :  { %2008 = vmatprep.subr.bf16.mxu0 %v4840_v36  ;;  %3557 = vmatprep.subr.bf16.mxu1 %v5362_v35 }
 0x8eb   :  { %2009 = vmatpush1.bf16.msra.mxu0 %v4844_v38  ;;  %3558 = vmatpush3.bf16.msra.mxu1 %v4876_v20 }
 0x8ec   :  { %2010 = vmatprep.subr.bf16.mxu0 %v4846_v39  ;;  %3559 = vmatprep.subr.bf16.mxu1 %v5362_v35 }
 0x8ef   :  { %2011 = vmatpush1.bf16.msra.mxu0 %v4854_v40  ;;  %3560 = vmatpush3.bf16.msra.mxu1 %v4880_v23 }
 0x8f0   :  { %2106 = vmatprep.subr.bf16.mxu0 %v4804_v45  ;;  %3565 = vmatprep.subr.bf16.mxu1 %v5362_v35 }
 0x99d   :  { %v4968_v11 = vpop.f32.mrb[44].mxu0  ;;  %v4970_v32 = vpop.f32.mrb[44].mxu1 }
 0x99e   :  { %5365 = vst [vmem:[#allocation17_spill] sm:$0xff] %v4970_v32  ;;  %v4972_v13 = vpop.f32.mrb[45].mxu0  ;;  %v4974_v14 = vpop.f32.mrb[45].mxu1 }
 0x99f   :  { %5366 = vst [vmem:[#allocation18_spill] sm:$0xff] %v4972_v13  ;;  %v4976_v17 = vpop.f32.mrb[46].mxu0  ;;  %v4978_v1 = vpop.f32.mrb[46].mxu1 }
 0x9a0   :  { %5367 = vst [vmem:[#allocation19_spill] sm:$0xff] %v4976_v17  ;;  %5368 = vst [vmem:[#allocation20_spill] sm:$0xff] %v4978_v1  ;;  %v4984_v54 = vpop.f32.mrb[47].mxu0  ;;  %v4986_v4 = vpop.f32.mrb[47].mxu1 }
 0x9a1   :  { %5369 = vst [vmem:[#allocation21_spill] sm:$0xff] %v4984_v54 }
 0x9a5   :  { %v1920_v21 = vpop.f32.mrb[48].mxu0  ;;  %v1961_v22 = vpop.f32.mrb[48].mxu1 }
 0x9a6   :  { %v1967_v25 = vadd.f32 %v1920_v21, %v1625_v52  ;;  %v1922_v51 = vpop.f32.mrb[49].mxu0  ;;  %v3543_v61 = vpop.f32.mrb[49].mxu1  ;;  %v5003_v52 = vrot.slane %v1394_v26, %v5370_v19  ;;  %v5372_v26 = vmov 0  }
 0x9a7   :  { %v1974_v8 = vadd.f32 %v1922_v51, %v1627_v44  ;;  %v1924_v0 = vpop.f32.mrb[50].mxu0  ;;  %v1964_v35 = vpop.f32.mrb[50].mxu1 }
 0x9a8   :  { %v3119_v28 = vmul.f32 -1.442695, %v1967_v25  ;;  %v1925_v1 = vpop.f32.mrb[51].mxu0  ;;  %v3544_v54 = vpop.f32.mrb[51].mxu1  ;;  %v1981_v0 = vadd.f32 %v4999_v53, %v1961_v22  ;;  %v1629_v22 = vadd.f32 %v4899_v57, %v4982_v58 }
 0x9a9   :  { %v3120_v10 = vmul.f32 -1.442695, %v1974_v8  ;;  %v1631_v8 = vadd.f32 %v4903_v62, %v4990_v18 }
 0x9aa   :  { %3939 = vpow2.f32 %v3119_v28  ;;  %v1698_v28 = vadd.f32 %v4897_v56, %v5003_v52  ;;  %v5371_v56 = vmov 0.0  }
 0x9ab   :  { %3941 = vpow2.f32 %v3120_v10 }
 0x9b4   :  { %v3940_v17 = vpop.eup %3939 }
 0x9b5   :  { %v1971_v32 = vadd.f32 1.0, %v3940_v17  ;;  %v3942_v35 = vpop.eup %3941 }
 0x9b6   :  { %v1978_v17 = vadd.f32 1.0, %v3942_v35 }
 0x9b7   :  { %3943 = vrcp.f32 %v1971_v32 }
 0x9c1   :  { %v3944_v1 = vpop.eup %3943 }
 0x9c2   :  { %v1982_v54 = vmul.f32 %v3944_v1, %v1981_v0 }
 0x9c4   :  { %v1983_v44 = vadd.f32 %v1982_v54, %v1698_v28 }
 0x9c6   :  { %3945 = vtanh.f32 %v1983_v44 }
 0x9c7   :  { %3947 = vrcp.f32 %v1978_v17 }
 0x9d0   :  { %v3946_v32 = vpop.eup %3945 }
 0x9d1   :  { %v1985_v21 = vsub.f32 0.0, %v3946_v32  ;;  %v3948_v25 = vpop.eup %3947 }
 0x9d3   :  { %v1986_v51 = vmul.f32 %v3948_v25, %v1985_v21 }
 0x9d5   :  { %v5008_v61 = vadd.f32 %v3946_v32, %v1986_v51 }
 0x9d7   :  { %v1995_v60 = vpack.c.bf16 %v5008_v61, %v5008_v61 }
 0x9d9   :  { %2029 = vmatmul.mubr.bf16.vlgmr.msra.gmra.mrb[52].mxu0 %v1995_v60  ;;  %3562 = vmatmul.mubr.bf16.vlgmr.msra.gmra.mrb[52].mxu1 %v1995_v60 }
 0x9da   :  { %2107 = vmatpush1.bf16.msra.mxu0 %v4806_v46  ;;  %3566 = vmatpush3.bf16.msra.mxu1 %v4842_v37 }
 0x9db   :  { %2108 = vmatprep.subr.bf16.mxu0 %v4810_v42  ;;  %3567 = vmatprep.subr.bf16.mxu1 %v5371_v56 }
 0x9dc   :  { %2138 = vmatprep.mubr.bf16.mxu0 %v5372_v26  ;;  %3581 = vmatprep.mubr.msk.bf16.mxu1 %vm4185_vm0, %v5371_v56 }
 0x9de   :  { %2109 = vmatpush1.bf16.msra.mxu0 %v4812_v3  ;;  %3568 = vmatpush3.bf16.msra.mxu1 %v4850_v50 }
 0x9df   :  { %2110 = vmatprep.subr.bf16.mxu0 %v4816_v5  ;;  %3569 = vmatprep.subr.bf16.mxu1 %v5371_v56 }
 0x9e2   :  { %2111 = vmatpush1.bf16.msra.mxu0 %v4818_v2  ;;  %3570 = vmatpush3.bf16.msra.mxu1 %v4860_v9 }
 0x9e3   :  { %2112 = vmatprep.subr.bf16.mxu0 %v4822_v47  ;;  %3571 = vmatprep.subr.bf16.mxu1 %v5371_v56 }
 0x9e6   :  { %2113 = vmatpush1.bf16.msra.mxu0 %v4824_v48  ;;  %3572 = vmatpush3.bf16.msra.mxu1 %v4864_v12 }
 0x9e7   :  { %2114 = vmatprep.subr.bf16.mxu0 %v4828_v27  ;;  %3573 = vmatprep.subr.bf16.mxu1 %v5371_v56 }
 0x9ea   :  { %2115 = vmatpush1.bf16.msra.mxu0 %v4830_v33  ;;  %3574 = vmatpush3.bf16.msra.mxu1 %v4868_v15 }
 0x9eb   :  { %2116 = vmatprep.subr.bf16.mxu0 %v4834_v49  ;;  %3575 = vmatprep.subr.bf16.mxu1 %v5371_v56 }
 0x9ee   :  { %2117 = vmatpush1.bf16.msra.mxu0 %v4836_v34  ;;  %3576 = vmatpush3.bf16.msra.mxu1 %v4872_v16 }
 0x9ef   :  { %2118 = vmatprep.subr.bf16.mxu0 %v4840_v36  ;;  %3577 = vmatprep.subr.bf16.mxu1 %v5371_v56 }
 0x9f2   :  { %2119 = vmatpush1.bf16.msra.mxu0 %v4844_v38  ;;  %3578 = vmatpush3.bf16.msra.mxu1 %v4876_v20 }
 0x9f3   :  { %2120 = vmatprep.subr.bf16.mxu0 %v4846_v39  ;;  %3579 = vmatprep.subr.bf16.mxu1 %v5371_v56 }
 0x9f6   :  { %2121 = vmatpush1.bf16.msra.mxu0 %v4854_v40  ;;  %3580 = vmatpush3.bf16.msra.mxu1 %v4880_v23 }
 0x9f7   :  { %2216 = vmatprep.subr.bf16.mxu0 %v4804_v45  ;;  %3585 = vmatprep.subr.bf16.mxu1 %v5371_v56 }
 0xaac   :  { %v2030_v10 = vpop.f32.mrb[52].mxu0  ;;  %v2071_v19 = vpop.f32.mrb[52].mxu1 }
 0xaad   :  { %v2077_v0 = vadd.f32 %v2030_v10, %v1629_v22  ;;  %v2032_v35 = vpop.f32.mrb[53].mxu0  ;;  %v3563_v1 = vpop.f32.mrb[53].mxu1  ;;  %v2091_v62 = vadd.f32 %v4999_v53, %v2071_v19  ;;  %v1701_v22 = vadd.f32 %v4905_v63, %v5003_v52  ;;  %v1635_v63 = vadd.f32 %v4907_v41, %v4982_v58 }
 0xaae   :  { %v2084_v28 = vadd.f32 %v2032_v35, %v1631_v8  ;;  %v2034_v54 = vpop.f32.mrb[54].mxu0  ;;  %v2074_v17 = vpop.f32.mrb[54].mxu1 }
 0xaaf   :  { %v3121_v44 = vmul.f32 -1.442695, %v2077_v0  ;;  %v2035_v32 = vpop.f32.mrb[55].mxu0  ;;  %v3564_v21 = vpop.f32.mrb[55].mxu1 }
 0xab0   :  { %v3122_v25 = vmul.f32 -1.442695, %v2084_v28 }
 0xab1   :  { %3949 = vpow2.f32 %v3121_v44 }
 0xab2   :  { %3951 = vpow2.f32 %v3122_v25 }
 0xabb   :  { %v3950_v51 = vpop.eup %3949 }
 0xabc   :  { %v2081_v60 = vadd.f32 1.0, %v3950_v51  ;;  %v3952_v57 = vpop.eup %3951 }
 0xabd   :  { %v2088_v35 = vadd.f32 1.0, %v3952_v57 }
 0xabe   :  { %3953 = vrcp.f32 %v2081_v60 }
 0xac8   :  { %v3954_v13 = vpop.eup %3953 }
 0xac9   :  { %v2092_v10 = vmul.f32 %v3954_v13, %v2091_v62  ;;  %v1637_v13 = vadd.f32 %v4909_v6, %v4990_v18 }
 0xacb   :  { %v2093_v8 = vadd.f32 %v2092_v10, %v1701_v22 }
 0xacd   :  { %3955 = vtanh.f32 %v2093_v8 }
 0xace   :  { %3957 = vrcp.f32 %v2088_v35 }
 0xad7   :  { %v3956_v0 = vpop.eup %3955 }
 0xad8   :  { %v2095_v1 = vsub.f32 %v5008_v61, %v3956_v0  ;;  %v3958_v28 = vpop.eup %3957 }
 0xada   :  { %v2096_v54 = vmul.f32 %v3958_v28, %v2095_v1 }
 0xadc   :  { %v5055_v17 = vadd.f32 %v3956_v0, %v2096_v54  ;;  %v1706_v54 = vadd.f32 %v4893_v55, %v5003_v52  ;;  %v1639_v55 = vadd.f32 %v4911_v43, %v4982_v58 }
 0xade   :  { %v2105_v44 = vpack.c.bf16 %v5055_v17, %v5055_v17 }
 0xae0   :  { %2139 = vmatmul.mubr.bf16.vlgmr.msra.gmra.mrb[56].mxu0 %v2105_v44  ;;  %3582 = vmatmul.mubr.bf16.vlgmr.msra.gmra.mrb[56].mxu1 %v2105_v44 }
 0xae1   :  { %2217 = vmatpush1.bf16.msra.mxu0 %v4806_v46  ;;  %3586 = vmatpush3.bf16.msra.mxu1 %v4842_v37 }
 0xae2   :  { %2218 = vmatprep.subr.bf16.mxu0 %v4810_v42  ;;  %3587 = vmatprep.subr.bf16.mxu1 %v5371_v56 }
 0xae3   :  { %2248 = vmatprep.mubr.bf16.mxu0 %v5372_v26  ;;  %3601 = vmatprep.mubr.msk.bf16.mxu1 %vm4185_vm0, %v5371_v56 }
 0xae5   :  { %2219 = vmatpush1.bf16.msra.mxu0 %v4812_v3  ;;  %3588 = vmatpush3.bf16.msra.mxu1 %v4850_v50 }
 0xae6   :  { %2220 = vmatprep.subr.bf16.mxu0 %v4816_v5  ;;  %3589 = vmatprep.subr.bf16.mxu1 %v5371_v56 }
 0xae9   :  { %2221 = vmatpush1.bf16.msra.mxu0 %v4818_v2  ;;  %3590 = vmatpush3.bf16.msra.mxu1 %v4860_v9 }
 0xaea   :  { %2222 = vmatprep.subr.bf16.mxu0 %v4822_v47  ;;  %3591 = vmatprep.subr.bf16.mxu1 %v5371_v56 }
 0xaed   :  { %2223 = vmatpush1.bf16.msra.mxu0 %v4824_v48  ;;  %3592 = vmatpush3.bf16.msra.mxu1 %v4864_v12 }
 0xaee   :  { %2224 = vmatprep.subr.bf16.mxu0 %v4828_v27  ;;  %3593 = vmatprep.subr.bf16.mxu1 %v5371_v56 }
 0xaf1   :  { %2225 = vmatpush1.bf16.msra.mxu0 %v4830_v33  ;;  %3594 = vmatpush3.bf16.msra.mxu1 %v4868_v15 }
 0xaf2   :  { %2226 = vmatprep.subr.bf16.mxu0 %v4834_v49  ;;  %3595 = vmatprep.subr.bf16.mxu1 %v5371_v56 }
 0xaf5   :  { %2227 = vmatpush1.bf16.msra.mxu0 %v4836_v34  ;;  %3596 = vmatpush3.bf16.msra.mxu1 %v4872_v16 }
 0xaf6   :  { %2228 = vmatprep.subr.bf16.mxu0 %v4840_v36  ;;  %3597 = vmatprep.subr.bf16.mxu1 %v5371_v56 }
 0xaf9   :  { %2229 = vmatpush1.bf16.msra.mxu0 %v4844_v38  ;;  %3598 = vmatpush3.bf16.msra.mxu1 %v4876_v20 }
 0xafa   :  { %2230 = vmatprep.subr.bf16.mxu0 %v4846_v39  ;;  %3599 = vmatprep.subr.bf16.mxu1 %v5371_v56 }
 0xafd   :  { %2231 = vmatpush1.bf16.msra.mxu0 %v4854_v40  ;;  %3600 = vmatpush3.bf16.msra.mxu1 %v4880_v23 }
 0xafe   :  { %2326 = vmatprep.subr.bf16.mxu0 %v4804_v45  ;;  %3605 = vmatprep.subr.bf16.mxu1 %v5371_v56 }
 0xbb3   :  { %v2140_v19 = vpop.f32.mrb[56].mxu0  ;;  %v2181_v32 = vpop.f32.mrb[56].mxu1 }
 0xbb4   :  { %v2187_v21 = vadd.f32 %v2140_v19, %v1635_v63  ;;  %v2142_v25 = vpop.f32.mrb[57].mxu0  ;;  %v3583_v51 = vpop.f32.mrb[57].mxu1  ;;  %v2201_v6 = vadd.f32 %v4999_v53, %v2181_v32  ;;  %v1641_v32 = vadd.f32 %v4913_v24, %v4990_v18 }
 0xbb5   :  { %v2194_v60 = vadd.f32 %v2142_v25, %v1637_v13  ;;  %v2144_v57 = vpop.f32.mrb[58].mxu0  ;;  %v2184_v62 = vpop.f32.mrb[58].mxu1 }
 0xbb6   :  { %v3123_v22 = vmul.f32 -1.442695, %v2187_v21  ;;  %v2145_v10 = vpop.f32.mrb[59].mxu0  ;;  %v3584_v8 = vpop.f32.mrb[59].mxu1 }
 0xbb7   :  { %v3124_v35 = vmul.f32 -1.442695, %v2194_v60 }
 0xbb8   :  { %3959 = vpow2.f32 %v3123_v22 }
 0xbb9   :  { %3961 = vpow2.f32 %v3124_v35 }
 0xbc2   :  { %v3960_v0 = vpop.eup %3959 }
 0xbc3   :  { %v2191_v1 = vadd.f32 1.0, %v3960_v0  ;;  %v3962_v41 = vpop.eup %3961 }
 0xbc4   :  { %v2198_v13 = vadd.f32 1.0, %v3962_v41 }
 0xbc5   :  { %3963 = vrcp.f32 %v2191_v1 }
 0xbcf   :  { %v3964_v28 = vpop.eup %3963 }
 0xbd0   :  { %v2202_v44 = vmul.f32 %v3964_v28, %v2201_v6 }
 0xbd2   :  { %v2203_v63 = vadd.f32 %v2202_v44, %v1706_v54 }
 0xbd4   :  { %3965 = vtanh.f32 %v2203_v63 }
 0xbd5   :  { %3967 = vrcp.f32 %v2198_v13 }
 0xbde   :  { %v3966_v19 = vpop.eup %3965 }
 0xbdf   :  { %v2205_v21 = vsub.f32 %v5055_v17, %v3966_v19  ;;  %v3968_v25 = vpop.eup %3967 }
 0xbe1   :  { %v2206_v51 = vmul.f32 %v3968_v25, %v2205_v21  ;;  %v1709_v21 = vadd.f32 %v4901_v59, %v5003_v52  ;;  %v1645_v59 = vadd.f32 %v4916_v29, %v4982_v58 }
 0xbe3   :  { %v5102_v60 = vadd.f32 %v3966_v19, %v2206_v51 }
 0xbe5   :  { %v2215_v57 = vpack.c.bf16 %v5102_v60, %v5102_v60 }
 0xbe7   :  { %2249 = vmatmul.mubr.bf16.vlgmr.msra.gmra.mrb[60].mxu0 %v2215_v57  ;;  %3602 = vmatmul.mubr.bf16.vlgmr.msra.gmra.mrb[60].mxu1 %v2215_v57 }
 0xbe8   :  { %2327 = vmatpush1.bf16.msra.mxu0 %v4806_v46  ;;  %3606 = vmatpush3.bf16.msra.mxu1 %v4842_v37 }
 0xbe9   :  { %2328 = vmatprep.subr.bf16.mxu0 %v4810_v42  ;;  %3607 = vmatprep.subr.bf16.mxu1 %v5371_v56 }
 0xbea   :  { %2358 = vmatprep.mubr.bf16.mxu0 %v5372_v26  ;;  %3621 = vmatprep.mubr.msk.bf16.mxu1 %vm4185_vm0, %v5371_v56 }
 0xbec   :  { %2329 = vmatpush1.bf16.msra.mxu0 %v4812_v3  ;;  %3608 = vmatpush3.bf16.msra.mxu1 %v4850_v50 }
 0xbed   :  { %2330 = vmatprep.subr.bf16.mxu0 %v4816_v5  ;;  %3609 = vmatprep.subr.bf16.mxu1 %v5371_v56 }
 0xbf0   :  { %2331 = vmatpush1.bf16.msra.mxu0 %v4818_v2  ;;  %3610 = vmatpush3.bf16.msra.mxu1 %v4860_v9 }
 0xbf1   :  { %2332 = vmatprep.subr.bf16.mxu0 %v4822_v47  ;;  %3611 = vmatprep.subr.bf16.mxu1 %v5371_v56 }
 0xbf4   :  { %2333 = vmatpush1.bf16.msra.mxu0 %v4824_v48  ;;  %3612 = vmatpush3.bf16.msra.mxu1 %v4864_v12 }
 0xbf5   :  { %2334 = vmatprep.subr.bf16.mxu0 %v4828_v27  ;;  %3613 = vmatprep.subr.bf16.mxu1 %v5371_v56 }
 0xbf8   :  { %2335 = vmatpush1.bf16.msra.mxu0 %v4830_v33  ;;  %3614 = vmatpush3.bf16.msra.mxu1 %v4868_v15 }
 0xbf9   :  { %2336 = vmatprep.subr.bf16.mxu0 %v4834_v49  ;;  %3615 = vmatprep.subr.bf16.mxu1 %v5371_v56 }
 0xbfc   :  { %2337 = vmatpush1.bf16.msra.mxu0 %v4836_v34  ;;  %3616 = vmatpush3.bf16.msra.mxu1 %v4872_v16 }
 0xbfd   :  { %2338 = vmatprep.subr.bf16.mxu0 %v4840_v36  ;;  %3617 = vmatprep.subr.bf16.mxu1 %v5371_v56 }
 0xc00   :  { %2339 = vmatpush1.bf16.msra.mxu0 %v4844_v38  ;;  %3618 = vmatpush3.bf16.msra.mxu1 %v4876_v20 }
 0xc01   :  { %2340 = vmatprep.subr.bf16.mxu0 %v4846_v39  ;;  %3619 = vmatprep.subr.bf16.mxu1 %v5371_v56 }
 0xc04   :  { %2341 = vmatpush1.bf16.msra.mxu0 %v4854_v40  ;;  %3620 = vmatpush3.bf16.msra.mxu1 %v4880_v23 }
 0xc05   :  { %2436 = vmatprep.subr.bf16.mxu0 %v4804_v45  ;;  %3625 = vmatprep.subr.bf16.mxu1 %v5371_v56 }
 0xcba   :  { %v2250_v62 = vpop.f32.mrb[60].mxu0  ;;  %v2291_v22 = vpop.f32.mrb[60].mxu1 }
 0xcbb   :  { %v2297_v10 = vadd.f32 %v2250_v62, %v1639_v55  ;;  %v2252_v8 = vpop.f32.mrb[61].mxu0  ;;  %v3603_v35 = vpop.f32.mrb[61].mxu1  ;;  %v2311_v24 = vadd.f32 %v4999_v53, %v2291_v22  ;;  %v1647_v22 = vadd.f32 %v4918_v7, %v4990_v18 }
 0xcbc   :  { %v2304_v0 = vadd.f32 %v2252_v8, %v1641_v32  ;;  %v2254_v1 = vpop.f32.mrb[62].mxu0  ;;  %v2294_v41 = vpop.f32.mrb[62].mxu1 }
 0xcbd   :  { %v3125_v6 = vmul.f32 -1.442695, %v2297_v10  ;;  %v2255_v28 = vpop.f32.mrb[63].mxu0  ;;  %v3604_v54 = vpop.f32.mrb[63].mxu1 }
 0xcbe   :  { %v3126_v44 = vmul.f32 -1.442695, %v2304_v0 }
 0xcbf   :  { %3969 = vpow2.f32 %v3125_v6 }
 0xcc0   :  { %3971 = vpow2.f32 %v3126_v44 }
 0xcc9   :  { %v3970_v63 = vpop.eup %3969 }
 0xcca   :  { %v2301_v13 = vadd.f32 1.0, %v3970_v63  ;;  %v3972_v43 = vpop.eup %3971 }
 0xccb   :  { %v2308_v57 = vadd.f32 1.0, %v3972_v43 }
 0xccc   :  { %3973 = vrcp.f32 %v2301_v13 }
 0xcd6   :  { %v3974_v19 = vpop.eup %3973 }
 0xcd7   :  { %v2312_v25 = vmul.f32 %v3974_v19, %v2311_v24 }
 0xcd9   :  { %v2313_v51 = vadd.f32 %v2312_v25, %v1709_v21 }
 0xcdb   :  { %3975 = vtanh.f32 %v2313_v51 }
 0xcdc   :  { %3977 = vrcp.f32 %v2308_v57  ;;  %v1714_v57 = vadd.f32 %v4974_v14, %v5003_v52 }
 0xce5   :  { %v3976_v55 = vpop.eup %3975 }
 0xce6   :  { %v2315_v32 = vsub.f32 %v5102_v60, %v3976_v55  ;;  %v3978_v62 = vpop.eup %3977 }
 0xce8   :  { %v2316_v10 = vmul.f32 %v3978_v62, %v2315_v32 }
 0xcea   :  { %v5149_v8 = vadd.f32 %v3976_v55, %v2316_v10 }
 0xcec   :  { %v2325_v35 = vpack.c.bf16 %v5149_v8, %v5149_v8 }
 0xcee   :  { %2359 = vmatmul.mubr.bf16.vlgmr.msra.gmra.mrb[64].mxu0 %v2325_v35  ;;  %3622 = vmatmul.mubr.bf16.vlgmr.msra.gmra.mrb[64].mxu1 %v2325_v35 }
 0xcef   :  { %2437 = vmatpush1.bf16.msra.mxu0 %v4806_v46  ;;  %3626 = vmatpush3.bf16.msra.mxu1 %v4842_v37 }
 0xcf0   :  { %2438 = vmatprep.subr.bf16.mxu0 %v4810_v42  ;;  %3627 = vmatprep.subr.bf16.mxu1 %v5371_v56 }
 0xcf1   :  { %2468 = vmatprep.mubr.bf16.mxu0 %v5372_v26  ;;  %3641 = vmatprep.mubr.msk.bf16.mxu1 %vm4185_vm0, %v5371_v56 }
 0xcf3   :  { %2439 = vmatpush1.bf16.msra.mxu0 %v4812_v3  ;;  %3628 = vmatpush3.bf16.msra.mxu1 %v4850_v50 }
 0xcf4   :  { %2440 = vmatprep.subr.bf16.mxu0 %v4816_v5  ;;  %3629 = vmatprep.subr.bf16.mxu1 %v5371_v56 }
 0xcf7   :  { %2441 = vmatpush1.bf16.msra.mxu0 %v4818_v2  ;;  %3630 = vmatpush3.bf16.msra.mxu1 %v4860_v9 }
 0xcf8   :  { %2442 = vmatprep.subr.bf16.mxu0 %v4822_v47  ;;  %3631 = vmatprep.subr.bf16.mxu1 %v5371_v56 }
 0xcfb   :  { %2443 = vmatpush1.bf16.msra.mxu0 %v4824_v48  ;;  %3632 = vmatpush3.bf16.msra.mxu1 %v4864_v12 }
 0xcfc   :  { %2444 = vmatprep.subr.bf16.mxu0 %v4828_v27  ;;  %3633 = vmatprep.subr.bf16.mxu1 %v5371_v56 }
 0xcff   :  { %2445 = vmatpush1.bf16.msra.mxu0 %v4830_v33  ;;  %3634 = vmatpush3.bf16.msra.mxu1 %v4868_v15 }
 0xd00   :  { %2446 = vmatprep.subr.bf16.mxu0 %v4834_v49  ;;  %3635 = vmatprep.subr.bf16.mxu1 %v5371_v56 }
 0xd03   :  { %2447 = vmatpush1.bf16.msra.mxu0 %v4836_v34  ;;  %3636 = vmatpush3.bf16.msra.mxu1 %v4872_v16 }
 0xd04   :  { %2448 = vmatprep.subr.bf16.mxu0 %v4840_v36  ;;  %3637 = vmatprep.subr.bf16.mxu1 %v5371_v56 }
 0xd07   :  { %2449 = vmatpush1.bf16.msra.mxu0 %v4844_v38  ;;  %3638 = vmatpush3.bf16.msra.mxu1 %v4876_v20 }
 0xd08   :  { %2450 = vmatprep.subr.bf16.mxu0 %v4846_v39  ;;  %3639 = vmatprep.subr.bf16.mxu1 %v5371_v56 }
 0xd0b   :  { %2451 = vmatpush1.bf16.msra.mxu0 %v4854_v40  ;;  %3640 = vmatpush3.bf16.msra.mxu1 %v4880_v23 }
 0xd0c   :  { %2546 = vmatprep.subr.bf16.mxu0 %v4804_v45  ;;  %3645 = vmatprep.subr.bf16.mxu1 %v5371_v56 }
 0xdc1   :  { %v2360_v0 = vpop.f32.mrb[64].mxu0  ;;  %v2401_v1 = vpop.f32.mrb[64].mxu1 }
 0xdc2   :  { %v2407_v41 = vadd.f32 %v2360_v0, %v1645_v59  ;;  %v2362_v6 = vpop.f32.mrb[65].mxu0  ;;  %v3623_v28 = vpop.f32.mrb[65].mxu1  ;;  %v2421_v7 = vadd.f32 %v4999_v53, %v2401_v1 }
 0xdc3   :  { %v2414_v54 = vadd.f32 %v2362_v6, %v1647_v22  ;;  %v2364_v44 = vpop.f32.mrb[66].mxu0  ;;  %v2404_v63 = vpop.f32.mrb[66].mxu1  ;;  %v4036_v28 = vld [vmem:[#allocation10] ss:$12 sps:$4 sm:$0xff]  }
 0xdc4   :  { %v3127_v13 = vmul.f32 -1.442695, %v2407_v41  ;;  %v2365_v43 = vpop.f32.mrb[67].mxu0  ;;  %v3624_v24 = vpop.f32.mrb[67].mxu1  ;;  %v4039_v44 = vld [vmem:[#allocation10 + $0x18] ss:$12 sps:$4 sm:$0xff]  }
 0xdc5   :  { %v3128_v19 = vmul.f32 -1.442695, %v2414_v54  ;;  %v4038_v54 = vld [vmem:[#allocation10 + $0x1c] ss:$12 sps:$4 sm:$0xff]   ;;  %v4040_v63 = vld [vmem:[#allocation10 + $0x20] ss:$12 sps:$4 sm:$0xff]  }
 0xdc6   :  { %3979 = vpow2.f32 %v3127_v13  ;;  %v4041_v13 = vld [vmem:[#allocation10 + $0x34] ss:$12 sps:$4 sm:$0xff]   ;;  %v4042_v43 = vld [vmem:[#allocation10 + $0x30] ss:$12 sps:$4 sm:$0xff]   ;;  %v4043_v24 = vld [vmem:[#allocation10 + $0x38] ss:$12 sps:$4 sm:$0xff]  }
 0xdc7   :  { %3981 = vpow2.f32 %v3128_v19  ;;  %v4044_v19 = vld [vmem:[#allocation10 + $0x4c] ss:$12 sps:$4 sm:$0xff]  }
 0xdd0   :  { %v3980_v21 = vpop.eup %3979 }
 0xdd1   :  { %v2411_v25 = vadd.f32 1.0, %v3980_v21  ;;  %v3982_v29 = vpop.eup %3981  ;;  %v4046_v21 = vld [vmem:[#allocation10 + $0x50] ss:$12 sps:$4 sm:$0xff]  }
 0xdd2   :  { %v2418_v62 = vadd.f32 1.0, %v3982_v29  ;;  %v4048_v29 = vld [vmem:[#allocation10 + $0x60] ss:$12 sps:$4 sm:$0xff]  }
 0xdd3   :  { %3983 = vrcp.f32 %v2411_v25  ;;  %v4047_v25 = vld [vmem:[#allocation10 + $0x64] ss:$12 sps:$4 sm:$0xff]  }
 0xddd   :  { %v3984_v51 = vpop.eup %3983 }
 0xdde   :  { %v2422_v55 = vmul.f32 %v3984_v51, %v2421_v7  ;;  %v4049_v7 = vld [vmem:[#allocation10 + $0x68] ss:$12 sps:$4 sm:$0xff]  }
 0xddf   :  { %v4050_v51 = vld [vmem:[#allocation10 + $0x7c] ss:$12 sps:$4 sm:$0xff]  }
 0xde0   :  { %v2423_v32 = vadd.f32 %v2422_v55, %v1714_v57  ;;  %v4051_v57 = vld [vmem:[#allocation10 + $0x78] ss:$12 sps:$4 sm:$0xff]   ;;  %v4052_v55 = vld [vmem:[#allocation10 + $0x80] ss:$12 sps:$4 sm:$0xff]  }
 0xde2   :  { %3985 = vtanh.f32 %v2423_v32  ;;  %v4053_v32 = vld [vmem:[#allocation10 + $0x94] ss:$12 sps:$4 sm:$0xff]  }
 0xde3   :  { %3987 = vrcp.f32 %v2418_v62  ;;  %v4054_v62 = vld [vmem:[#allocation10 + $0x90] ss:$12 sps:$4 sm:$0xff]  }
 0xdec   :  { %v3986_v10 = vpop.eup %3985 }
 0xded   :  { %v2425_v35 = vsub.f32 %v5149_v8, %v3986_v10  ;;  %v3988_v59 = vpop.eup %3987 }
 0xdef   :  { %v2426_v22 = vmul.f32 %v3988_v59, %v2425_v35  ;;  %v4056_v35 = vld [vmem:[#allocation10 + $0xac] ss:$12 sps:$4 sm:$0xff]   ;;  %v4057_v59 = vld [vmem:[#allocation10 + $0xa8] ss:$12 sps:$4 sm:$0xff]  }
 0xdf1   :  { %v5196_v0 = vadd.f32 %v3986_v10, %v2426_v22  ;;  %v4055_v10 = vld [vmem:[#allocation10 + $0x98] ss:$12 sps:$4 sm:$0xff]   ;;  %v4058_v22 = vld [vmem:[#allocation10 + $0xb0] ss:$12 sps:$4 sm:$0xff]  }
 0xdf3   :  { %v2435_v41 = vpack.c.bf16 %v5196_v0, %v5196_v0 }
 0xdf5   :  { %2469 = vmatmul.mubr.bf16.vlgmr.msra.gmra.mrb[68].mxu0 %v2435_v41  ;;  %3642 = vmatmul.mubr.bf16.vlgmr.msra.gmra.mrb[68].mxu1 %v2435_v41  ;;  %v3851_v41 = vld [vmem:[%s5357_s10] sm:$0xff]  }
 0xdf6   :  { %2547 = vmatpush1.bf16.msra.mxu0 %v4806_v46  ;;  %3646 = vmatpush3.bf16.msra.mxu1 %v4842_v37  ;;  %v1649_v46 = vadd.f32 %v4920_v31, %v4982_v58 }
 0xdf7   :  { %2548 = vmatprep.subr.bf16.mxu0 %v4810_v42  ;;  %3647 = vmatprep.subr.bf16.mxu1 %v5371_v56  ;;  %v1651_v42 = vadd.f32 %v4923_v30, %v4990_v18 }
 0xdf8   :  { %2578 = vmatprep.mubr.bf16.mxu0 %v5372_v26  ;;  %3661 = vmatprep.mubr.msk.bf16.mxu1 %vm4185_vm0, %v5371_v56 }
 0xdfa   :  { %2549 = vmatpush1.bf16.msra.mxu0 %v4812_v3  ;;  %3648 = vmatpush3.bf16.msra.mxu1 %v4850_v50 }
 0xdfb   :  { %2550 = vmatprep.subr.bf16.mxu0 %v4816_v5  ;;  %3649 = vmatprep.subr.bf16.mxu1 %v5371_v56 }
 0xdfe   :  { %2551 = vmatpush1.bf16.msra.mxu0 %v4818_v2  ;;  %3650 = vmatpush3.bf16.msra.mxu1 %v4860_v9 }
 0xdff   :  { %2552 = vmatprep.subr.bf16.mxu0 %v4822_v47  ;;  %3651 = vmatprep.subr.bf16.mxu1 %v5371_v56 }
 0xe02   :  { %2553 = vmatpush1.bf16.msra.mxu0 %v4824_v48  ;;  %3652 = vmatpush3.bf16.msra.mxu1 %v4864_v12  ;;  %v1717_v12 = vadd.f32 %v4986_v4, %v5003_v52  ;;  %v4037_v4 = vld [vmem:[#allocation10 + $0x8] ss:$12 sps:$4 sm:$0xff]  }
 0xe03   :  { %2554 = vmatprep.subr.bf16.mxu0 %v4828_v27  ;;  %3653 = vmatprep.subr.bf16.mxu1 %v5371_v56 }
 0xe06   :  { %2555 = vmatpush1.bf16.msra.mxu0 %v4830_v33  ;;  %3654 = vmatpush3.bf16.msra.mxu1 %v4868_v15 }
 0xe07   :  { %2556 = vmatprep.subr.bf16.mxu0 %v4834_v49  ;;  %3655 = vmatprep.subr.bf16.mxu1 %v5371_v56 }
 0xe0a   :  { %2557 = vmatpush1.bf16.msra.mxu0 %v4836_v34  ;;  %3656 = vmatpush3.bf16.msra.mxu1 %v4872_v16 }
 0xe0b   :  { %2558 = vmatprep.subr.bf16.mxu0 %v4840_v36  ;;  %3657 = vmatprep.subr.bf16.mxu1 %v5371_v56 }
 0xe0e   :  { %2559 = vmatpush1.bf16.msra.mxu0 %v4844_v38  ;;  %3658 = vmatpush3.bf16.msra.mxu1 %v4876_v20 }
 0xe0f   :  { %2560 = vmatprep.subr.bf16.mxu0 %v4846_v39  ;;  %3659 = vmatprep.subr.bf16.mxu1 %v5371_v56 }
 0xe12   :  { %2561 = vmatpush1.bf16.msra.mxu0 %v4854_v40  ;;  %3660 = vmatpush3.bf16.msra.mxu1 %v4880_v23 }
 0xe13   :  { %2656 = vmatprep.subr.bf16.mxu0 %v4804_v45  ;;  %3665 = vmatprep.subr.bf16.mxu1 %v5371_v56 }
 0xec8   :  { %v2470_v3 = vpop.f32.mrb[68].mxu0  ;;  %v2511_v5 = vpop.f32.mrb[68].mxu1 }
 0xec9   :  { %v2517_v2 = vadd.f32 %v2470_v3, %v1649_v46  ;;  %v2472_v47 = vpop.f32.mrb[69].mxu0  ;;  %v3643_v48 = vpop.f32.mrb[69].mxu1  ;;  %v2531_v40 = vadd.f32 %v4999_v53, %v2511_v5  ;;  %v2902_v46 = vld [vmem:[%s5348_s1 + $0x10] sm:$0xff]  ;;  %v2901_v3 = vld [vmem:[%s5348_s1 + $0x8] sm:$0xff]  ;;  %v1655_v5 = vadd.f32 %v4968_v11, %v4982_v58 }
 0xeca   :  { %v2524_v27 = vadd.f32 %v2472_v47, %v1651_v42  ;;  %v2474_v33 = vpop.f32.mrb[70].mxu0  ;;  %v2514_v49 = vpop.f32.mrb[70].mxu1  ;;  %v2900_v42 = vld [vmem:[%s5348_s1] sm:$0xff]  ;;  %2920 = vperm.xlu1 %3722, %v2902_v46  }
 0xecb   :  { %v3129_v34 = vmul.f32 -1.442695, %v2517_v2  ;;  %v2475_v36 = vpop.f32.mrb[71].mxu0  ;;  %v3644_v37 = vpop.f32.mrb[71].mxu1  ;;  %2910 = vperm.xlu0 %3721, %v2900_v42   ;;  %v5373_v2 = vld [vmem:[#allocation18_spill] sm:$0xff] }
 0xecc   :  { %v3130_v45 = vmul.f32 -1.442695, %v2524_v27  ;;  %v1657_v47 = vadd.f32 %v5373_v2, %v4990_v18 }
 0xecd   :  { %3989 = vpow2.f32 %v3129_v34 }
 0xece   :  { %3991 = vpow2.f32 %v3130_v45 }
 0xecf   :  { %2915 = vperm.xlu0 %3721, %v2901_v3  }
 0xed7   :  { %v3990_v38 = vpop.eup %3989 }
 0xed8   :  { %v2521_v39 = vadd.f32 1.0, %v3990_v38  ;;  %v3992_v50 = vpop.eup %3991 }
 0xed9   :  { %v2528_v20 = vadd.f32 1.0, %v3992_v50 }
 0xeda   :  { %3993 = vrcp.f32 %v2521_v39 }
 0xee4   :  { %v3994_v9 = vpop.eup %3993 }
 0xee5   :  { %v2532_v15 = vmul.f32 %v3994_v9, %v2531_v40 }
 0xee7   :  { %v2533_v16 = vadd.f32 %v2532_v15, %v1717_v12 }
 0xee9   :  { %3995 = vtanh.f32 %v2533_v16 }
 0xeea   :  { %3997 = vrcp.f32 %v2528_v20  ;;  %v5374_v20 = vld [vmem:[#allocation17_spill] sm:$0xff] }
 0xef3   :  { %v3996_v23 = vpop.eup %3995 }
 0xef4   :  { %v2535_v31 = vsub.f32 %v5196_v0, %v3996_v23  ;;  %v3998_v30 = vpop.eup %3997 }
 0xef6   :  { %v2536_v14 = vmul.f32 %v3998_v30, %v2535_v31 }
 0xef8   :  { %v5243_v1 = vadd.f32 %v3996_v23, %v2536_v14  ;;  %v1722_v23 = vadd.f32 %v5374_v20, %v5003_v52 }
 0xefa   :  { %v2545_v6 = vpack.c.bf16 %v5243_v1, %v5243_v1 }
 0xefc   :  { %2579 = vmatmul.mubr.bf16.vlgmr.msra.gmra.mrb[72].mxu0 %v2545_v6  ;;  %3662 = vmatmul.mubr.bf16.vlgmr.msra.gmra.mrb[72].mxu1 %v2545_v6 }
 0xefd   :  { %2657 = vmatpush1.bf16.msra.mxu0 %v4036_v28  ;;  %3666 = vmatpush3.bf16.msra.mxu1 %v4037_v4 }
 0xefe   :  { %2658 = vmatprep.subr.bf16.mxu0 %v4038_v54  ;;  %3667 = vmatprep.subr.bf16.mxu1 %v5371_v56 }
 0xeff   :  { %2688 = vmatprep.mubr.bf16.mxu0 %v5372_v26  ;;  %3681 = vmatprep.mubr.msk.bf16.mxu1 %vm4185_vm0, %v5371_v56  ;;  %v4045_v26 = vld [vmem:[#allocation10 + $0x48] ss:$12 sps:$4 sm:$0xff]  }
 0xf01   :  { %2659 = vmatpush1.bf16.msra.mxu0 %v4039_v44  ;;  %3668 = vmatpush3.bf16.msra.mxu1 %v4040_v63 }
 0xf02   :  { %2660 = vmatprep.subr.bf16.mxu0 %v4041_v13  ;;  %3669 = vmatprep.subr.bf16.mxu1 %v5371_v56  ;;  %v3852_v13 = vld [vmem:[%s5357_s10 + $0x8] sm:$0xff]  }
 0xf05   :  { %2661 = vmatpush1.bf16.msra.mxu0 %v4042_v43  ;;  %3670 = vmatpush3.bf16.msra.mxu1 %v4043_v24  ;;  %v2767_v43 = vpack.c.bf16 %v5055_v17, %v5008_v61  ;;  %v3853_v24 = vld [vmem:[%s5357_s10 + $0x10] sm:$0xff]   ;;  %v3855_v61 = vld [vmem:[%s5357_s10 + $0x20] sm:$0xff]   ;;  %v3856_v17 = vld [vmem:[%s5357_s10 + $0x28] sm:$0xff]  }
 0xf06   :  { %2662 = vmatprep.subr.bf16.mxu0 %v4044_v19  ;;  %3671 = vmatprep.subr.bf16.mxu1 %v5371_v56  ;;  %v3854_v19 = vld [vmem:[%s5357_s10 + $0x18] sm:$0xff]  }
 0xf09   :  { %2663 = vmatpush1.bf16.msra.mxu0 %v4045_v26  ;;  %3672 = vmatpush3.bf16.msra.mxu1 %v4046_v21  ;;  %v3857_v26 = vld [vmem:[%s5357_s10 + $0x30] sm:$0xff]   ;;  %v3858_v21 = vld [vmem:[%s5357_s10 + $0x38] sm:$0xff]  }
 0xf0a   :  { %2664 = vmatprep.subr.bf16.mxu0 %v4047_v25  ;;  %3673 = vmatprep.subr.bf16.mxu1 %v5371_v56  ;;  %v2768_v25 = vpack.c.bf16 %v5149_v8, %v5102_v60  ;;  %v2906_v60 = vld [vmem:[%s5348_s1 + $0x30] sm:$0xff] }
 0xf0b   :  { %v5375_v8 = vld [vmem:[#allocation19_spill] sm:$0xff] }
 0xf0d   :  { %2665 = vmatpush1.bf16.msra.mxu0 %v4048_v29  ;;  %3674 = vmatpush3.bf16.msra.mxu1 %v4049_v7  ;;  %v2769_v29 = vpack.c.bf16 %v5243_v1, %v5196_v0  ;;  %v2905_v7 = vld [vmem:[%s5348_s1 + $0x28] sm:$0xff]  ;;  %v1659_v0 = vadd.f32 %v5375_v8, %v4982_v58 }
 0xf0e   :  { %2666 = vmatprep.subr.bf16.mxu0 %v4050_v51  ;;  %3675 = vmatprep.subr.bf16.mxu1 %v5371_v56  ;;  %v2904_v51 = vld [vmem:[%s5348_s1 + $0x20] sm:$0xff] }
 0xf0f   :  { %2930 = vperm.xlu0 %3721, %v2904_v51  }
 0xf11   :  { %2667 = vmatpush1.bf16.msra.mxu0 %v4051_v57  ;;  %3676 = vmatpush3.bf16.msra.mxu1 %v4052_v55  ;;  %v2907_v57 = vld [vmem:[%s5348_s1 + $0x38] sm:$0xff] }
 0xf12   :  { %2668 = vmatprep.subr.bf16.mxu0 %v4053_v32  ;;  %3677 = vmatprep.subr.bf16.mxu1 %v5371_v56 }
 0xf13   :  { %2940 = vperm.xlu0 %3721, %v2906_v60  }
 0xf15   :  { %2669 = vmatpush1.bf16.msra.mxu0 %v4054_v62  ;;  %3678 = vmatpush3.bf16.msra.mxu1 %v4055_v10 }
 0xf16   :  { %2670 = vmatprep.subr.bf16.mxu0 %v4056_v35  ;;  %3679 = vmatprep.subr.bf16.mxu1 %v5371_v56  ;;  %v2903_v56 = vld [vmem:[%s5348_s1 + $0x18] sm:$0xff] }
 0xf17   :  { %2925 = vperm.xlu1 %3722, %v2903_v56  }
 0xf19   :  { %2671 = vmatpush1.bf16.msra.mxu0 %v4057_v59  ;;  %3680 = vmatpush3.bf16.msra.mxu1 %v4058_v22 }
 0xf1a   :  { %3685 = vmatprep.subr.bf16.mxu0 %v3851_v41 }
 0xf1b   :  { %2935 = vperm.xlu1 %3722, %v2905_v7  }
 0xf1f   :  { %2945 = vperm.xlu1 %3722, %v2907_v57  }
 0xf49   :  { %v2921_v58 = vpop.permute.xlu1 %2920 }
 0xfcf   :  { %v2580_v48 = vpop.f32.mrb[72].mxu0  ;;  %v2621_v27 = vpop.f32.mrb[72].mxu1 }
 0xfd0   :  { %v2627_v33 = vadd.f32 %v2580_v48, %v1655_v5  ;;  %v2582_v49 = vpop.f32.mrb[73].mxu0  ;;  %v3663_v34 = vpop.f32.mrb[73].mxu1  ;;  %v2641_v15 = vadd.f32 %v4999_v53, %v2621_v27 }
 0xfd1   :  { %v2634_v36 = vadd.f32 %v2582_v49, %v1657_v47  ;;  %v2584_v37 = vpop.f32.mrb[74].mxu0  ;;  %v2624_v45 = vpop.f32.mrb[74].mxu1  ;;  %v5377_v49 = vld [vmem:[#allocation20_spill] sm:$0xff] }
 0xfd2   :  { %v3131_v38 = vmul.f32 -1.442695, %v2627_v33  ;;  %v2585_v39 = vpop.f32.mrb[75].mxu0  ;;  %v3664_v50 = vpop.f32.mrb[75].mxu1  ;;  %v1725_v34 = vadd.f32 %v5377_v49, %v5003_v52 }
 0xfd3   :  { %v3132_v40 = vmul.f32 -1.442695, %v2634_v36  ;;  %v2911_v27 = vpop.permute.xlu0 %2910  ;;  %v3143_v39 = vld [vmem:[%s5358_s11] ss:$0 sm:$0xff]  ;;  %v2926_v50 = vpop.permute.xlu1 %2925  ;;  %s4186_s11 = smov [#allocation12]  }
 0xfd4   :  { %3999 = vpow2.f32 %v3131_v38  ;;  %s2984_s27 = sshll.u32 %s4186_s11, 4  ;;  %s2985_s27 = int_to_ptr.vmem [resolvable:$true] %s2984_s27 }
 0xfd5   :  { %4001 = vpow2.f32 %v3132_v40  ;;  %s4147_s28 = scalar_lea.vmem %s2985_s27, 1024  ;;  %p4152_p5 = scmp.lt.s32.totalorder %s2985_s27, %s2985_s27 }
 0xfd6   :  { %p4148_p4 = scmp.ne.s32.totalorder %s2985_s27, %s4147_s28  ;;  %p4153_p6 = scmp.lt.s32.totalorder %s4147_s28, %s4147_s28 }
 0xfd8   :  { %p4154_p7 = por %p4153_p6, %p4152_p5 }
 0xfda   :  { %p4155_p8 = pnand %p4154_p7, %p4148_p4 }
 0xfde   :  { %v4000_v9 = vpop.eup %3999 }
 0xfdf   :  { %v2631_v12 = vadd.f32 1.0, %v4000_v9  ;;  %v4002_v11 = vpop.eup %4001 }
 0xfe0   :  { %v2638_v14 = vadd.f32 1.0, %v4002_v11 }
 0xfe1   :  { %4003 = vrcp.f32 %v2631_v12  ;;  %v2916_v12 = vpop.permute.xlu0 %2915 }
 0xfeb   :  { %v4004_v16 = vpop.eup %4003 }
 0xfec   :  { %v2642_v31 = vmul.f32 %v4004_v16, %v2641_v15 }
 0xfee   :  { %v2643_v30 = vadd.f32 %v2642_v31, %v1722_v23 }
 0xff0   :  { %4005 = vtanh.f32 %v2643_v30 }
 0xff1   :  { %4007 = vrcp.f32 %v2638_v14 }
 0xffa   :  { %v4006_v6 = vpop.eup %4005 }
 0xffb   :  { %v2645_v28 = vsub.f32 %v5243_v1, %v4006_v6  ;;  %v4008_v4 = vpop.eup %4007  ;;  %v5376_v1 = vld [vmem:[#allocation21_spill] sm:$0xff] }
 0xffc   :  { %v1661_v55 = vadd.f32 %v5376_v1, %v4990_v18 }
 0xffd   :  { %v2646_v54 = vmul.f32 %v4008_v4, %v2645_v28 }
 0xfff   :  { %v5280_v44 = vadd.f32 %v4006_v6, %v2646_v54 }
0x1001   :  { %v2655_v63 = vpack.c.bf16 %v5280_v44, %v5280_v44 }
0x1003   :  { %2689 = vmatmul.mubr.bf16.vlgmr.msra.gmra.mrb[76].mxu0 %v2655_v63  ;;  %3682 = vmatmul.mubr.bf16.vlgmr.msra.gmra.mrb[76].mxu1 %v2655_v63 }
0x1004   :  { %3686 = vmatpush3.bf16.msra.mxu0 %v3851_v41  ;;  %3701 = vmatprep.mubr.bf16.mxu0 %v2767_v43  ;;  %v2936_v43 = vpop.permute.xlu1 %2935 }
0x1005   :  { %3687 = vmatprep.subr.bf16.mxu0 %v3852_v13 }
0x1008   :  { %3688 = vmatpush3.bf16.msra.mxu0 %v3852_v13  ;;  %v2931_v13 = vpop.permute.xlu0 %2930 }
0x1009   :  { %3689 = vmatprep.subr.bf16.mxu0 %v3853_v24 }
0x100c   :  { %3690 = vmatpush3.bf16.msra.mxu0 %v3853_v24  ;;  %v2941_v24 = vpop.permute.xlu0 %2940 }
0x100d   :  { %3691 = vmatprep.subr.bf16.mxu0 %v3854_v19 }
0x1010   :  { %3692 = vmatpush3.bf16.msra.mxu0 %v3854_v19 }
0x1011   :  { %3693 = vmatprep.subr.bf16.mxu0 %v3855_v61 }
0x1014   :  { %3694 = vmatpush3.bf16.msra.mxu0 %v3855_v61 }
0x1015   :  { %3695 = vmatprep.subr.bf16.mxu0 %v3856_v17 }
0x1018   :  { %3696 = vmatpush3.bf16.msra.mxu0 %v3856_v17 }
0x1019   :  { %3697 = vmatprep.subr.bf16.mxu0 %v3857_v26 }
0x101c   :  { %3698 = vmatpush3.bf16.msra.mxu0 %v3857_v26  ;;  %v2946_v26 = vpop.permute.xlu1 %2945 }
0x101d   :  { %3699 = vmatprep.subr.bf16.mxu0 %v3858_v21 }
0x1020   :  { %3700 = vmatpush3.bf16.msra.mxu0 %v3858_v21 }
0x1023   :  { %3702 = vmatmul.mubr.bf16.vlgmr.msra.gmra.mrb[80].mxu0 %v2768_v25 }
0x1024   :  { %3705 = vmatprep.mubr.bf16.mxu0 %v2769_v29 }
0x10d6   :  { %v2690_v32 = vpop.f32.mrb[76].mxu0  ;;  %v2731_v62 = vpop.f32.mrb[76].mxu1 }
0x10d7   :  { %v2737_v10 = vadd.f32 %v2690_v32, %v1659_v0  ;;  %v2692_v35 = vpop.f32.mrb[77].mxu0  ;;  %v3683_v59 = vpop.f32.mrb[77].mxu1  ;;  %v2751_v18 = vadd.f32 %v4999_v53, %v2731_v62 }
0x10d8   :  { %v2744_v22 = vadd.f32 %v2692_v35, %v1661_v55  ;;  %v2694_v41 = vpop.f32.mrb[78].mxu0  ;;  %v2734_v46 = vpop.f32.mrb[78].mxu1 }
0x10d9   :  { %v3133_v42 = vmul.f32 -1.442695, %v2737_v10  ;;  %v2695_v56 = vpop.f32.mrb[79].mxu0  ;;  %v3684_v3 = vpop.f32.mrb[79].mxu1 }
0x10da   :  { %v3134_v5 = vmul.f32 -1.442695, %v2744_v22 }
0x10db   :  { %4009 = vpow2.f32 %v3133_v42 }
0x10dc   :  { %4011 = vpow2.f32 %v3134_v5 }
0x10e5   :  { %v4010_v2 = vpop.eup %4009 }
0x10e6   :  { %v2741_v47 = vadd.f32 1.0, %v4010_v2  ;;  %v4012_v48 = vpop.eup %4011 }
0x10e7   :  { %v2748_v45 = vadd.f32 1.0, %v4012_v48 }
0x10e8   :  { %4013 = vrcp.f32 %v2741_v47 }
0x10f2   :  { %v4014_v33 = vpop.eup %4013 }
0x10f3   :  { %v2752_v36 = vmul.f32 %v4014_v33, %v2751_v18 }
0x10f5   :  { %v2753_v37 = vadd.f32 %v2752_v36, %v1725_v34 }
0x10f6   :  { %v3703_v38 = vpop.f32.mrb[80].mxu0 }
0x10f7   :  { %4015 = vtanh.f32 %v2753_v37  ;;  %v2950_v40 = vmul.f32 %v3703_v38, %v2921_v58  ;;  %v2869_v9 = vpop.f32.mrb[81].mxu0 }
0x10f8   :  { %v2948_v11 = vmul.f32 %v2911_v27, %v2869_v9  ;;  %v3704_v53 = vpop.f32.mrb[82].mxu0  ;;  %4017 = vrcp.f32 %v2748_v45 }
0x10f9   :  { %v2965_v15 = vadd.f32 %v3143_v39, %v2950_v40  ;;  %v2951_v16 = vmul.f32 %v3704_v53, %v2926_v50  ;;  %v2872_v20 = vpop.f32.mrb[83].mxu0 }
0x10fa   :  { %v2963_v52 = vadd.f32 %v3143_v39, %v2948_v11  ;;  %v2949_v23 = vmul.f32 %v2916_v12, %v2872_v20 }
0x10fb   :  { %2973 = vst [vmem:[#allocation12 + $0x10] sm:$0xff] %v2965_v15  ;;  %v2966_v31 = vadd.f32 %v3143_v39, %v2951_v16 }
0x10fc   :  { %2971 = vst [vmem:[#allocation12] sm:$0xff] %v2963_v52  ;;  %v2964_v30 = vadd.f32 %v3143_v39, %v2949_v23 }
0x10fd   :  { %2974 = vst [vmem:[#allocation12 + $0x18] sm:$0xff] %v2966_v31 }
0x10fe   :  { %2972 = vst [vmem:[#allocation12 + $0x8] sm:$0xff] %v2964_v30 }
0x1101   :  { %v4016_v14 = vpop.eup %4015 }
0x1102   :  { %v2755_v6 = vsub.f32 %v5280_v44, %v4016_v14  ;;  %v4018_v28 = vpop.eup %4017 }
0x1104   :  { %v2756_v4 = vmul.f32 %v4018_v28, %v2755_v6 }
0x1106   :  { %v2757_v54 = vadd.f32 %v4016_v14, %v2756_v4 }
0x1108   :  { %v2770_v63 = vpack.c.bf16 %v2757_v54, %v5280_v44 }
0x110a   :  { %3706 = vmatmul.mubr.bf16.gmra.mrb[84].mxu0 %v2770_v63 }
0x11dd   :  { %v3707_v19 = vpop.f32.mrb[84].mxu0 }
0x11de   :  { %v2954_v61 = vmul.f32 %v3707_v19, %v2941_v24  ;;  %v2885_v17 = vpop.f32.mrb[85].mxu0 }
0x11df   :  { %v2952_v21 = vmul.f32 %v2931_v13, %v2885_v17  ;;  %v3708_v25 = vpop.f32.mrb[86].mxu0 }
0x11e0   :  { %v2969_v29 = vadd.f32 %v3143_v39, %v2954_v61  ;;  %v2955_v7 = vmul.f32 %v3708_v25, %v2946_v26  ;;  %v2888_v51 = vpop.f32.mrb[87].mxu0 }
0x11e1   :  { %v2967_v57 = vadd.f32 %v3143_v39, %v2952_v21  ;;  %v2953_v60 = vmul.f32 %v2936_v43, %v2888_v51 }
0x11e2   :  { %2977 = vst [vmem:[#allocation12 + $0x30] sm:$0xff] %v2969_v29  ;;  %v2970_v8 = vadd.f32 %v3143_v39, %v2955_v7 }
0x11e3   :  { %2975 = vst [vmem:[#allocation12 + $0x20] sm:$0xff] %v2967_v57  ;;  %v2968_v44 = vadd.f32 %v3143_v39, %v2953_v60 }
0x11e4   :  { %2978 = vst [vmem:[#allocation12 + $0x38] sm:$0xff] %v2970_v8 }
0x11e5   :  { %2976 = vst [vmem:[#allocation12 + $0x28] sm:$0xff] %v2968_v44 }
0x11e6   :  { %4158 = shalt.err (!%p4155_p8)
}
0x11e7   :  { %s4159_s29 = scalar_lea.hbm %s5359_s12, 1024 }
0x11e8   :  { %p4160_p9 = scmp.ne.s32.totalorder %s5359_s12, %s4159_s29  ;;  %p4163_p10 = scmp.lt.u32.totalorder %s4159_s29, %s5359_s12 }
0x11ea   :  { %p4165_p11 = pnand %p4163_p10, %p4160_p9 }
0x11ec   :  { %4168 = shalt.err (!%p4165_p11)
}
0x11ed   :  { %s4187_s30 = smov 128   ;;  %s4188_s7 = smov 8  }
0x11ee   :  { %2990 = dma.vmem_to_hbm [thread:$0]  %s2985_s27, 1024, %s5359_s12, [#allocation6], %s4187_s30, %s4187_s30, %s4188_s7  }
0x11ef   :  { %4175 = dma.done.wait [#allocation6], 1024  }
0x11f0   :  { %4176 = vsyncadd [#allocation6], 4294966272 }
0x11f1   :  { %2994 = vsyncpa [#allocation5], 1 }
0x11f2   :  { %2995 = vsyncpa [#allocation8], 1 }
0x11f3   :  { %2996 = vsyncpa [#allocation11], 1 }
0x11f4   :  { %2997 = vsyncpa [#allocation6], 1 }

</bundles_post_ra>
